<compile_context>
chip_gen: v5e
topology: v5e:2x2
jax: 0.10.0
libtpu: 0.0.40
codegen_flags: <defaults>
</compile_context>

<pallas_src>
import functools

import jax
import jax.numpy as jnp
from jax.experimental import pallas as pl
from jax.experimental.pallas import tpu as pltpu


HP = 128   # per-gate lane padding: H=50 -> 128 so each gate starts on a lane boundary
OP = 128   # padded output lanes (final Linear) for a dense unmasked store
BP = 8     # padded batch (sublane) rows
IP = 16    # padded rows of the wih0 block inside the fused weight slab
           # (16 keeps every bf16 row offset aligned to the (16,128) bf16 tile)


def _sigmoid(x):
    # sigmoid via tanh: one EUP op + cheap VPU ops (no f32 divide on the VPU).
    return 0.5 * jnp.tanh(0.5 * x) + 0.5


def lstm_kernel(x_ref, w_ref, b_ref, out_ref, xproj_ref, *,
                seq_len, bp, hp, op, ip, in_size):
    """Fused 2-layer LSTM + final Linear on the last hidden state.

    x_ref:     (S*Bp, I)        f32 time-major input, flattened (row = t*Bp + b)
    w_ref:     (ip+3*hp, 4*hp)  bf16 fused weight slab, 16-row-aligned blocks:
                 rows [0, ip)          : layer-0 input weights  W_ih0  (gate-aligned cols)
                 rows [ip, ip+hp)      : layer-0 recurrent      W_hh0
                 rows [ip+hp, ip+2hp)  : layer-1 lane-packed    [W_ih1 @ rows 0..H-1,
                                                                 W_hh1 @ rows 64..64+H-1]
                 rows [ip+2hp, ip+3hp) : final Linear W_l^T in cols [0, op)
    b_ref:     (8, 4*hp)        f32 bias slab: row0 = b0 (= b_ih0+b_hh0),
                                row1 = b1, row2 = b_l padded
    out_ref:   (Bp, op)         f32
    xproj_ref: (S*Bp, 4*hp)     f32 VMEM scratch: precomputed layer-0 input projection
    """
    gp = 4 * hp

    b0 = b_ref[0:1, :]                       # (1, gp) f32
    b1 = b_ref[1:2, :]                       # (1, gp) f32
    bl = b_ref[2:3, 0:op]                    # (1, op) f32

    # ---- Precompute layer-0 input projection (+ its bias) for every timestep.
    # This removes one matmul from every serial recurrence step.
    if in_size == 1:
        # input_size == 1: pure VPU broadcast-multiply, no MXU needed at all.
        xproj_ref[...] = (x_ref[...] * w_ref[0:1, :].astype(jnp.float32) + b0)
    else:
        xproj_ref[...] = (
            jnp.dot(x_ref[...].astype(jnp.bfloat16), w_ref[0:in_size, :],
                    preferred_element_type=jnp.float32) + b0)

    # Hoist the layer-1 bias broadcast out of the loop (broadcast_in_dim is not CSE'd).
    b1b = jnp.broadcast_to(b1, (bp, gp))

    def gates_to_hc(gates, c):
        # PyTorch gate order: input, forget, cell(g), output.
        # hp == 128 -> every slice is 128-lane aligned.
        # One sigmoid over the contiguous (i, f) pair (fewer VPU filler ops).
        if_sig = _sigmoid(gates[:, 0:2 * hp])
        i = if_sig[:, 0:hp]
        f = if_sig[:, hp:2 * hp]
        g = jnp.tanh(gates[:, 2 * hp:3 * hp])
        o = _sigmoid(gates[:, 3 * hp:4 * hp])
        c_new = f * c + i * g
        h_new = o * jnp.tanh(c_new)
        return h_new, c_new

    def step(t, carry):
        h0, c0, h1, c1 = carry
        off = pl.multiple_of(t * bp, 8)
        xp = xproj_ref[pl.ds(off, bp), :]                      # (Bp, gp) f32

        # Layer 0: single recurrent bf16 matmul; x-projection + bias already
        # folded in.  Weight slab is re-read from VMEM each step (streamed),
        # never held live across the recurrence.
        g0 = xp + jnp.dot(h0.astype(jnp.bfloat16),
                          w_ref[ip:ip + hp, :],
                          preferred_element_type=jnp.float32)
        h0, c0 = gates_to_hc(g0, c0)

        # Layer 1: lane-pack h0 (lanes [0,H)) and h1 (rolled to lanes [64,64+H))
        # into one 128-lane operand -> K = hp instead of 2*hp.  Valid because
        # the padded lanes >= H of both h0 and h1 are exactly zero.
        # TODO(synk): nn.LSTM inter-layer dropout (p=0.2) is train-time only;
        # the inference forward pass has no dropout, so none is applied.
        hcat = (h0 + pltpu.roll(h1, shift=hp // 2, axis=1)).astype(jnp.bfloat16)
        g1 = jnp.dot(hcat, w_ref[ip + hp:ip + 2 * hp, :],
                     preferred_element_type=jnp.float32) + b1b
        h1, c1 = gates_to_hc(g1, c1)
        return (h0, c0, h1, c1)

    # Zero initial hidden/cell states, matching torch.zeros(...) in forward().
    z = jnp.zeros((bp, hp), jnp.float32)
    # Fully unrolled (S is small & static) so the scheduler can overlap steps.
    h0, c0, h1, c1 = jax.lax.fori_loop(0, seq_len, step, (z, z, z, z),
                                       unroll=True)

    # Final Linear on the last timestep's top-layer hidden state.
    out_ref[...] = (jnp.dot(h1.astype(jnp.bfloat16),
                            w_ref[ip + 2 * hp:ip + 3 * hp, 0:op],
                            preferred_element_type=jnp.float32) + bl)


def pack_params(params, hp=HP, op=OP, ip=IP):
    """One-time repack of PyTorch-layout LSTM/Linear params into a single
    padded, gate-aligned, transposed bf16 weight slab plus a small f32 bias
    slab (amortized across forward calls)."""
    H = params["whh0"].shape[1]
    O = params["wl"].shape[0]
    I = params["wih0"].shape[1]
    gp = 4 * hp
    assert H <= hp // 2, "lane-packing of h0/h1 requires hidden_size <= hp // 2"
    assert I <= ip and O <= op

    def gate_cols(w):                         # (4H, K) -> (K, 4*hp), 128-aligned gates
        wt = jnp.asarray(w, jnp.float32).T    # (K, 4H)
        cols = [jnp.pad(wt[:, g * H:(g + 1) * H], ((0, 0), (0, hp - H)))
                for g in range(4)]
        return jnp.concatenate(cols, axis=1)

    def gate_bias(b):                         # (4H,) -> (1, 4*hp)
        b = jnp.asarray(b, jnp.float32)
        cols = [jnp.pad(b[g * H:(g + 1) * H], (0, hp - H)) for g in range(4)]
        return jnp.concatenate(cols).reshape(1, gp)

    # Block 0: layer-0 input weights, padded to ip rows.
    wih0_rows = jnp.pad(gate_cols(params["wih0"]), ((0, ip - I), (0, 0)))
    # Block 1: layer-0 recurrent weights, padded to hp rows.
    whh0_rows = jnp.pad(gate_cols(params["whh0"]), ((0, hp - H), (0, 0)))
    # Block 2: layer-1 lane-packed weights: rows [0,H) act on h0 lanes,
    #          rows [hp//2, hp//2+H) act on h1 lanes (after the roll).
    w1_rows = jnp.zeros((hp, gp), jnp.float32)
    w1_rows = w1_rows.at[0:H].set(gate_cols(params["wih1"]))
    w1_rows = w1_rows.at[hp // 2:hp // 2 + H].set(gate_cols(params["whh1"]))
    # Block 3: final Linear weight (transposed, zero-padded) in cols [0, op).
    wl_rows = jnp.zeros((hp, gp), jnp.float32)
    wl_rows = wl_rows.at[0:H, 0:O].set(jnp.asarray(params["wl"], jnp.float32).T)

    w_big = jnp.concatenate([wih0_rows, whh0_rows, w1_rows, wl_rows],
                            axis=0).astype(jnp.bfloat16)          # (ip+3hp, gp)

    b0 = gate_bias(params["bih0"] + params["bhh0"])               # (1, gp)
    b1 = gate_bias(params["bih1"] + params["bhh1"])               # (1, gp)
    blr = jnp.pad(jnp.asarray(params["bl"], jnp.float32),
                  (0, gp - O)).reshape(1, gp)                     # (1, gp)
    biases = jnp.concatenate([b0, b1, blr, jnp.zeros((5, gp), jnp.float32)],
                             axis=0)                              # (8, gp) f32

    return {"w": w_big, "b": biases, "H": H, "O": O, "I": I}


def neural_network_forward(x, packed, *, hp=HP, op=OP, ip=IP):
    """x: (B, S, I) batch-first float32 (same layout as the PyTorch module)."""
    B, S, I = x.shape
    O = packed["O"]
    bp = max(BP, -(-B // 8) * 8)                            # pad batch to sublane count

    x_tm = jnp.transpose(x.astype(jnp.float32), (1, 0, 2))  # (S, B, I) time-major
    x_flat = jnp.pad(x_tm, ((0, 0), (0, bp - B), (0, 0))).reshape(S * bp, I)

    kernel = functools.partial(lstm_kernel, seq_len=S, bp=bp, hp=hp, op=op,
                               ip=ip, in_size=I)
    vmem = pl.BlockSpec(memory_space=pltpu.MemorySpace.VMEM)
    out = pl.pallas_call(
        kernel,
        out_shape=jax.ShapeDtypeStruct((bp, op), jnp.float32),
        in_specs=[vmem, vmem, vmem],
        out_specs=vmem,
        scratch_shapes=[pltpu.VMEM((S * bp, 4 * hp), jnp.float32)],
    )(x_flat, packed["w"], packed["b"])
    return out[:B, :O]


def init_params(key, input_size=1, hidden_size=50, output_size=1):
    """Deterministic init matching PyTorch LSTM/Linear parameter shapes."""
    H, I, O = hidden_size, input_size, output_size
    k = 1.0 / jnp.sqrt(jnp.float32(H))
    keys = jax.random.split(key, 10)
    u = lambda kk, shape: jax.random.uniform(kk, shape, jnp.float32, -k, k)
    return {
        "wih0": u(keys[0], (4 * H, I)),
        "whh0": u(keys[1], (4 * H, H)),
        "bih0": u(keys[2], (4 * H,)),
        "bhh0": u(keys[3], (4 * H,)),
        "wih1": u(keys[4], (4 * H, H)),
        "whh1": u(keys[5], (4 * H, H)),
        "bih1": u(keys[6], (4 * H,)),
        "bhh1": u(keys[7], (4 * H,)),
        "wl": u(keys[8], (O, H)),
        "bl": u(keys[9], (O,)),
    }


def ref_forward(x, params):
    """Pure-JAX f32 reference matching PyTorch nn.LSTM(2 layers, eval) + Linear."""
    B, S, _ = x.shape
    H = params["whh0"].shape[1]

    def cell(xt, h, c, wih, whh, bih, bhh):
        gates = xt @ wih.T + h @ whh.T + bih + bhh
        i = jax.nn.sigmoid(gates[:, 0 * H:1 * H])
        f = jax.nn.sigmoid(gates[:, 1 * H:2 * H])
        g = jnp.tanh(gates[:, 2 * H:3 * H])
        o = jax.nn.sigmoid(gates[:, 3 * H:4 * H])
        c_new = f * c + i * g
        return o * jnp.tanh(c_new), c_new

    h0 = c0 = h1 = c1 = jnp.zeros((B, H), jnp.float32)
    for t in range(S):
        h0, c0 = cell(x[:, t], h0, c0, params["wih0"], params["whh0"],
                      params["bih0"], params["bhh0"])
        h1, c1 = cell(h0, h1, c1, params["wih1"], params["whh1"],
                      params["bih1"], params["bhh1"])
    return h1 @ params["wl"].T + params["bl"]


if __name__ == "__main__":
    key = jax.random.PRNGKey(0)
    k_x, k_p = jax.random.split(key)

    batch, seq, input_size = 2, 8, 1
    hidden_size, output_size = 50, 1

    x = jax.random.normal(k_x, (batch, seq, input_size), jnp.float32)
    params = init_params(k_p, input_size, hidden_size, output_size)
    packed = pack_params(params)            # one-time weight repack (amortized)

    out = neural_network_forward(x, packed)
    jax.block_until_ready(out)
    assert out.shape == (batch, output_size)

    ref = ref_forward(x, params)
    # Tolerance loosened slightly vs. the all-f32 version: matmul operands are
    # bf16 (accumulation f32), which drifts ~0.5-1% through the 8-step recurrence.
    assert jnp.allclose(out, ref, atol=2e-2, rtol=5e-2), (out, ref)
    print("KERNEL_OK")
</pallas_src>

<mosaic_0001>
module attributes {stable_mosaic.version = 11 : i64} {
  func.func @lstm_kernel(%arg0: memref<64x1xf32, #tpu.memory_space<vmem>>, %arg1: memref<400x512xbf16, #tpu.memory_space<vmem>>, %arg2: memref<8x512xf32, #tpu.memory_space<vmem>>, %arg3: memref<8x128xf32, #tpu.memory_space<vmem>>, %arg4: memref<64x512xf32, #tpu.memory_space<vmem>>) attributes {dimension_semantics = [], scalar_prefetch = 0 : i64, scratch_operands = 1 : i64, tpu.core_type = #tpu.core_type<tc>} {
    %c0 = arith.constant 0 : index
    %c0_0 = arith.constant 0 : index
    %0 = vector.load %arg2[%c0, %c0_0] : memref<8x512xf32, #tpu.memory_space<vmem>>, vector<1x512xf32>
    %c1 = arith.constant 1 : index
    %c0_1 = arith.constant 0 : index
    %1 = vector.load %arg2[%c1, %c0_1] : memref<8x512xf32, #tpu.memory_space<vmem>>, vector<1x512xf32>
    %c2 = arith.constant 2 : index
    %c0_2 = arith.constant 0 : index
    %2 = vector.load %arg2[%c2, %c0_2] : memref<8x512xf32, #tpu.memory_space<vmem>>, vector<1x128xf32>
    %c0_3 = arith.constant 0 : index
    %c0_4 = arith.constant 0 : index
    %3 = vector.load %arg0[%c0_3, %c0_4] : memref<64x1xf32, #tpu.memory_space<vmem>>, vector<64x1xf32>
    %c0_5 = arith.constant 0 : index
    %c0_6 = arith.constant 0 : index
    %4 = vector.load %arg1[%c0_5, %c0_6] : memref<400x512xbf16, #tpu.memory_space<vmem>>, vector<1x512xbf16>
    %5 = arith.extf %4 : vector<1x512xbf16> to vector<1x512xf32>
    %6 = vector.broadcast %3 : vector<64x1xf32> to vector<64x512xf32>
    %7 = vector.broadcast %5 : vector<1x512xf32> to vector<64x512xf32>
    %8 = arith.mulf %6, %7 : vector<64x512xf32>
    %9 = vector.broadcast %0 : vector<1x512xf32> to vector<64x512xf32>
    %10 = arith.addf %8, %9 : vector<64x512xf32>
    %c0_7 = arith.constant 0 : index
    %c0_8 = arith.constant 0 : index
    %11 = vector.load %arg4[%c0_7, %c0_8] : memref<64x512xf32, #tpu.memory_space<vmem>>, vector<64x512xf32>
    tpu.vector_store %arg4[%c0_7, %c0_8], %10 {strides = array<i32>} : memref<64x512xf32, #tpu.memory_space<vmem>>, vector<64x512xf32>,
    %12 = vector.shape_cast %1 : vector<1x512xf32> to vector<1x512xf32>
    %13 = vector.broadcast %12 : vector<1x512xf32> to vector<8x512xf32>
    %cst = arith.constant 0.000000e+00 : f32
    %14 = vector.broadcast %cst : f32 to vector<8x128xf32>
    %c0_i32 = arith.constant 0 : i32
    %c8_i32 = arith.constant 8 : i32
    %15 = arith.muli %c0_i32, %c8_i32 : i32
    %16 = tpu.assume_multiple %15, 8 : i32
    %17 = arith.index_cast %16 : i32 to index
    %c0_9 = arith.constant 0 : index
    %18 = vector.load %arg4[%17, %c0_9] : memref<64x512xf32, #tpu.memory_space<vmem>>, vector<8x512xf32>
    %19 = arith.truncf %14 : vector<8x128xf32> to vector<8x128xbf16>
    %c16 = arith.constant 16 : index
    %c0_10 = arith.constant 0 : index
    %20 = vector.load %arg1[%c16, %c0_10] : memref<400x512xbf16, #tpu.memory_space<vmem>>, vector<128x512xbf16>
    %cst_11 = arith.constant dense<0.000000e+00> : vector<8x512xf32>
    %21 = tpu.matmul %19, %20, %cst_11 {dimension_numbers = #tpu.dot_dimension_numbers<[1], [0], [0], [1], [0, 0, 1, 1], [], []>} : vector<8x128xbf16>, vector<128x512xbf16>, vector<8x512xf32> -> vector<8x512xf32>
    %22 = arith.addf %18, %21 : vector<8x512xf32>
    %23 = vector.extract_strided_slice %22 {offsets = [0, 0], sizes = [8, 256], strides = [1, 1]} : vector<8x512xf32> to vector<8x256xf32>
    %cst_12 = arith.constant 5.000000e-01 : f32
    %24 = vector.broadcast %cst_12 : f32 to vector<8x256xf32>
    %25 = arith.mulf %24, %23 : vector<8x256xf32>
    %26 = math.tanh %25 : vector<8x256xf32>
    %cst_13 = arith.constant 5.000000e-01 : f32
    %27 = vector.broadcast %cst_13 : f32 to vector<8x256xf32>
    %28 = arith.mulf %27, %26 : vector<8x256xf32>
    %cst_14 = arith.constant 5.000000e-01 : f32
    %29 = vector.broadcast %cst_14 : f32 to vector<8x256xf32>
    %30 = arith.addf %28, %29 : vector<8x256xf32>
    %31 = vector.extract_strided_slice %30 {offsets = [0, 0], sizes = [8, 128], strides = [1, 1]} : vector<8x256xf32> to vector<8x128xf32>
    %32 = vector.extract_strided_slice %30 {offsets = [0, 128], sizes = [8, 128], strides = [1, 1]} : vector<8x256xf32> to vector<8x128xf32>
    %33 = vector.extract_strided_slice %22 {offsets = [0, 256], sizes = [8, 128], strides = [1, 1]} : vector<8x512xf32> to vector<8x128xf32>
    %34 = math.tanh %33 : vector<8x128xf32>
    %35 = vector.extract_strided_slice %22 {offsets = [0, 384], sizes = [8, 128], strides = [1, 1]} : vector<8x512xf32> to vector<8x128xf32>
    %cst_15 = arith.constant 5.000000e-01 : f32
    %36 = vector.broadcast %cst_15 : f32 to vector<8x128xf32>
    %37 = arith.mulf %36, %35 : vector<8x128xf32>
    %38 = math.tanh %37 : vector<8x128xf32>
    %cst_16 = arith.constant 5.000000e-01 : f32
    %39 = vector.broadcast %cst_16 : f32 to vector<8x128xf32>
    %40 = arith.mulf %39, %38 : vector<8x128xf32>
    %cst_17 = arith.constant 5.000000e-01 : f32
    %41 = vector.broadcast %cst_17 : f32 to vector<8x128xf32>
    %42 = arith.addf %40, %41 : vector<8x128xf32>
    %43 = arith.mulf %32, %14 : vector<8x128xf32>
    %44 = arith.mulf %31, %34 : vector<8x128xf32>
    %45 = arith.addf %43, %44 : vector<8x128xf32>
    %46 = math.tanh %45 : vector<8x128xf32>
    %47 = arith.mulf %42, %46 : vector<8x128xf32>
    %c64_i32 = arith.constant 64 : i32
    %48 = tpu.dynamic_rotate %14 by %c64_i32 dim 1 : vector<8x128xf32>, i32 -> vector<8x128xf32>
    %49 = arith.addf %47, %48 : vector<8x128xf32>
    %50 = arith.truncf %49 : vector<8x128xf32> to vector<8x128xbf16>
    %c144 = arith.constant 144 : index
    %c0_18 = arith.constant 0 : index
    %51 = vector.load %arg1[%c144, %c0_18] : memref<400x512xbf16, #tpu.memory_space<vmem>>, vector<128x512xbf16>
    %cst_19 = arith.constant dense<0.000000e+00> : vector<8x512xf32>
    %52 = tpu.matmul %50, %51, %cst_19 {dimension_numbers = #tpu.dot_dimension_numbers<[1], [0], [0], [1], [0, 0, 1, 1], [], []>} : vector<8x128xbf16>, vector<128x512xbf16>, vector<8x512xf32> -> vector<8x512xf32>
    %53 = arith.addf %52, %13 : vector<8x512xf32>
    %54 = vector.extract_strided_slice %53 {offsets = [0, 0], sizes = [8, 256], strides = [1, 1]} : vector<8x512xf32> to vector<8x256xf32>
    %cst_20 = arith.constant 5.000000e-01 : f32
    %55 = vector.broadcast %cst_20 : f32 to vector<8x256xf32>
    %56 = arith.mulf %55, %54 : vector<8x256xf32>
    %57 = math.tanh %56 : vector<8x256xf32>
    %cst_21 = arith.constant 5.000000e-01 : f32
    %58 = vector.broadcast %cst_21 : f32 to vector<8x256xf32>
    %59 = arith.mulf %58, %57 : vector<8x256xf32>
    %cst_22 = arith.constant 5.000000e-01 : f32
    %60 = vector.broadcast %cst_22 : f32 to vector<8x256xf32>
    %61 = arith.addf %59, %60 : vector<8x256xf32>
    %62 = vector.extract_strided_slice %61 {offsets = [0, 0], sizes = [8, 128], strides = [1, 1]} : vector<8x256xf32> to vector<8x128xf32>
    %63 = vector.extract_strided_slice %61 {offsets = [0, 128], sizes = [8, 128], strides = [1, 1]} : vector<8x256xf32> to vector<8x128xf32>
    %64 = vector.extract_strided_slice %53 {offsets = [0, 256], sizes = [8, 128], strides = [1, 1]} : vector<8x512xf32> to vector<8x128xf32>
    %65 = math.tanh %64 : vector<8x128xf32>
    %66 = vector.extract_strided_slice %53 {offsets = [0, 384], sizes = [8, 128], strides = [1, 1]} : vector<8x512xf32> to vector<8x128xf32>
    %cst_23 = arith.constant 5.000000e-01 : f32
    %67 = vector.broadcast %cst_23 : f32 to vector<8x128xf32>
    %68 = arith.mulf %67, %66 : vector<8x128xf32>
    %69 = math.tanh %68 : vector<8x128xf32>
    %cst_24 = arith.constant 5.000000e-01 : f32
    %70 = vector.broadcast %cst_24 : f32 to vector<8x128xf32>
    %71 = arith.mulf %70, %69 : vector<8x128xf32>
    %cst_25 = arith.constant 5.000000e-01 : f32
    %72 = vector.broadcast %cst_25 : f32 to vector<8x128xf32>
    %73 = arith.addf %71, %72 : vector<8x128xf32>
    %74 = arith.mulf %63, %14 : vector<8x128xf32>
    %75 = arith.mulf %62, %65 : vector<8x128xf32>
    %76 = arith.addf %74, %75 : vector<8x128xf32>
    %77 = math.tanh %76 : vector<8x128xf32>
    %78 = arith.mulf %73, %77 : vector<8x128xf32>
    %c1_i32 = arith.constant 1 : i32
    %c8_i32_26 = arith.constant 8 : i32
    %79 = arith.muli %c1_i32, %c8_i32_26 : i32
    %80 = tpu.assume_multiple %79, 8 : i32
    %81 = arith.index_cast %80 : i32 to index
    %c0_27 = arith.constant 0 : index
    %82 = vector.load %arg4[%81, %c0_27] : memref<64x512xf32, #tpu.memory_space<vmem>>, vector<8x512xf32>
    %83 = arith.truncf %47 : vector<8x128xf32> to vector<8x128xbf16>
    %c16_28 = arith.constant 16 : index
    %c0_29 = arith.constant 0 : index
    %84 = vector.load %arg1[%c16_28, %c0_29] : memref<400x512xbf16, #tpu.memory_space<vmem>>, vector<128x512xbf16>
    %cst_30 = arith.constant dense<0.000000e+00> : vector<8x512xf32>
    %85 = tpu.matmul %83, %84, %cst_30 {dimension_numbers = #tpu.dot_dimension_numbers<[1], [0], [0], [1], [0, 0, 1, 1], [], []>} : vector<8x128xbf16>, vector<128x512xbf16>, vector<8x512xf32> -> vector<8x512xf32>
    %86 = arith.addf %82, %85 : vector<8x512xf32>
    %87 = vector.extract_strided_slice %86 {offsets = [0, 0], sizes = [8, 256], strides = [1, 1]} : vector<8x512xf32> to vector<8x256xf32>
    %cst_31 = arith.constant 5.000000e-01 : f32
    %88 = vector.broadcast %cst_31 : f32 to vector<8x256xf32>
    %89 = arith.mulf %88, %87 : vector<8x256xf32>
    %90 = math.tanh %89 : vector<8x256xf32>
    %cst_32 = arith.constant 5.000000e-01 : f32
    %91 = vector.broadcast %cst_32 : f32 to vector<8x256xf32>
    %92 = arith.mulf %91, %90 : vector<8x256xf32>
    %cst_33 = arith.constant 5.000000e-01 : f32
    %93 = vector.broadcast %cst_33 : f32 to vector<8x256xf32>
    %94 = arith.addf %92, %93 : vector<8x256xf32>
    %95 = vector.extract_strided_slice %94 {offsets = [0, 0], sizes = [8, 128], strides = [1, 1]} : vector<8x256xf32> to vector<8x128xf32>
    %96 = vector.extract_strided_slice %94 {offsets = [0, 128], sizes = [8, 128], strides = [1, 1]} : vector<8x256xf32> to vector<8x128xf32>
    %97 = vector.extract_strided_slice %86 {offsets = [0, 256], sizes = [8, 128], strides = [1, 1]} : vector<8x512xf32> to vector<8x128xf32>
    %98 = math.tanh %97 : vector<8x128xf32>
    %99 = vector.extract_strided_slice %86 {offsets = [0, 384], sizes = [8, 128], strides = [1, 1]} : vector<8x512xf32> to vector<8x128xf32>
    %cst_34 = arith.constant 5.000000e-01 : f32
    %100 = vector.broadcast %cst_34 : f32 to vector<8x128xf32>
    %101 = arith.mulf %100, %99 : vector<8x128xf32>
    %102 = math.tanh %101 : vector<8x128xf32>
    %cst_35 = arith.constant 5.000000e-01 : f32
    %103 = vector.broadcast %cst_35 : f32 to vector<8x128xf32>
    %104 = arith.mulf %103, %102 : vector<8x128xf32>
    %cst_36 = arith.constant 5.000000e-01 : f32
    %105 = vector.broadcast %cst_36 : f32 to vector<8x128xf32>
    %106 = arith.addf %104, %105 : vector<8x128xf32>
    %107 = arith.mulf %96, %45 : vector<8x128xf32>
    %108 = arith.mulf %95, %98 : vector<8x128xf32>
    %109 = arith.addf %107, %108 : vector<8x128xf32>
    %110 = math.tanh %109 : vector<8x128xf32>
    %111 = arith.mulf %106, %110 : vector<8x128xf32>
    %c64_i32_37 = arith.constant 64 : i32
    %112 = tpu.dynamic_rotate %78 by %c64_i32_37 dim 1 : vector<8x128xf32>, i32 -> vector<8x128xf32>
    %113 = arith.addf %111, %112 : vector<8x128xf32>
    %114 = arith.truncf %113 : vector<8x128xf32> to vector<8x128xbf16>
    %c144_38 = arith.constant 144 : index
    %c0_39 = arith.constant 0 : index
    %115 = vector.load %arg1[%c144_38, %c0_39] : memref<400x512xbf16, #tpu.memory_space<vmem>>, vector<128x512xbf16>
    %cst_40 = arith.constant dense<0.000000e+00> : vector<8x512xf32>
    %116 = tpu.matmul %114, %115, %cst_40 {dimension_numbers = #tpu.dot_dimension_numbers<[1], [0], [0], [1], [0, 0, 1, 1], [], []>} : vector<8x128xbf16>, vector<128x512xbf16>, vector<8x512xf32> -> vector<8x512xf32>
    %117 = arith.addf %116, %13 : vector<8x512xf32>
    %118 = vector.extract_strided_slice %117 {offsets = [0, 0], sizes = [8, 256], strides = [1, 1]} : vector<8x512xf32> to vector<8x256xf32>
    %cst_41 = arith.constant 5.000000e-01 : f32
    %119 = vector.broadcast %cst_41 : f32 to vector<8x256xf32>
    %120 = arith.mulf %119, %118 : vector<8x256xf32>
    %121 = math.tanh %120 : vector<8x256xf32>
    %cst_42 = arith.constant 5.000000e-01 : f32
    %122 = vector.broadcast %cst_42 : f32 to vector<8x256xf32>
    %123 = arith.mulf %122, %121 : vector<8x256xf32>
    %cst_43 = arith.constant 5.000000e-01 : f32
    %124 = vector.broadcast %cst_43 : f32 to vector<8x256xf32>
    %125 = arith.addf %123, %124 : vector<8x256xf32>
    %126 = vector.extract_strided_slice %125 {offsets = [0, 0], sizes = [8, 128], strides = [1, 1]} : vector<8x256xf32> to vector<8x128xf32>
    %127 = vector.extract_strided_slice %125 {offsets = [0, 128], sizes = [8, 128], strides = [1, 1]} : vector<8x256xf32> to vector<8x128xf32>
    %128 = vector.extract_strided_slice %117 {offsets = [0, 256], sizes = [8, 128], strides = [1, 1]} : vector<8x512xf32> to vector<8x128xf32>
    %129 = math.tanh %128 : vector<8x128xf32>
    %130 = vector.extract_strided_slice %117 {offsets = [0, 384], sizes = [8, 128], strides = [1, 1]} : vector<8x512xf32> to vector<8x128xf32>
    %cst_44 = arith.constant 5.000000e-01 : f32
    %131 = vector.broadcast %cst_44 : f32 to vector<8x128xf32>
    %132 = arith.mulf %131, %130 : vector<8x128xf32>
    %133 = math.tanh %132 : vector<8x128xf32>
    %cst_45 = arith.constant 5.000000e-01 : f32
    %134 = vector.broadcast %cst_45 : f32 to vector<8x128xf32>
    %135 = arith.mulf %134, %133 : vector<8x128xf32>
    %cst_46 = arith.constant 5.000000e-01 : f32
    %136 = vector.broadcast %cst_46 : f32 to vector<8x128xf32>
    %137 = arith.addf %135, %136 : vector<8x128xf32>
    %138 = arith.mulf %127, %76 : vector<8x128xf32>
    %139 = arith.mulf %126, %129 : vector<8x128xf32>
    %140 = arith.addf %138, %139 : vector<8x128xf32>
    %141 = math.tanh %140 : vector<8x128xf32>
    %142 = arith.mulf %137, %141 : vector<8x128xf32>
    %c2_i32 = arith.constant 2 : i32
    %c8_i32_47 = arith.constant 8 : i32
    %143 = arith.muli %c2_i32, %c8_i32_47 : i32
    %144 = tpu.assume_multiple %143, 8 : i32
    %145 = arith.index_cast %144 : i32 to index
    %c0_48 = arith.constant 0 : index
    %146 = vector.load %arg4[%145, %c0_48] : memref<64x512xf32, #tpu.memory_space<vmem>>, vector<8x512xf32>
    %147 = arith.truncf %111 : vector<8x128xf32> to vector<8x128xbf16>
    %c16_49 = arith.constant 16 : index
    %c0_50 = arith.constant 0 : index
    %148 = vector.load %arg1[%c16_49, %c0_50] : memref<400x512xbf16, #tpu.memory_space<vmem>>, vector<128x512xbf16>
    %cst_51 = arith.constant dense<0.000000e+00> : vector<8x512xf32>
    %149 = tpu.matmul %147, %148, %cst_51 {dimension_numbers = #tpu.dot_dimension_numbers<[1], [0], [0], [1], [0, 0, 1, 1], [], []>} : vector<8x128xbf16>, vector<128x512xbf16>, vector<8x512xf32> -> vector<8x512xf32>
    %150 = arith.addf %146, %149 : vector<8x512xf32>
    %151 = vector.extract_strided_slice %150 {offsets = [0, 0], sizes = [8, 256], strides = [1, 1]} : vector<8x512xf32> to vector<8x256xf32>
    %cst_52 = arith.constant 5.000000e-01 : f32
    %152 = vector.broadcast %cst_52 : f32 to vector<8x256xf32>
    %153 = arith.mulf %152, %151 : vector<8x256xf32>
    %154 = math.tanh %153 : vector<8x256xf32>
    %cst_53 = arith.constant 5.000000e-01 : f32
    %155 = vector.broadcast %cst_53 : f32 to vector<8x256xf32>
    %156 = arith.mulf %155, %154 : vector<8x256xf32>
    %cst_54 = arith.constant 5.000000e-01 : f32
    %157 = vector.broadcast %cst_54 : f32 to vector<8x256xf32>
    %158 = arith.addf %156, %157 : vector<8x256xf32>
    %159 = vector.extract_strided_slice %158 {offsets = [0, 0], sizes = [8, 128], strides = [1, 1]} : vector<8x256xf32> to vector<8x128xf32>
    %160 = vector.extract_strided_slice %158 {offsets = [0, 128], sizes = [8, 128], strides = [1, 1]} : vector<8x256xf32> to vector<8x128xf32>
    %161 = vector.extract_strided_slice %150 {offsets = [0, 256], sizes = [8, 128], strides = [1, 1]} : vector<8x512xf32> to vector<8x128xf32>
    %162 = math.tanh %161 : vector<8x128xf32>
    %163 = vector.extract_strided_slice %150 {offsets = [0, 384], sizes = [8, 128], strides = [1, 1]} : vector<8x512xf32> to vector<8x128xf32>
    %cst_55 = arith.constant 5.000000e-01 : f32
    %164 = vector.broadcast %cst_55 : f32 to vector<8x128xf32>
    %165 = arith.mulf %164, %163 : vector<8x128xf32>
    %166 = math.tanh %165 : vector<8x128xf32>
    %cst_56 = arith.constant 5.000000e-01 : f32
    %167 = vector.broadcast %cst_56 : f32 to vector<8x128xf32>
    %168 = arith.mulf %167, %166 : vector<8x128xf32>
    %cst_57 = arith.constant 5.000000e-01 : f32
    %169 = vector.broadcast %cst_57 : f32 to vector<8x128xf32>
    %170 = arith.addf %168, %169 : vector<8x128xf32>
    %171 = arith.mulf %160, %109 : vector<8x128xf32>
    %172 = arith.mulf %159, %162 : vector<8x128xf32>
    %173 = arith.addf %171, %172 : vector<8x128xf32>
    %174 = math.tanh %173 : vector<8x128xf32>
    %175 = arith.mulf %170, %174 : vector<8x128xf32>
    %c64_i32_58 = arith.constant 64 : i32
    %176 = tpu.dynamic_rotate %142 by %c64_i32_58 dim 1 : vector<8x128xf32>, i32 -> vector<8x128xf32>
    %177 = arith.addf %175, %176 : vector<8x128xf32>
    %178 = arith.truncf %177 : vector<8x128xf32> to vector<8x128xbf16>
    %c144_59 = arith.constant 144 : index
    %c0_60 = arith.constant 0 : index
    %179 = vector.load %arg1[%c144_59, %c0_60] : memref<400x512xbf16, #tpu.memory_space<vmem>>, vector<128x512xbf16>
    %cst_61 = arith.constant dense<0.000000e+00> : vector<8x512xf32>
    %180 = tpu.matmul %178, %179, %cst_61 {dimension_numbers = #tpu.dot_dimension_numbers<[1], [0], [0], [1], [0, 0, 1, 1], [], []>} : vector<8x128xbf16>, vector<128x512xbf16>, vector<8x512xf32> -> vector<8x512xf32>
    %181 = arith.addf %180, %13 : vector<8x512xf32>
    %182 = vector.extract_strided_slice %181 {offsets = [0, 0], sizes = [8, 256], strides = [1, 1]} : vector<8x512xf32> to vector<8x256xf32>
    %cst_62 = arith.constant 5.000000e-01 : f32
    %183 = vector.broadcast %cst_62 : f32 to vector<8x256xf32>
    %184 = arith.mulf %183, %182 : vector<8x256xf32>
    %185 = math.tanh %184 : vector<8x256xf32>
    %cst_63 = arith.constant 5.000000e-01 : f32
    %186 = vector.broadcast %cst_63 : f32 to vector<8x256xf32>
    %187 = arith.mulf %186, %185 : vector<8x256xf32>
    %cst_64 = arith.constant 5.000000e-01 : f32
    %188 = vector.broadcast %cst_64 : f32 to vector<8x256xf32>
    %189 = arith.addf %187, %188 : vector<8x256xf32>
    %190 = vector.extract_strided_slice %189 {offsets = [0, 0], sizes = [8, 128], strides = [1, 1]} : vector<8x256xf32> to vector<8x128xf32>
    %191 = vector.extract_strided_slice %189 {offsets = [0, 128], sizes = [8, 128], strides = [1, 1]} : vector<8x256xf32> to vector<8x128xf32>
    %192 = vector.extract_strided_slice %181 {offsets = [0, 256], sizes = [8, 128], strides = [1, 1]} : vector<8x512xf32> to vector<8x128xf32>
    %193 = math.tanh %192 : vector<8x128xf32>
    %194 = vector.extract_strided_slice %181 {offsets = [0, 384], sizes = [8, 128], strides = [1, 1]} : vector<8x512xf32> to vector<8x128xf32>
    %cst_65 = arith.constant 5.000000e-01 : f32
    %195 = vector.broadcast %cst_65 : f32 to vector<8x128xf32>
    %196 = arith.mulf %195, %194 : vector<8x128xf32>
    %197 = math.tanh %196 : vector<8x128xf32>
    %cst_66 = arith.constant 5.000000e-01 : f32
    %198 = vector.broadcast %cst_66 : f32 to vector<8x128xf32>
    %199 = arith.mulf %198, %197 : vector<8x128xf32>
    %cst_67 = arith.constant 5.000000e-01 : f32
    %200 = vector.broadcast %cst_67 : f32 to vector<8x128xf32>
    %201 = arith.addf %199, %200 : vector<8x128xf32>
    %202 = arith.mulf %191, %140 : vector<8x128xf32>
    %203 = arith.mulf %190, %193 : vector<8x128xf32>
    %204 = arith.addf %202, %203 : vector<8x128xf32>
    %205 = math.tanh %204 : vector<8x128xf32>
    %206 = arith.mulf %201, %205 : vector<8x128xf32>
    %c3_i32 = arith.constant 3 : i32
    %c8_i32_68 = arith.constant 8 : i32
    %207 = arith.muli %c3_i32, %c8_i32_68 : i32
    %208 = tpu.assume_multiple %207, 8 : i32
    %209 = arith.index_cast %208 : i32 to index
    %c0_69 = arith.constant 0 : index
    %210 = vector.load %arg4[%209, %c0_69] : memref<64x512xf32, #tpu.memory_space<vmem>>, vector<8x512xf32>
    %211 = arith.truncf %175 : vector<8x128xf32> to vector<8x128xbf16>
    %c16_70 = arith.constant 16 : index
    %c0_71 = arith.constant 0 : index
    %212 = vector.load %arg1[%c16_70, %c0_71] : memref<400x512xbf16, #tpu.memory_space<vmem>>, vector<128x512xbf16>
    %cst_72 = arith.constant dense<0.000000e+00> : vector<8x512xf32>
    %213 = tpu.matmul %211, %212, %cst_72 {dimension_numbers = #tpu.dot_dimension_numbers<[1], [0], [0], [1], [0, 0, 1, 1], [], []>} : vector<8x128xbf16>, vector<128x512xbf16>, vector<8x512xf32> -> vector<8x512xf32>
    %214 = arith.addf %210, %213 : vector<8x512xf32>
    %215 = vector.extract_strided_slice %214 {offsets = [0, 0], sizes = [8, 256], strides = [1, 1]} : vector<8x512xf32> to vector<8x256xf32>
    %cst_73 = arith.constant 5.000000e-01 : f32
    %216 = vector.broadcast %cst_73 : f32 to vector<8x256xf32>
    %217 = arith.mulf %216, %215 : vector<8x256xf32>
    %218 = math.tanh %217 : vector<8x256xf32>
    %cst_74 = arith.constant 5.000000e-01 : f32
    %219 = vector.broadcast %cst_74 : f32 to vector<8x256xf32>
    %220 = arith.mulf %219, %218 : vector<8x256xf32>
    %cst_75 = arith.constant 5.000000e-01 : f32
    %221 = vector.broadcast %cst_75 : f32 to vector<8x256xf32>
    %222 = arith.addf %220, %221 : vector<8x256xf32>
    %223 = vector.extract_strided_slice %222 {offsets = [0, 0], sizes = [8, 128], strides = [1, 1]} : vector<8x256xf32> to vector<8x128xf32>
    %224 = vector.extract_strided_slice %222 {offsets = [0, 128], sizes = [8, 128], strides = [1, 1]} : vector<8x256xf32> to vector<8x128xf32>
    %225 = vector.extract_strided_slice %214 {offsets = [0, 256], sizes = [8, 128], strides = [1, 1]} : vector<8x512xf32> to vector<8x128xf32>
    %226 = math.tanh %225 : vector<8x128xf32>
    %227 = vector.extract_strided_slice %214 {offsets = [0, 384], sizes = [8, 128], strides = [1, 1]} : vector<8x512xf32> to vector<8x128xf32>
    %cst_76 = arith.constant 5.000000e-01 : f32
    %228 = vector.broadcast %cst_76 : f32 to vector<8x128xf32>
    %229 = arith.mulf %228, %227 : vector<8x128xf32>
    %230 = math.tanh %229 : vector<8x128xf32>
    %cst_77 = arith.constant 5.000000e-01 : f32
    %231 = vector.broadcast %cst_77 : f32 to vector<8x128xf32>
    %232 = arith.mulf %231, %230 : vector<8x128xf32>
    %cst_78 = arith.constant 5.000000e-01 : f32
    %233 = vector.broadcast %cst_78 : f32 to vector<8x128xf32>
    %234 = arith.addf %232, %233 : vector<8x128xf32>
    %235 = arith.mulf %224, %173 : vector<8x128xf32>
    %236 = arith.mulf %223, %226 : vector<8x128xf32>
    %237 = arith.addf %235, %236 : vector<8x128xf32>
    %238 = math.tanh %237 : vector<8x128xf32>
    %239 = arith.mulf %234, %238 : vector<8x128xf32>
    %c64_i32_79 = arith.constant 64 : i32
    %240 = tpu.dynamic_rotate %206 by %c64_i32_79 dim 1 : vector<8x128xf32>, i32 -> vector<8x128xf32>
    %241 = arith.addf %239, %240 : vector<8x128xf32>
    %242 = arith.truncf %241 : vector<8x128xf32> to vector<8x128xbf16>
    %c144_80 = arith.constant 144 : index
    %c0_81 = arith.constant 0 : index
    %243 = vector.load %arg1[%c144_80, %c0_81] : memref<400x512xbf16, #tpu.memory_space<vmem>>, vector<128x512xbf16>
    %cst_82 = arith.constant dense<0.000000e+00> : vector<8x512xf32>
    %244 = tpu.matmul %242, %243, %cst_82 {dimension_numbers = #tpu.dot_dimension_numbers<[1], [0], [0], [1], [0, 0, 1, 1], [], []>} : vector<8x128xbf16>, vector<128x512xbf16>, vector<8x512xf32> -> vector<8x512xf32>
    %245 = arith.addf %244, %13 : vector<8x512xf32>
    %246 = vector.extract_strided_slice %245 {offsets = [0, 0], sizes = [8, 256], strides = [1, 1]} : vector<8x512xf32> to vector<8x256xf32>
    %cst_83 = arith.constant 5.000000e-01 : f32
    %247 = vector.broadcast %cst_83 : f32 to vector<8x256xf32>
    %248 = arith.mulf %247, %246 : vector<8x256xf32>
    %249 = math.tanh %248 : vector<8x256xf32>
    %cst_84 = arith.constant 5.000000e-01 : f32
    %250 = vector.broadcast %cst_84 : f32 to vector<8x256xf32>
    %251 = arith.mulf %250, %249 : vector<8x256xf32>
    %cst_85 = arith.constant 5.000000e-01 : f32
    %252 = vector.broadcast %cst_85 : f32 to vector<8x256xf32>
    %253 = arith.addf %251, %252 : vector<8x256xf32>
    %254 = vector.extract_strided_slice %253 {offsets = [0, 0], sizes = [8, 128], strides = [1, 1]} : vector<8x256xf32> to vector<8x128xf32>
    %255 = vector.extract_strided_slice %253 {offsets = [0, 128], sizes = [8, 128], strides = [1, 1]} : vector<8x256xf32> to vector<8x128xf32>
    %256 = vector.extract_strided_slice %245 {offsets = [0, 256], sizes = [8, 128], strides = [1, 1]} : vector<8x512xf32> to vector<8x128xf32>
    %257 = math.tanh %256 : vector<8x128xf32>
    %258 = vector.extract_strided_slice %245 {offsets = [0, 384], sizes = [8, 128], strides = [1, 1]} : vector<8x512xf32> to vector<8x128xf32>
    %cst_86 = arith.constant 5.000000e-01 : f32
    %259 = vector.broadcast %cst_86 : f32 to vector<8x128xf32>
    %260 = arith.mulf %259, %258 : vector<8x128xf32>
    %261 = math.tanh %260 : vector<8x128xf32>
    %cst_87 = arith.constant 5.000000e-01 : f32
    %262 = vector.broadcast %cst_87 : f32 to vector<8x128xf32>
    %263 = arith.mulf %262, %261 : vector<8x128xf32>
    %cst_88 = arith.constant 5.000000e-01 : f32
    %264 = vector.broadcast %cst_88 : f32 to vector<8x128xf32>
    %265 = arith.addf %263, %264 : vector<8x128xf32>
    %266 = arith.mulf %255, %204 : vector<8x128xf32>
    %267 = arith.mulf %254, %257 : vector<8x128xf32>
    %268 = arith.addf %266, %267 : vector<8x128xf32>
    %269 = math.tanh %268 : vector<8x128xf32>
    %270 = arith.mulf %265, %269 : vector<8x128xf32>
    %c4_i32 = arith.constant 4 : i32
    %c8_i32_89 = arith.constant 8 : i32
    %271 = arith.muli %c4_i32, %c8_i32_89 : i32
    %272 = tpu.assume_multiple %271, 8 : i32
    %273 = arith.index_cast %272 : i32 to index
    %c0_90 = arith.constant 0 : index
    %274 = vector.load %arg4[%273, %c0_90] : memref<64x512xf32, #tpu.memory_space<vmem>>, vector<8x512xf32>
    %275 = arith.truncf %239 : vector<8x128xf32> to vector<8x128xbf16>
    %c16_91 = arith.constant 16 : index
    %c0_92 = arith.constant 0 : index
    %276 = vector.load %arg1[%c16_91, %c0_92] : memref<400x512xbf16, #tpu.memory_space<vmem>>, vector<128x512xbf16>
    %cst_93 = arith.constant dense<0.000000e+00> : vector<8x512xf32>
    %277 = tpu.matmul %275, %276, %cst_93 {dimension_numbers = #tpu.dot_dimension_numbers<[1], [0], [0], [1], [0, 0, 1, 1], [], []>} : vector<8x128xbf16>, vector<128x512xbf16>, vector<8x512xf32> -> vector<8x512xf32>
    %278 = arith.addf %274, %277 : vector<8x512xf32>
    %279 = vector.extract_strided_slice %278 {offsets = [0, 0], sizes = [8, 256], strides = [1, 1]} : vector<8x512xf32> to vector<8x256xf32>
    %cst_94 = arith.constant 5.000000e-01 : f32
    %280 = vector.broadcast %cst_94 : f32 to vector<8x256xf32>
    %281 = arith.mulf %280, %279 : vector<8x256xf32>
    %282 = math.tanh %281 : vector<8x256xf32>
    %cst_95 = arith.constant 5.000000e-01 : f32
    %283 = vector.broadcast %cst_95 : f32 to vector<8x256xf32>
    %284 = arith.mulf %283, %282 : vector<8x256xf32>
    %cst_96 = arith.constant 5.000000e-01 : f32
    %285 = vector.broadcast %cst_96 : f32 to vector<8x256xf32>
    %286 = arith.addf %284, %285 : vector<8x256xf32>
    %287 = vector.extract_strided_slice %286 {offsets = [0, 0], sizes = [8, 128], strides = [1, 1]} : vector<8x256xf32> to vector<8x128xf32>
    %288 = vector.extract_strided_slice %286 {offsets = [0, 128], sizes = [8, 128], strides = [1, 1]} : vector<8x256xf32> to vector<8x128xf32>
    %289 = vector.extract_strided_slice %278 {offsets = [0, 256], sizes = [8, 128], strides = [1, 1]} : vector<8x512xf32> to vector<8x128xf32>
    %290 = math.tanh %289 : vector<8x128xf32>
    %291 = vector.extract_strided_slice %278 {offsets = [0, 384], sizes = [8, 128], strides = [1, 1]} : vector<8x512xf32> to vector<8x128xf32>
    %cst_97 = arith.constant 5.000000e-01 : f32
    %292 = vector.broadcast %cst_97 : f32 to vector<8x128xf32>
    %293 = arith.mulf %292, %291 : vector<8x128xf32>
    %294 = math.tanh %293 : vector<8x128xf32>
    %cst_98 = arith.constant 5.000000e-01 : f32
    %295 = vector.broadcast %cst_98 : f32 to vector<8x128xf32>
    %296 = arith.mulf %295, %294 : vector<8x128xf32>
    %cst_99 = arith.constant 5.000000e-01 : f32
    %297 = vector.broadcast %cst_99 : f32 to vector<8x128xf32>
    %298 = arith.addf %296, %297 : vector<8x128xf32>
    %299 = arith.mulf %288, %237 : vector<8x128xf32>
    %300 = arith.mulf %287, %290 : vector<8x128xf32>
    %301 = arith.addf %299, %300 : vector<8x128xf32>
    %302 = math.tanh %301 : vector<8x128xf32>
    %303 = arith.mulf %298, %302 : vector<8x128xf32>
    %c64_i32_100 = arith.constant 64 : i32
    %304 = tpu.dynamic_rotate %270 by %c64_i32_100 dim 1 : vector<8x128xf32>, i32 -> vector<8x128xf32>
    %305 = arith.addf %303, %304 : vector<8x128xf32>
    %306 = arith.truncf %305 : vector<8x128xf32> to vector<8x128xbf16>
    %c144_101 = arith.constant 144 : index
    %c0_102 = arith.constant 0 : index
    %307 = vector.load %arg1[%c144_101, %c0_102] : memref<400x512xbf16, #tpu.memory_space<vmem>>, vector<128x512xbf16>
    %cst_103 = arith.constant dense<0.000000e+00> : vector<8x512xf32>
    %308 = tpu.matmul %306, %307, %cst_103 {dimension_numbers = #tpu.dot_dimension_numbers<[1], [0], [0], [1], [0, 0, 1, 1], [], []>} : vector<8x128xbf16>, vector<128x512xbf16>, vector<8x512xf32> -> vector<8x512xf32>
    %309 = arith.addf %308, %13 : vector<8x512xf32>
    %310 = vector.extract_strided_slice %309 {offsets = [0, 0], sizes = [8, 256], strides = [1, 1]} : vector<8x512xf32> to vector<8x256xf32>
    %cst_104 = arith.constant 5.000000e-01 : f32
    %311 = vector.broadcast %cst_104 : f32 to vector<8x256xf32>
    %312 = arith.mulf %311, %310 : vector<8x256xf32>
    %313 = math.tanh %312 : vector<8x256xf32>
    %cst_105 = arith.constant 5.000000e-01 : f32
    %314 = vector.broadcast %cst_105 : f32 to vector<8x256xf32>
    %315 = arith.mulf %314, %313 : vector<8x256xf32>
    %cst_106 = arith.constant 5.000000e-01 : f32
    %316 = vector.broadcast %cst_106 : f32 to vector<8x256xf32>
    %317 = arith.addf %315, %316 : vector<8x256xf32>
    %318 = vector.extract_strided_slice %317 {offsets = [0, 0], sizes = [8, 128], strides = [1, 1]} : vector<8x256xf32> to vector<8x128xf32>
    %319 = vector.extract_strided_slice %317 {offsets = [0, 128], sizes = [8, 128], strides = [1, 1]} : vector<8x256xf32> to vector<8x128xf32>
    %320 = vector.extract_strided_slice %309 {offsets = [0, 256], sizes = [8, 128], strides = [1, 1]} : vector<8x512xf32> to vector<8x128xf32>
    %321 = math.tanh %320 : vector<8x128xf32>
    %322 = vector.extract_strided_slice %309 {offsets = [0, 384], sizes = [8, 128], strides = [1, 1]} : vector<8x512xf32> to vector<8x128xf32>
    %cst_107 = arith.constant 5.000000e-01 : f32
    %323 = vector.broadcast %cst_107 : f32 to vector<8x128xf32>
    %324 = arith.mulf %323, %322 : vector<8x128xf32>
    %325 = math.tanh %324 : vector<8x128xf32>
    %cst_108 = arith.constant 5.000000e-01 : f32
    %326 = vector.broadcast %cst_108 : f32 to vector<8x128xf32>
    %327 = arith.mulf %326, %325 : vector<8x128xf32>
    %cst_109 = arith.constant 5.000000e-01 : f32
    %328 = vector.broadcast %cst_109 : f32 to vector<8x128xf32>
    %329 = arith.addf %327, %328 : vector<8x128xf32>
    %330 = arith.mulf %319, %268 : vector<8x128xf32>
    %331 = arith.mulf %318, %321 : vector<8x128xf32>
    %332 = arith.addf %330, %331 : vector<8x128xf32>
    %333 = math.tanh %332 : vector<8x128xf32>
    %334 = arith.mulf %329, %333 : vector<8x128xf32>
    %c5_i32 = arith.constant 5 : i32
    %c8_i32_110 = arith.constant 8 : i32
    %335 = arith.muli %c5_i32, %c8_i32_110 : i32
    %336 = tpu.assume_multiple %335, 8 : i32
    %337 = arith.index_cast %336 : i32 to index
    %c0_111 = arith.constant 0 : index
    %338 = vector.load %arg4[%337, %c0_111] : memref<64x512xf32, #tpu.memory_space<vmem>>, vector<8x512xf32>
    %339 = arith.truncf %303 : vector<8x128xf32> to vector<8x128xbf16>
    %c16_112 = arith.constant 16 : index
    %c0_113 = arith.constant 0 : index
    %340 = vector.load %arg1[%c16_112, %c0_113] : memref<400x512xbf16, #tpu.memory_space<vmem>>, vector<128x512xbf16>
    %cst_114 = arith.constant dense<0.000000e+00> : vector<8x512xf32>
    %341 = tpu.matmul %339, %340, %cst_114 {dimension_numbers = #tpu.dot_dimension_numbers<[1], [0], [0], [1], [0, 0, 1, 1], [], []>} : vector<8x128xbf16>, vector<128x512xbf16>, vector<8x512xf32> -> vector<8x512xf32>
    %342 = arith.addf %338, %341 : vector<8x512xf32>
    %343 = vector.extract_strided_slice %342 {offsets = [0, 0], sizes = [8, 256], strides = [1, 1]} : vector<8x512xf32> to vector<8x256xf32>
    %cst_115 = arith.constant 5.000000e-01 : f32
    %344 = vector.broadcast %cst_115 : f32 to vector<8x256xf32>
    %345 = arith.mulf %344, %343 : vector<8x256xf32>
    %346 = math.tanh %345 : vector<8x256xf32>
    %cst_116 = arith.constant 5.000000e-01 : f32
    %347 = vector.broadcast %cst_116 : f32 to vector<8x256xf32>
    %348 = arith.mulf %347, %346 : vector<8x256xf32>
    %cst_117 = arith.constant 5.000000e-01 : f32
    %349 = vector.broadcast %cst_117 : f32 to vector<8x256xf32>
    %350 = arith.addf %348, %349 : vector<8x256xf32>
    %351 = vector.extract_strided_slice %350 {offsets = [0, 0], sizes = [8, 128], strides = [1, 1]} : vector<8x256xf32> to vector<8x128xf32>
    %352 = vector.extract_strided_slice %350 {offsets = [0, 128], sizes = [8, 128], strides = [1, 1]} : vector<8x256xf32> to vector<8x128xf32>
    %353 = vector.extract_strided_slice %342 {offsets = [0, 256], sizes = [8, 128], strides = [1, 1]} : vector<8x512xf32> to vector<8x128xf32>
    %354 = math.tanh %353 : vector<8x128xf32>
    %355 = vector.extract_strided_slice %342 {offsets = [0, 384], sizes = [8, 128], strides = [1, 1]} : vector<8x512xf32> to vector<8x128xf32>
    %cst_118 = arith.constant 5.000000e-01 : f32
    %356 = vector.broadcast %cst_118 : f32 to vector<8x128xf32>
    %357 = arith.mulf %356, %355 : vector<8x128xf32>
    %358 = math.tanh %357 : vector<8x128xf32>
    %cst_119 = arith.constant 5.000000e-01 : f32
    %359 = vector.broadcast %cst_119 : f32 to vector<8x128xf32>
    %360 = arith.mulf %359, %358 : vector<8x128xf32>
    %cst_120 = arith.constant 5.000000e-01 : f32
    %361 = vector.broadcast %cst_120 : f32 to vector<8x128xf32>
    %362 = arith.addf %360, %361 : vector<8x128xf32>
    %363 = arith.mulf %352, %301 : vector<8x128xf32>
    %364 = arith.mulf %351, %354 : vector<8x128xf32>
    %365 = arith.addf %363, %364 : vector<8x128xf32>
    %366 = math.tanh %365 : vector<8x128xf32>
    %367 = arith.mulf %362, %366 : vector<8x128xf32>
    %c64_i32_121 = arith.constant 64 : i32
    %368 = tpu.dynamic_rotate %334 by %c64_i32_121 dim 1 : vector<8x128xf32>, i32 -> vector<8x128xf32>
    %369 = arith.addf %367, %368 : vector<8x128xf32>
    %370 = arith.truncf %369 : vector<8x128xf32> to vector<8x128xbf16>
    %c144_122 = arith.constant 144 : index
    %c0_123 = arith.constant 0 : index
    %371 = vector.load %arg1[%c144_122, %c0_123] : memref<400x512xbf16, #tpu.memory_space<vmem>>, vector<128x512xbf16>
    %cst_124 = arith.constant dense<0.000000e+00> : vector<8x512xf32>
    %372 = tpu.matmul %370, %371, %cst_124 {dimension_numbers = #tpu.dot_dimension_numbers<[1], [0], [0], [1], [0, 0, 1, 1], [], []>} : vector<8x128xbf16>, vector<128x512xbf16>, vector<8x512xf32> -> vector<8x512xf32>
    %373 = arith.addf %372, %13 : vector<8x512xf32>
    %374 = vector.extract_strided_slice %373 {offsets = [0, 0], sizes = [8, 256], strides = [1, 1]} : vector<8x512xf32> to vector<8x256xf32>
    %cst_125 = arith.constant 5.000000e-01 : f32
    %375 = vector.broadcast %cst_125 : f32 to vector<8x256xf32>
    %376 = arith.mulf %375, %374 : vector<8x256xf32>
    %377 = math.tanh %376 : vector<8x256xf32>
    %cst_126 = arith.constant 5.000000e-01 : f32
    %378 = vector.broadcast %cst_126 : f32 to vector<8x256xf32>
    %379 = arith.mulf %378, %377 : vector<8x256xf32>
    %cst_127 = arith.constant 5.000000e-01 : f32
    %380 = vector.broadcast %cst_127 : f32 to vector<8x256xf32>
    %381 = arith.addf %379, %380 : vector<8x256xf32>
    %382 = vector.extract_strided_slice %381 {offsets = [0, 0], sizes = [8, 128], strides = [1, 1]} : vector<8x256xf32> to vector<8x128xf32>
    %383 = vector.extract_strided_slice %381 {offsets = [0, 128], sizes = [8, 128], strides = [1, 1]} : vector<8x256xf32> to vector<8x128xf32>
    %384 = vector.extract_strided_slice %373 {offsets = [0, 256], sizes = [8, 128], strides = [1, 1]} : vector<8x512xf32> to vector<8x128xf32>
    %385 = math.tanh %384 : vector<8x128xf32>
    %386 = vector.extract_strided_slice %373 {offsets = [0, 384], sizes = [8, 128], strides = [1, 1]} : vector<8x512xf32> to vector<8x128xf32>
    %cst_128 = arith.constant 5.000000e-01 : f32
    %387 = vector.broadcast %cst_128 : f32 to vector<8x128xf32>
    %388 = arith.mulf %387, %386 : vector<8x128xf32>
    %389 = math.tanh %388 : vector<8x128xf32>
    %cst_129 = arith.constant 5.000000e-01 : f32
    %390 = vector.broadcast %cst_129 : f32 to vector<8x128xf32>
    %391 = arith.mulf %390, %389 : vector<8x128xf32>
    %cst_130 = arith.constant 5.000000e-01 : f32
    %392 = vector.broadcast %cst_130 : f32 to vector<8x128xf32>
    %393 = arith.addf %391, %392 : vector<8x128xf32>
    %394 = arith.mulf %383, %332 : vector<8x128xf32>
    %395 = arith.mulf %382, %385 : vector<8x128xf32>
    %396 = arith.addf %394, %395 : vector<8x128xf32>
    %397 = math.tanh %396 : vector<8x128xf32>
    %398 = arith.mulf %393, %397 : vector<8x128xf32>
    %c6_i32 = arith.constant 6 : i32
    %c8_i32_131 = arith.constant 8 : i32
    %399 = arith.muli %c6_i32, %c8_i32_131 : i32
    %400 = tpu.assume_multiple %399, 8 : i32
    %401 = arith.index_cast %400 : i32 to index
    %c0_132 = arith.constant 0 : index
    %402 = vector.load %arg4[%401, %c0_132] : memref<64x512xf32, #tpu.memory_space<vmem>>, vector<8x512xf32>
    %403 = arith.truncf %367 : vector<8x128xf32> to vector<8x128xbf16>
    %c16_133 = arith.constant 16 : index
    %c0_134 = arith.constant 0 : index
    %404 = vector.load %arg1[%c16_133, %c0_134] : memref<400x512xbf16, #tpu.memory_space<vmem>>, vector<128x512xbf16>
    %cst_135 = arith.constant dense<0.000000e+00> : vector<8x512xf32>
    %405 = tpu.matmul %403, %404, %cst_135 {dimension_numbers = #tpu.dot_dimension_numbers<[1], [0], [0], [1], [0, 0, 1, 1], [], []>} : vector<8x128xbf16>, vector<128x512xbf16>, vector<8x512xf32> -> vector<8x512xf32>
    %406 = arith.addf %402, %405 : vector<8x512xf32>
    %407 = vector.extract_strided_slice %406 {offsets = [0, 0], sizes = [8, 256], strides = [1, 1]} : vector<8x512xf32> to vector<8x256xf32>
    %cst_136 = arith.constant 5.000000e-01 : f32
    %408 = vector.broadcast %cst_136 : f32 to vector<8x256xf32>
    %409 = arith.mulf %408, %407 : vector<8x256xf32>
    %410 = math.tanh %409 : vector<8x256xf32>
    %cst_137 = arith.constant 5.000000e-01 : f32
    %411 = vector.broadcast %cst_137 : f32 to vector<8x256xf32>
    %412 = arith.mulf %411, %410 : vector<8x256xf32>
    %cst_138 = arith.constant 5.000000e-01 : f32
    %413 = vector.broadcast %cst_138 : f32 to vector<8x256xf32>
    %414 = arith.addf %412, %413 : vector<8x256xf32>
    %415 = vector.extract_strided_slice %414 {offsets = [0, 0], sizes = [8, 128], strides = [1, 1]} : vector<8x256xf32> to vector<8x128xf32>
    %416 = vector.extract_strided_slice %414 {offsets = [0, 128], sizes = [8, 128], strides = [1, 1]} : vector<8x256xf32> to vector<8x128xf32>
    %417 = vector.extract_strided_slice %406 {offsets = [0, 256], sizes = [8, 128], strides = [1, 1]} : vector<8x512xf32> to vector<8x128xf32>
    %418 = math.tanh %417 : vector<8x128xf32>
    %419 = vector.extract_strided_slice %406 {offsets = [0, 384], sizes = [8, 128], strides = [1, 1]} : vector<8x512xf32> to vector<8x128xf32>
    %cst_139 = arith.constant 5.000000e-01 : f32
    %420 = vector.broadcast %cst_139 : f32 to vector<8x128xf32>
    %421 = arith.mulf %420, %419 : vector<8x128xf32>
    %422 = math.tanh %421 : vector<8x128xf32>
    %cst_140 = arith.constant 5.000000e-01 : f32
    %423 = vector.broadcast %cst_140 : f32 to vector<8x128xf32>
    %424 = arith.mulf %423, %422 : vector<8x128xf32>
    %cst_141 = arith.constant 5.000000e-01 : f32
    %425 = vector.broadcast %cst_141 : f32 to vector<8x128xf32>
    %426 = arith.addf %424, %425 : vector<8x128xf32>
    %427 = arith.mulf %416, %365 : vector<8x128xf32>
    %428 = arith.mulf %415, %418 : vector<8x128xf32>
    %429 = arith.addf %427, %428 : vector<8x128xf32>
    %430 = math.tanh %429 : vector<8x128xf32>
    %431 = arith.mulf %426, %430 : vector<8x128xf32>
    %c64_i32_142 = arith.constant 64 : i32
    %432 = tpu.dynamic_rotate %398 by %c64_i32_142 dim 1 : vector<8x128xf32>, i32 -> vector<8x128xf32>
    %433 = arith.addf %431, %432 : vector<8x128xf32>
    %434 = arith.truncf %433 : vector<8x128xf32> to vector<8x128xbf16>
    %c144_143 = arith.constant 144 : index
    %c0_144 = arith.constant 0 : index
    %435 = vector.load %arg1[%c144_143, %c0_144] : memref<400x512xbf16, #tpu.memory_space<vmem>>, vector<128x512xbf16>
    %cst_145 = arith.constant dense<0.000000e+00> : vector<8x512xf32>
    %436 = tpu.matmul %434, %435, %cst_145 {dimension_numbers = #tpu.dot_dimension_numbers<[1], [0], [0], [1], [0, 0, 1, 1], [], []>} : vector<8x128xbf16>, vector<128x512xbf16>, vector<8x512xf32> -> vector<8x512xf32>
    %437 = arith.addf %436, %13 : vector<8x512xf32>
    %438 = vector.extract_strided_slice %437 {offsets = [0, 0], sizes = [8, 256], strides = [1, 1]} : vector<8x512xf32> to vector<8x256xf32>
    %cst_146 = arith.constant 5.000000e-01 : f32
    %439 = vector.broadcast %cst_146 : f32 to vector<8x256xf32>
    %440 = arith.mulf %439, %438 : vector<8x256xf32>
    %441 = math.tanh %440 : vector<8x256xf32>
    %cst_147 = arith.constant 5.000000e-01 : f32
    %442 = vector.broadcast %cst_147 : f32 to vector<8x256xf32>
    %443 = arith.mulf %442, %441 : vector<8x256xf32>
    %cst_148 = arith.constant 5.000000e-01 : f32
    %444 = vector.broadcast %cst_148 : f32 to vector<8x256xf32>
    %445 = arith.addf %443, %444 : vector<8x256xf32>
    %446 = vector.extract_strided_slice %445 {offsets = [0, 0], sizes = [8, 128], strides = [1, 1]} : vector<8x256xf32> to vector<8x128xf32>
    %447 = vector.extract_strided_slice %445 {offsets = [0, 128], sizes = [8, 128], strides = [1, 1]} : vector<8x256xf32> to vector<8x128xf32>
    %448 = vector.extract_strided_slice %437 {offsets = [0, 256], sizes = [8, 128], strides = [1, 1]} : vector<8x512xf32> to vector<8x128xf32>
    %449 = math.tanh %448 : vector<8x128xf32>
    %450 = vector.extract_strided_slice %437 {offsets = [0, 384], sizes = [8, 128], strides = [1, 1]} : vector<8x512xf32> to vector<8x128xf32>
    %cst_149 = arith.constant 5.000000e-01 : f32
    %451 = vector.broadcast %cst_149 : f32 to vector<8x128xf32>
    %452 = arith.mulf %451, %450 : vector<8x128xf32>
    %453 = math.tanh %452 : vector<8x128xf32>
    %cst_150 = arith.constant 5.000000e-01 : f32
    %454 = vector.broadcast %cst_150 : f32 to vector<8x128xf32>
    %455 = arith.mulf %454, %453 : vector<8x128xf32>
    %cst_151 = arith.constant 5.000000e-01 : f32
    %456 = vector.broadcast %cst_151 : f32 to vector<8x128xf32>
    %457 = arith.addf %455, %456 : vector<8x128xf32>
    %458 = arith.mulf %447, %396 : vector<8x128xf32>
    %459 = arith.mulf %446, %449 : vector<8x128xf32>
    %460 = arith.addf %458, %459 : vector<8x128xf32>
    %461 = math.tanh %460 : vector<8x128xf32>
    %462 = arith.mulf %457, %461 : vector<8x128xf32>
    %c7_i32 = arith.constant 7 : i32
    %c8_i32_152 = arith.constant 8 : i32
    %463 = arith.muli %c7_i32, %c8_i32_152 : i32
    %464 = tpu.assume_multiple %463, 8 : i32
    %465 = arith.index_cast %464 : i32 to index
    %c0_153 = arith.constant 0 : index
    %466 = vector.load %arg4[%465, %c0_153] : memref<64x512xf32, #tpu.memory_space<vmem>>, vector<8x512xf32>
    %467 = arith.truncf %431 : vector<8x128xf32> to vector<8x128xbf16>
    %c16_154 = arith.constant 16 : index
    %c0_155 = arith.constant 0 : index
    %468 = vector.load %arg1[%c16_154, %c0_155] : memref<400x512xbf16, #tpu.memory_space<vmem>>, vector<128x512xbf16>
    %cst_156 = arith.constant dense<0.000000e+00> : vector<8x512xf32>
    %469 = tpu.matmul %467, %468, %cst_156 {dimension_numbers = #tpu.dot_dimension_numbers<[1], [0], [0], [1], [0, 0, 1, 1], [], []>} : vector<8x128xbf16>, vector<128x512xbf16>, vector<8x512xf32> -> vector<8x512xf32>
    %470 = arith.addf %466, %469 : vector<8x512xf32>
    %471 = vector.extract_strided_slice %470 {offsets = [0, 0], sizes = [8, 256], strides = [1, 1]} : vector<8x512xf32> to vector<8x256xf32>
    %cst_157 = arith.constant 5.000000e-01 : f32
    %472 = vector.broadcast %cst_157 : f32 to vector<8x256xf32>
    %473 = arith.mulf %472, %471 : vector<8x256xf32>
    %474 = math.tanh %473 : vector<8x256xf32>
    %cst_158 = arith.constant 5.000000e-01 : f32
    %475 = vector.broadcast %cst_158 : f32 to vector<8x256xf32>
    %476 = arith.mulf %475, %474 : vector<8x256xf32>
    %cst_159 = arith.constant 5.000000e-01 : f32
    %477 = vector.broadcast %cst_159 : f32 to vector<8x256xf32>
    %478 = arith.addf %476, %477 : vector<8x256xf32>
    %479 = vector.extract_strided_slice %478 {offsets = [0, 0], sizes = [8, 128], strides = [1, 1]} : vector<8x256xf32> to vector<8x128xf32>
    %480 = vector.extract_strided_slice %478 {offsets = [0, 128], sizes = [8, 128], strides = [1, 1]} : vector<8x256xf32> to vector<8x128xf32>
    %481 = vector.extract_strided_slice %470 {offsets = [0, 256], sizes = [8, 128], strides = [1, 1]} : vector<8x512xf32> to vector<8x128xf32>
    %482 = math.tanh %481 : vector<8x128xf32>
    %483 = vector.extract_strided_slice %470 {offsets = [0, 384], sizes = [8, 128], strides = [1, 1]} : vector<8x512xf32> to vector<8x128xf32>
    %cst_160 = arith.constant 5.000000e-01 : f32
    %484 = vector.broadcast %cst_160 : f32 to vector<8x128xf32>
    %485 = arith.mulf %484, %483 : vector<8x128xf32>
    %486 = math.tanh %485 : vector<8x128xf32>
    %cst_161 = arith.constant 5.000000e-01 : f32
    %487 = vector.broadcast %cst_161 : f32 to vector<8x128xf32>
    %488 = arith.mulf %487, %486 : vector<8x128xf32>
    %cst_162 = arith.constant 5.000000e-01 : f32
    %489 = vector.broadcast %cst_162 : f32 to vector<8x128xf32>
    %490 = arith.addf %488, %489 : vector<8x128xf32>
    %491 = arith.mulf %480, %429 : vector<8x128xf32>
    %492 = arith.mulf %479, %482 : vector<8x128xf32>
    %493 = arith.addf %491, %492 : vector<8x128xf32>
    %494 = math.tanh %493 : vector<8x128xf32>
    %495 = arith.mulf %490, %494 : vector<8x128xf32>
    %c64_i32_163 = arith.constant 64 : i32
    %496 = tpu.dynamic_rotate %462 by %c64_i32_163 dim 1 : vector<8x128xf32>, i32 -> vector<8x128xf32>
    %497 = arith.addf %495, %496 : vector<8x128xf32>
    %498 = arith.truncf %497 : vector<8x128xf32> to vector<8x128xbf16>
    %c144_164 = arith.constant 144 : index
    %c0_165 = arith.constant 0 : index
    %499 = vector.load %arg1[%c144_164, %c0_165] : memref<400x512xbf16, #tpu.memory_space<vmem>>, vector<128x512xbf16>
    %cst_166 = arith.constant dense<0.000000e+00> : vector<8x512xf32>
    %500 = tpu.matmul %498, %499, %cst_166 {dimension_numbers = #tpu.dot_dimension_numbers<[1], [0], [0], [1], [0, 0, 1, 1], [], []>} : vector<8x128xbf16>, vector<128x512xbf16>, vector<8x512xf32> -> vector<8x512xf32>
    %501 = arith.addf %500, %13 : vector<8x512xf32>
    %502 = vector.extract_strided_slice %501 {offsets = [0, 0], sizes = [8, 256], strides = [1, 1]} : vector<8x512xf32> to vector<8x256xf32>
    %cst_167 = arith.constant 5.000000e-01 : f32
    %503 = vector.broadcast %cst_167 : f32 to vector<8x256xf32>
    %504 = arith.mulf %503, %502 : vector<8x256xf32>
    %505 = math.tanh %504 : vector<8x256xf32>
    %cst_168 = arith.constant 5.000000e-01 : f32
    %506 = vector.broadcast %cst_168 : f32 to vector<8x256xf32>
    %507 = arith.mulf %506, %505 : vector<8x256xf32>
    %cst_169 = arith.constant 5.000000e-01 : f32
    %508 = vector.broadcast %cst_169 : f32 to vector<8x256xf32>
    %509 = arith.addf %507, %508 : vector<8x256xf32>
    %510 = vector.extract_strided_slice %509 {offsets = [0, 0], sizes = [8, 128], strides = [1, 1]} : vector<8x256xf32> to vector<8x128xf32>
    %511 = vector.extract_strided_slice %509 {offsets = [0, 128], sizes = [8, 128], strides = [1, 1]} : vector<8x256xf32> to vector<8x128xf32>
    %512 = vector.extract_strided_slice %501 {offsets = [0, 256], sizes = [8, 128], strides = [1, 1]} : vector<8x512xf32> to vector<8x128xf32>
    %513 = math.tanh %512 : vector<8x128xf32>
    %514 = vector.extract_strided_slice %501 {offsets = [0, 384], sizes = [8, 128], strides = [1, 1]} : vector<8x512xf32> to vector<8x128xf32>
    %cst_170 = arith.constant 5.000000e-01 : f32
    %515 = vector.broadcast %cst_170 : f32 to vector<8x128xf32>
    %516 = arith.mulf %515, %514 : vector<8x128xf32>
    %517 = math.tanh %516 : vector<8x128xf32>
    %cst_171 = arith.constant 5.000000e-01 : f32
    %518 = vector.broadcast %cst_171 : f32 to vector<8x128xf32>
    %519 = arith.mulf %518, %517 : vector<8x128xf32>
    %cst_172 = arith.constant 5.000000e-01 : f32
    %520 = vector.broadcast %cst_172 : f32 to vector<8x128xf32>
    %521 = arith.addf %519, %520 : vector<8x128xf32>
    %522 = arith.mulf %511, %460 : vector<8x128xf32>
    %523 = arith.mulf %510, %513 : vector<8x128xf32>
    %524 = arith.addf %522, %523 : vector<8x128xf32>
    %525 = math.tanh %524 : vector<8x128xf32>
    %526 = arith.mulf %521, %525 : vector<8x128xf32>
    %c8_i32_173 = arith.constant 8 : i32
    %527 = arith.truncf %526 : vector<8x128xf32> to vector<8x128xbf16>
    %c272 = arith.constant 272 : index
    %c0_174 = arith.constant 0 : index
    %528 = vector.load %arg1[%c272, %c0_174] : memref<400x512xbf16, #tpu.memory_space<vmem>>, vector<128x128xbf16>
    %cst_175 = arith.constant dense<0.000000e+00> : vector<8x128xf32>
    %529 = tpu.matmul %527, %528, %cst_175 {dimension_numbers = #tpu.dot_dimension_numbers<[1], [0], [0], [1], [0, 0, 1, 1], [], []>} : vector<8x128xbf16>, vector<128x128xbf16>, vector<8x128xf32> -> vector<8x128xf32>
    %530 = vector.broadcast %2 : vector<1x128xf32> to vector<8x128xf32>
    %531 = arith.addf %529, %530 : vector<8x128xf32>
    %c0_176 = arith.constant 0 : index
    %c0_177 = arith.constant 0 : index
    %532 = vector.load %arg3[%c0_176, %c0_177] : memref<8x128xf32, #tpu.memory_space<vmem>>, vector<8x128xf32>
    tpu.vector_store %arg3[%c0_176, %c0_177], %531 {strides = array<i32>} : memref<8x128xf32, #tpu.memory_space<vmem>>, vector<8x128xf32>,
    return
  }
}

</mosaic_0001>

<bundles_post_ra>
// kernel: tpu_custom_call.1
= control target key start
LH: loop header
LB: loop body
LE: loop exit
PB: predicated region body
PF: predicated region fallthrough
CT: control target
= control target key end

     0   :  { %8 = vsyncpa [#allocation4], 0  ;;  %s3446_s0 = inlined_call_operand.vmem [shape: f32[64,1], index: 0, kind: input, shape index: {}]   ;;  %s3447_s1 = inlined_call_operand.hbm [shape: bf16[400,512], index: 1, kind: input, shape index: {}]   ;;  %s3448_s2 = inlined_call_operand.vmem [shape: f32[8,512], index: 2, kind: input, shape index: {}]   ;;  %s3449_s3 = inlined_call_operand.hbm [shape: f32[8,128], index: 3, kind: output, shape index: {}]  }
   0x1   :  { %9 = vsyncpa [#allocation5], 0  ;;  %s16_s14 = sshll.u32 %s3447_s1, 4  ;;  %s2525_s15 = smov [#allocation3]   ;;  %s17_s14 = int_to_ptr.hbm [resolvable:$true] %s16_s14 }
   0x2   :  { %s18_s16 = sshll.u32 %s2525_s15, 4  ;;  %s2526_s17 = smov 256   ;;  %s19_s16 = int_to_ptr.vmem [resolvable:$true] %s18_s16 }
   0x3   :  { %s2527_s18 = smov 16  }
   0x4   :  { %24 = dma.hbm_to_vmem [thread:$0]  %s17_s14, 12800, %s19_s16, [#allocation4], %s2526_s17, %s2526_s17, %s2527_s18  }
   0x5   :  { %2521 = dma.done.wait [#allocation4], 12800  }
   0x6   :  { %2522 = vsyncadd [#allocation4], 4294954496  ;;  %v2528_v0 = vmov 0   ;;  %v2057_v1 = vld [vmem:[#allocation3 + $0x100] sm:$0xf]  ;;  %s2530_s20 = smov 64  }
   0x7   :  { %2310 = vset.pattern.permute.xlu0 %v2528_v0  ;;  %2311 = vset.pattern.permute.xlu1 %v2528_v0  ;;  %v2261_v2 = vld [vmem:[#allocation3 + $0x10c] sm:$0xf0]  ;;  %v2259_v3 = vld [vmem:[#allocation3 + $0x104] sm:$0xf]  ;;  %v2059_v5 = vld [vmem:[#allocation3 + $0x110] sm:$0xf0] }
   0x8   :  { %2312 = vset.pattern.permute.xlu2 %v2528_v0  ;;  %v2558_v4 = vor.u32 %v2261_v2, %v2057_v1  ;;  %v2065_v6 = vld [vmem:[#allocation3 + $0x108] sm:$0xf]  ;;  %v2262_v7 = vld [vmem:[#allocation3 + $0x114] sm:$0xf0]  ;;  %v2560_v8 = vor.u32 %v2259_v3, %v2059_v5  ;;  %v2260_v10 = vld [vmem:[#allocation3 + $0x10c] sm:$0xf] }
   0x9   :  { %v2562_v9 = vor.u32 %v2262_v7, %v2065_v6  ;;  %v2067_v11 = vld [vmem:[#allocation3 + $0x118] sm:$0xf0]  ;;  %v2041_v12 = vld [vmem:[#allocation3 + $0xe0] sm:$0xf]  ;;  %v2257_v14 = vld [vmem:[#allocation3 + $0xec] sm:$0xf0] }
   0xa   :  { %407 = vmatpush.bf16.msra.mxu0 %v2558_v4  ;;  %v2565_v13 = vor.u32 %v2260_v10, %v2067_v11  ;;  %v2255_v15 = vld [vmem:[#allocation3 + $0xe4] sm:$0xf]  ;;  %v2043_v16 = vld [vmem:[#allocation3 + $0xf0] sm:$0xf0]  ;;  %420 = vmatpush.bf16.msra.mxu1 %v2560_v8  ;;  %v2569_v17 = vor.u32 %v2257_v14, %v2041_v12  ;;  %v2049_v19 = vld [vmem:[#allocation3 + $0xe8] sm:$0xf] }
   0xb   :  { %3567 = vst [vmem:[#allocation9_spill] sm:$0xff] %v2562_v9  ;;  %433 = vmatpush.bf16.msra.mxu2 %v2562_v9  ;;  %v2571_v18 = vor.u32 %v2255_v15, %v2043_v16  ;;  %v2258_v20 = vld [vmem:[#allocation3 + $0xf4] sm:$0xf0]  ;;  %v2256_v21 = vld [vmem:[#allocation3 + $0xec] sm:$0xf]  ;;  %v36_v63 = vld [vmem:[%s3446_s0] sm:$0xff] }
   0xc   :  { %3568 = vst [vmem:[#allocation10_spill] sm:$0xff] %v2565_v13  ;;  %446 = vmatpush.bf16.msra.mxu3 %v2565_v13  ;;  %v2574_v22 = vor.u32 %v2258_v20, %v2049_v19  ;;  %v2051_v23 = vld [vmem:[#allocation3 + $0xf8] sm:$0xf0]  ;;  %v2025_v24 = vld [vmem:[#allocation3 + $0xc0] sm:$0xf]  ;;  %52 = vperm.xlu0 %2310, %v36_v63   ;;  %s2531_s13 = smov [#allocation6]  }
   0xd   :  { %3569 = vst [vmem:[#allocation11_spill] sm:$0xff] %v2569_v17  ;;  %v2253_v25 = vld [vmem:[#allocation3 + $0xcc] sm:$0xf0]  ;;  %v2576_v26 = vor.u32 %v2256_v21, %v2051_v23  ;;  %v2251_v27 = vld [vmem:[#allocation3 + $0xc4] sm:$0xf]  ;;  %s1923_s14 = sshll.u32 %s2531_s13, 4  ;;  %s1924_s14 = int_to_ptr.vmem [resolvable:$true] %s1923_s14 }
   0xe   :  { %3570 = vst [vmem:[#allocation12_spill] sm:$0xff] %v2571_v18  ;;  %v2027_v28 = vld [vmem:[#allocation3 + $0xd0] sm:$0xf0]  ;;  %v2033_v29 = vld [vmem:[#allocation3 + $0xc8] sm:$0xf]  ;;  %408 = vmatpush.bf16.msra.mxu0 %v2569_v17  ;;  %v2579_v30 = vor.u32 %v2253_v25, %v2025_v24  ;;  %421 = vmatpush.bf16.msra.mxu1 %v2571_v18  ;;  %s1925_s17 = sshll.u32 %s3449_s3, 4  ;;  %s1926_s17 = int_to_ptr.hbm [resolvable:$true] %s1925_s17 }
   0xf   :  { %3571 = vst [vmem:[#allocation13_spill] sm:$0xff] %v2574_v22  ;;  %v2254_v31 = vld [vmem:[#allocation3 + $0xd4] sm:$0xf0]  ;;  %v2252_v32 = vld [vmem:[#allocation3 + $0xcc] sm:$0xf]  ;;  %434 = vmatpush.bf16.msra.mxu2 %v2574_v22  ;;  %v2583_v34 = vor.u32 %v2251_v27, %v2027_v28 }
  0x10   :  { %3572 = vst [vmem:[#allocation14_spill] sm:$0xff] %v2576_v26  ;;  %v2035_v33 = vld [vmem:[#allocation3 + $0xd8] sm:$0xf0]  ;;  %v2585_v35 = vor.u32 %v2254_v31, %v2033_v29  ;;  %v2009_v36 = vld [vmem:[#allocation3 + $0xa0] sm:$0xf]  ;;  %447 = vmatpush.bf16.msra.mxu3 %v2576_v26 }
  0x11   :  { %3573 = vst [vmem:[#allocation15_spill] sm:$0xff] %v2579_v30  ;;  %v2249_v37 = vld [vmem:[#allocation3 + $0xac] sm:$0xf0]  ;;  %v2247_v38 = vld [vmem:[#allocation3 + $0xa4] sm:$0xf]  ;;  %v2588_v39 = vor.u32 %v2252_v32, %v2035_v33 }
  0x12   :  { %3574 = vst [vmem:[#allocation16_spill] sm:$0xff] %v2583_v34  ;;  %v2011_v40 = vld [vmem:[#allocation3 + $0xb0] sm:$0xf0]  ;;  %v2017_v41 = vld [vmem:[#allocation3 + $0xa8] sm:$0xf]  ;;  %409 = vmatpush.bf16.msra.mxu0 %v2579_v30  ;;  %v2591_v45 = vor.u32 %v2249_v37, %v2009_v36  ;;  %422 = vmatpush.bf16.msra.mxu1 %v2583_v34 }
  0x13   :  { %3575 = vst [vmem:[#allocation17_spill] sm:$0xff] %v2585_v35  ;;  %v2250_v42 = vld [vmem:[#allocation3 + $0xb4] sm:$0xf0]  ;;  %v2248_v43 = vld [vmem:[#allocation3 + $0xac] sm:$0xf]  ;;  %435 = vmatpush.bf16.msra.mxu2 %v2585_v35  ;;  %v2595_v46 = vor.u32 %v2247_v38, %v2011_v40 }
  0x14   :  { %3576 = vst [vmem:[#allocation18_spill] sm:$0xff] %v2588_v39  ;;  %v2019_v44 = vld [vmem:[#allocation3 + $0xb8] sm:$0xf0]  ;;  %v2597_v47 = vor.u32 %v2250_v42, %v2017_v41  ;;  %v1993_v48 = vld [vmem:[#allocation3 + $0x80] sm:$0xf]  ;;  %448 = vmatpush.bf16.msra.mxu3 %v2588_v39  ;;  %v2529_v41 = vmov 0.0  }
  0x15   :  { %3577 = vst [vmem:[#allocation19_spill] sm:$0xff] %v2591_v45  ;;  %v2245_v49 = vld [vmem:[#allocation3 + $0x8c] sm:$0xf0]  ;;  %v2243_v50 = vld [vmem:[#allocation3 + $0x84] sm:$0xf]  ;;  %v2600_v51 = vor.u32 %v2248_v43, %v2019_v44  ;;  %481 = vrot.lane.b32.xlu0 %v2529_v41, %s2530_s20 }
  0x16   :  { %3578 = vst [vmem:[#allocation20_spill] sm:$0xff] %v2595_v46  ;;  %v1995_v52 = vld [vmem:[#allocation3 + $0x90] sm:$0xf0]  ;;  %v2001_v53 = vld [vmem:[#allocation3 + $0x88] sm:$0xf]  ;;  %410 = vmatpush.bf16.msra.mxu0 %v2591_v45  ;;  %v2603_v57 = vor.u32 %v2245_v49, %v1993_v48  ;;  %423 = vmatpush.bf16.msra.mxu1 %v2595_v46 }
  0x17   :  { %3579 = vst [vmem:[#allocation21_spill] sm:$0xff] %v2597_v47  ;;  %v2246_v54 = vld [vmem:[#allocation3 + $0x94] sm:$0xf0]  ;;  %v2244_v55 = vld [vmem:[#allocation3 + $0x8c] sm:$0xf]  ;;  %436 = vmatpush.bf16.msra.mxu2 %v2597_v47  ;;  %v2607_v59 = vor.u32 %v2243_v50, %v1995_v52 }
  0x18   :  { %3580 = vst [vmem:[#allocation22_spill] sm:$0xff] %v2600_v51  ;;  %v2003_v56 = vld [vmem:[#allocation3 + $0x98] sm:$0xf0]  ;;  %v1977_v58 = vld [vmem:[#allocation3 + $0x60] sm:$0xf]  ;;  %v2609_v60 = vor.u32 %v2246_v54, %v2001_v53  ;;  %449 = vmatpush.bf16.msra.mxu3 %v2600_v51 }
  0x19   :  { %3581 = vst [vmem:[#allocation23_spill] sm:$0xff] %v2603_v57  ;;  %v2241_v61 = vld [vmem:[#allocation3 + $0x6c] sm:$0xf0]  ;;  %v2239_v62 = vld [vmem:[#allocation3 + $0x64] sm:$0xf]  ;;  %v2615_v1 = vor.u32 %v2244_v55, %v2003_v56  ;;  %v39_v52 = vld [vmem:[%s3446_s0 + $0x18] sm:$0xff] }
  0x1a   :  { %3582 = vst [vmem:[#allocation24_spill] sm:$0xff] %v2607_v59  ;;  %v1979_v2 = vld [vmem:[#allocation3 + $0x70] sm:$0xf0]  ;;  %v1985_v3 = vld [vmem:[#allocation3 + $0x68] sm:$0xf]  ;;  %411 = vmatpush.bf16.msra.mxu0 %v2603_v57  ;;  %v2618_v10 = vor.u32 %v2241_v61, %v1977_v58  ;;  %424 = vmatpush.bf16.msra.mxu1 %v2607_v59 }
  0x1b   :  { %3583 = vst [vmem:[#allocation25_spill] sm:$0xff] %v2609_v60  ;;  %v2242_v5 = vld [vmem:[#allocation3 + $0x74] sm:$0xf0]  ;;  %v2240_v6 = vld [vmem:[#allocation3 + $0x6c] sm:$0xf]  ;;  %437 = vmatpush.bf16.msra.mxu2 %v2609_v60  ;;  %v2622_v11 = vor.u32 %v2239_v62, %v1979_v2 }
  0x1c   :  { %3584 = vst [vmem:[#allocation26_spill] sm:$0xff] %v2615_v1  ;;  %v1987_v7 = vld [vmem:[#allocation3 + $0x78] sm:$0xf0]  ;;  %v2624_v12 = vor.u32 %v2242_v5, %v1985_v3  ;;  %v1961_v14 = vld [vmem:[#allocation3 + $0x40] sm:$0xf]  ;;  %450 = vmatpush.bf16.msra.mxu3 %v2615_v1 }
  0x1d   :  { %3585 = vst [vmem:[#allocation27_spill] sm:$0xff] %v2618_v10  ;;  %v2237_v15 = vld [vmem:[#allocation3 + $0x4c] sm:$0xf0]  ;;  %v2235_v16 = vld [vmem:[#allocation3 + $0x44] sm:$0xf]  ;;  %v2627_v19 = vor.u32 %v2240_v6, %v1987_v7  ;;  %67 = vperm.xlu0 %2310, %v39_v52  }
  0x1e   :  { %3586 = vst [vmem:[#allocation28_spill] sm:$0xff] %v2622_v11  ;;  %v1963_v20 = vld [vmem:[#allocation3 + $0x50] sm:$0xf0]  ;;  %v1969_v21 = vld [vmem:[#allocation3 + $0x48] sm:$0xf]  ;;  %412 = vmatpush.bf16.msra.mxu0 %v2618_v10  ;;  %v2630_v27 = vor.u32 %v2237_v15, %v1961_v14  ;;  %425 = vmatpush.bf16.msra.mxu1 %v2622_v11 }
  0x1f   :  { %3587 = vst [vmem:[#allocation29_spill] sm:$0xff] %v2624_v12  ;;  %v2238_v23 = vld [vmem:[#allocation3 + $0x54] sm:$0xf0]  ;;  %v2236_v24 = vld [vmem:[#allocation3 + $0x4c] sm:$0xf]  ;;  %438 = vmatpush.bf16.msra.mxu2 %v2624_v12  ;;  %v2634_v28 = vor.u32 %v2235_v16, %v1963_v20 }
  0x20   :  { %3588 = vst [vmem:[#allocation30_spill] sm:$0xff] %v2627_v19  ;;  %v1971_v25 = vld [vmem:[#allocation3 + $0x58] sm:$0xf0]  ;;  %v2636_v29 = vor.u32 %v2238_v23, %v1969_v21  ;;  %v1945_v31 = vld [vmem:[#allocation3 + $0x20] sm:$0xf]  ;;  %451 = vmatpush.bf16.msra.mxu3 %v2627_v19 }
  0x21   :  { %3589 = vst [vmem:[#allocation31_spill] sm:$0xff] %v2630_v27  ;;  %v2233_v32 = vld [vmem:[#allocation3 + $0x2c] sm:$0xf0]  ;;  %v2231_v33 = vld [vmem:[#allocation3 + $0x24] sm:$0xf]  ;;  %v2639_v36 = vor.u32 %v2236_v24, %v1971_v25 }
  0x22   :  { %3590 = vst [vmem:[#allocation32_spill] sm:$0xff] %v2634_v28  ;;  %v1947_v37 = vld [vmem:[#allocation3 + $0x30] sm:$0xf0]  ;;  %v1953_v38 = vld [vmem:[#allocation3 + $0x28] sm:$0xf]  ;;  %413 = vmatpush.bf16.msra.mxu0 %v2630_v27  ;;  %v2643_v44 = vor.u32 %v2233_v32, %v1945_v31  ;;  %426 = vmatpush.bf16.msra.mxu1 %v2634_v28 }
  0x23   :  { %3591 = vst [vmem:[#allocation33_spill] sm:$0xff] %v2636_v29  ;;  %v2234_v40 = vld [vmem:[#allocation3 + $0x34] sm:$0xf0]  ;;  %v2232_v42 = vld [vmem:[#allocation3 + $0x2c] sm:$0xf]  ;;  %439 = vmatpush.bf16.msra.mxu2 %v2636_v29  ;;  %v2647_v48 = vor.u32 %v2231_v33, %v1947_v37 }
  0x24   :  { %3592 = vst [vmem:[#allocation34_spill] sm:$0xff] %v2639_v36  ;;  %v1955_v43 = vld [vmem:[#allocation3 + $0x38] sm:$0xf0]  ;;  %v2649_v49 = vor.u32 %v2234_v40, %v1953_v38  ;;  %452 = vmatpush.bf16.msra.mxu3 %v2639_v36  ;;  %v2185_v53 = vld [vmem:[#allocation3 + $0x200] sm:$0xf] }
  0x25   :  { %3593 = vst [vmem:[#allocation35_spill] sm:$0xff] %v2643_v44  ;;  %v2652_v50 = vor.u32 %v2232_v42, %v1955_v43  ;;  %v2293_v54 = vld [vmem:[#allocation3 + $0x20c] sm:$0xf0]  ;;  %v2291_v55 = vld [vmem:[#allocation3 + $0x204] sm:$0xf] }
  0x26   :  { %3594 = vst [vmem:[#allocation36_spill] sm:$0xff] %v2647_v48  ;;  %414 = vmatpush.bf16.msra.mxu0 %v2643_v44  ;;  %427 = vmatpush.bf16.msra.mxu1 %v2647_v48  ;;  %v2665_v56 = vor.u32 %v2293_v54, %v2185_v53  ;;  %v2187_v58 = vld [vmem:[#allocation3 + $0x210] sm:$0xf0]  ;;  %v2193_v61 = vld [vmem:[#allocation3 + $0x208] sm:$0xf] }
  0x27   :  { %3595 = vst [vmem:[#allocation37_spill] sm:$0xff] %v2649_v49  ;;  %440 = vmatpush.bf16.msra.mxu2 %v2649_v49  ;;  %v2294_v62 = vld [vmem:[#allocation3 + $0x214] sm:$0xf0]  ;;  %v2667_v63 = vor.u32 %v2291_v55, %v2187_v58  ;;  %v2292_v3 = vld [vmem:[#allocation3 + $0x20c] sm:$0xf] }
  0x28   :  { %3596 = vst [vmem:[#allocation38_spill] sm:$0xff] %v2652_v50  ;;  %453 = vmatpush.bf16.msra.mxu3 %v2652_v50  ;;  %v2669_v2 = vor.u32 %v2294_v62, %v2193_v61  ;;  %v2195_v5 = vld [vmem:[#allocation3 + $0x218] sm:$0xf0]  ;;  %v2169_v6 = vld [vmem:[#allocation3 + $0x1e0] sm:$0xf] }
  0x29   :  { %415 = vmatmul.bf16.vlgmr.msra.gmra.mxu0 %v2528_v0  ;;  %428 = vmatmul.bf16.vlgmr.msra.gmra.mxu1 %v2528_v0  ;;  %v2672_v7 = vor.u32 %v2292_v3, %v2195_v5  ;;  %v2287_v14 = vld [vmem:[#allocation3 + $0x1e4] sm:$0xf]  ;;  %v2171_v15 = vld [vmem:[#allocation3 + $0x1f0] sm:$0xf0]  ;;  %v2177_v21 = vld [vmem:[#allocation3 + $0x1e8] sm:$0xf] }
  0x2a   :  { %441 = vmatmul.bf16.vlgmr.msra.gmra.mxu2 %v2528_v0  ;;  %677 = vmatpush.bf16.msrb.mxu0 %v2665_v56  ;;  %v2678_v20 = vor.u32 %v2287_v14, %v2171_v15  ;;  %v2290_v23 = vld [vmem:[#allocation3 + $0x1f4] sm:$0xf0]  ;;  %v2288_v24 = vld [vmem:[#allocation3 + $0x1ec] sm:$0xf]  ;;  %v2179_v31 = vld [vmem:[#allocation3 + $0x1f8] sm:$0xf0] }
  0x2b   :  { %454 = vmatmul.bf16.vlgmr.msra.gmra.mxu3 %v2528_v0  ;;  %v2289_v0 = vld [vmem:[#allocation3 + $0x1ec] sm:$0xf0]  ;;  %690 = vmatpush.bf16.msrb.mxu1 %v2667_v63  ;;  %v2681_v25 = vor.u32 %v2290_v23, %v2177_v21  ;;  %v2683_v32 = vor.u32 %v2288_v24, %v2179_v31  ;;  %v2153_v33 = vld [vmem:[#allocation3 + $0x1c0] sm:$0xf]  ;;  %v2283_v38 = vld [vmem:[#allocation3 + $0x1c4] sm:$0xf] }
  0x2c   :  { %703 = vmatpush.bf16.msrb.mxu2 %v2669_v2  ;;  %v2676_v16 = vor.u32 %v2289_v0, %v2169_v6  ;;  %716 = vmatpush.bf16.msrb.mxu3 %v2672_v7  ;;  %v2285_v37 = vld [vmem:[#allocation3 + $0x1cc] sm:$0xf0]  ;;  %v2155_v41 = vld [vmem:[#allocation3 + $0x1d0] sm:$0xf0]  ;;  %v2161_v42 = vld [vmem:[#allocation3 + $0x1c8] sm:$0xf] }
  0x2d   :  { %v2689_v40 = vor.u32 %v2285_v37, %v2153_v33  ;;  %v2286_v43 = vld [vmem:[#allocation3 + $0x1d4] sm:$0xf0]  ;;  %v2691_v52 = vor.u32 %v2283_v38, %v2155_v41  ;;  %v2284_v54 = vld [vmem:[#allocation3 + $0x1cc] sm:$0xf]  ;;  %v2163_v55 = vld [vmem:[#allocation3 + $0x1d8] sm:$0xf0] }
  0x2e   :  { %678 = vmatpush.bf16.msrb.mxu0 %v2676_v16  ;;  %v2693_v53 = vor.u32 %v2286_v43, %v2161_v42  ;;  %v2696_v58 = vor.u32 %v2284_v54, %v2163_v55  ;;  %v2137_v61 = vld [vmem:[#allocation3 + $0x1a0] sm:$0xf]  ;;  %v2281_v62 = vld [vmem:[#allocation3 + $0x1ac] sm:$0xf0]  ;;  %v2279_v3 = vld [vmem:[#allocation3 + $0x1a4] sm:$0xf] }
  0x2f   :  { %691 = vmatpush.bf16.msrb.mxu1 %v2678_v20  ;;  %v2701_v5 = vor.u32 %v2281_v62, %v2137_v61  ;;  %v2139_v6 = vld [vmem:[#allocation3 + $0x1b0] sm:$0xf0]  ;;  %v2145_v0 = vld [vmem:[#allocation3 + $0x1a8] sm:$0xf]  ;;  %v2282_v14 = vld [vmem:[#allocation3 + $0x1b4] sm:$0xf0] }
  0x30   :  { %704 = vmatpush.bf16.msrb.mxu2 %v2681_v25  ;;  %717 = vmatpush.bf16.msrb.mxu3 %v2683_v32  ;;  %v2703_v15 = vor.u32 %v2279_v3, %v2139_v6  ;;  %v2705_v21 = vor.u32 %v2282_v14, %v2145_v0  ;;  %v2280_v23 = vld [vmem:[#allocation3 + $0x1ac] sm:$0xf]  ;;  %v2147_v24 = vld [vmem:[#allocation3 + $0x1b8] sm:$0xf0]  ;;  %v2121_v33 = vld [vmem:[#allocation3 + $0x180] sm:$0xf] }
  0x31   :  { %v2708_v31 = vor.u32 %v2280_v23, %v2147_v24  ;;  %v2277_v37 = vld [vmem:[#allocation3 + $0x18c] sm:$0xf0]  ;;  %v2275_v38 = vld [vmem:[#allocation3 + $0x184] sm:$0xf]  ;;  %v2123_v42 = vld [vmem:[#allocation3 + $0x190] sm:$0xf0] }
  0x32   :  { %679 = vmatpush.bf16.msrb.mxu0 %v2689_v40  ;;  %v2713_v41 = vor.u32 %v2277_v37, %v2121_v33  ;;  %v2129_v43 = vld [vmem:[#allocation3 + $0x188] sm:$0xf]  ;;  %v2278_v54 = vld [vmem:[#allocation3 + $0x194] sm:$0xf0]  ;;  %v2715_v55 = vor.u32 %v2275_v38, %v2123_v42  ;;  %v2276_v62 = vld [vmem:[#allocation3 + $0x18c] sm:$0xf] }
  0x33   :  { %692 = vmatpush.bf16.msrb.mxu1 %v2691_v52  ;;  %3597 = vst [vmem:[#allocation39_spill] sm:$0xff] %v2708_v31  ;;  %v2717_v61 = vor.u32 %v2278_v54, %v2129_v43  ;;  %v2131_v3 = vld [vmem:[#allocation3 + $0x198] sm:$0xf0]  ;;  %v2105_v0 = vld [vmem:[#allocation3 + $0x160] sm:$0xf] }
  0x34   :  { %705 = vmatpush.bf16.msrb.mxu2 %v2693_v53  ;;  %718 = vmatpush.bf16.msrb.mxu3 %v2696_v58  ;;  %3598 = vst [vmem:[#allocation40_spill] sm:$0xff] %v2713_v41  ;;  %v2720_v6 = vor.u32 %v2276_v62, %v2131_v3  ;;  %v2273_v14 = vld [vmem:[#allocation3 + $0x16c] sm:$0xf0]  ;;  %v2271_v23 = vld [vmem:[#allocation3 + $0x164] sm:$0xf] }
  0x35   :  { %3599 = vst [vmem:[#allocation41_spill] sm:$0xff] %v2715_v55  ;;  %v2725_v24 = vor.u32 %v2273_v14, %v2105_v0  ;;  %v2107_v33 = vld [vmem:[#allocation3 + $0x170] sm:$0xf0]  ;;  %v2113_v37 = vld [vmem:[#allocation3 + $0x168] sm:$0xf] }
  0x36   :  { %680 = vmatpush.bf16.msrb.mxu0 %v2701_v5  ;;  %3600 = vst [vmem:[#allocation42_spill] sm:$0xff] %v2717_v61  ;;  %v2274_v38 = vld [vmem:[#allocation3 + $0x174] sm:$0xf0]  ;;  %v2727_v42 = vor.u32 %v2271_v23, %v2107_v33  ;;  %v2272_v54 = vld [vmem:[#allocation3 + $0x16c] sm:$0xf] }
  0x37   :  { %693 = vmatpush.bf16.msrb.mxu1 %v2703_v15  ;;  %3601 = vst [vmem:[#allocation43_spill] sm:$0xff] %v2720_v6  ;;  %v2729_v43 = vor.u32 %v2274_v38, %v2113_v37  ;;  %v2115_v62 = vld [vmem:[#allocation3 + $0x178] sm:$0xf0]  ;;  %v2269_v0 = vld [vmem:[#allocation3 + $0x14c] sm:$0xf0] }
  0x38   :  { %706 = vmatpush.bf16.msrb.mxu2 %v2705_v21  ;;  %719 = vmatpush.bf16.msrb.mxu3 %v2708_v31  ;;  %3602 = vst [vmem:[#allocation44_spill] sm:$0xff] %v2725_v24  ;;  %v2732_v3 = vor.u32 %v2272_v54, %v2115_v62  ;;  %v2267_v14 = vld [vmem:[#allocation3 + $0x144] sm:$0xf]  ;;  %v2091_v23 = vld [vmem:[#allocation3 + $0x150] sm:$0xf0] }
  0x39   :  { %3603 = vst [vmem:[#allocation45_spill] sm:$0xff] %v2727_v42  ;;  %v2097_v33 = vld [vmem:[#allocation3 + $0x148] sm:$0xf]  ;;  %v2270_v37 = vld [vmem:[#allocation3 + $0x154] sm:$0xf0] }
  0x3a   :  { %681 = vmatpush.bf16.msrb.mxu0 %v2713_v41  ;;  %3604 = vst [vmem:[#allocation46_spill] sm:$0xff] %v2729_v43  ;;  %v44_v38 = vld [vmem:[#allocation3] sm:$0x11]  ;;  %v2268_v54 = vld [vmem:[#allocation3 + $0x14c] sm:$0xf] }
  0x3b   :  { %694 = vmatpush.bf16.msrb.mxu1 %v2715_v55  ;;  %3605 = vst [vmem:[#allocation47_spill] sm:$0xff] %v2732_v3  ;;  %v2739_v55 = vor.u32 %v2267_v14, %v2091_v23  ;;  %v2099_v62 = vld [vmem:[#allocation3 + $0x158] sm:$0xf0]  ;;  %v2075_v23 = vld [vmem:[#allocation3 + $0x130] sm:$0xf0]  ;;  %v47_v41 = vunpack.c.h.bf16 %v44_v38 }
  0x3c   :  { %707 = vmatpush.bf16.msrb.mxu2 %v2717_v61  ;;  %720 = vmatpush.bf16.msrb.mxu3 %v2720_v6  ;;  %v2089_v6 = vld [vmem:[#allocation3 + $0x140] sm:$0xf] }
  0x3d   :  { %v2737_v61 = vor.u32 %v2269_v0, %v2089_v6  ;;  %3607 = vst [vmem:[#allocation49_spill] sm:$0xff] %v2739_v55  ;;  %v2073_v6 = vld [vmem:[#allocation3 + $0x120] sm:$0xf]  ;;  %v2265_v0 = vld [vmem:[#allocation3 + $0x12c] sm:$0xf0] }
  0x3e   :  { %682 = vmatpush.bf16.msrb.mxu0 %v2725_v24  ;;  %v2741_v24 = vor.u32 %v2270_v37, %v2097_v33  ;;  %v2749_v14 = vor.u32 %v2265_v0, %v2073_v6  ;;  %v2081_v33 = vld [vmem:[#allocation3 + $0x128] sm:$0xf]  ;;  %v2266_v37 = vld [vmem:[#allocation3 + $0x134] sm:$0xf0] }
  0x3f   :  { %695 = vmatpush.bf16.msrb.mxu1 %v2727_v42  ;;  %3606 = vst [vmem:[#allocation48_spill] sm:$0xff] %v2737_v61  ;;  %v46_v42 = vunpack.c.l.bf16 %v44_v38  ;;  %v2767_v38 = vperm.slane %v47_v41, 0 }
  0x40   :  { %708 = vmatpush.bf16.msrb.mxu2 %v2729_v43  ;;  %721 = vmatpush.bf16.msrb.mxu3 %v2732_v3  ;;  %3608 = vst [vmem:[#allocation50_spill] sm:$0xff] %v2741_v24  ;;  %v2744_v43 = vor.u32 %v2268_v54, %v2099_v62  ;;  %v2263_v3 = vld [vmem:[#allocation3 + $0x124] sm:$0xf]  ;;  %v2753_v54 = vor.u32 %v2266_v37, %v2081_v33  ;;  %v2264_v62 = vld [vmem:[#allocation3 + $0x12c] sm:$0xf] }
  0x41   :  { %v2751_v31 = vor.u32 %v2263_v3, %v2075_v23  ;;  %v2760_v6 = vperm.slane %v46_v42, 0  ;;  %v32_v3 = vld [vmem:[%s3448_s2] ss:$8 sm:$0xf]  ;;  %3612 = vst [vmem:[#allocation54_spill] sm:$0xff] %v2767_v38 }
  0x42   :  { %683 = vmatpush.bf16.msrb.mxu0 %v2737_v61  ;;  %3609 = vst [vmem:[#allocation51_spill] sm:$0xff] %v2744_v43  ;;  %v2773_v23 = vperm.slane %v32_v3, 0  ;;  %v2777_v37 = vperm.slane %v32_v3, 1 }
  0x43   :  { %696 = vmatpush.bf16.msrb.mxu1 %v2739_v55  ;;  %3610 = vst [vmem:[#allocation52_spill] sm:$0xff] %v2751_v31  ;;  %v2083_v55 = vld [vmem:[#allocation3 + $0x138] sm:$0xf0] }
  0x44   :  { %709 = vmatpush.bf16.msrb.mxu2 %v2741_v24  ;;  %722 = vmatpush.bf16.msrb.mxu3 %v2744_v43  ;;  %v2756_v24 = vor.u32 %v2264_v62, %v2083_v55  ;;  %3611 = vst [vmem:[#allocation53_spill] sm:$0xff] %v2760_v6  ;;  %v45_v55 = vld [vmem:[#allocation3 + $0x8] sm:$0x11] }
  0x45   :  { %3613 = vst [vmem:[#allocation55_spill] sm:$0xff] %v2773_v23  ;;  %v48_v41 = vunpack.c.l.bf16 %v45_v55  ;;  %v49_v62 = vunpack.c.h.bf16 %v45_v55 }
  0x46   :  { %684 = vmatpush.bf16.msrb.mxu0 %v2749_v14  ;;  %3614 = vst [vmem:[#allocation56_spill] sm:$0xff] %v2777_v37 }
  0x47   :  { %697 = vmatpush.bf16.msrb.mxu1 %v2751_v31 }
  0x48   :  { %710 = vmatpush.bf16.msrb.mxu2 %v2753_v54  ;;  %723 = vmatpush.bf16.msrb.mxu3 %v2756_v24 }
  0x4a   :  { %755 = vmatpush.bf16.msra.mxu0 %v2558_v4 }
  0x4b   :  { %768 = vmatpush.bf16.msra.mxu1 %v2560_v8 }
  0x4c   :  { %781 = vmatpush.bf16.msra.mxu2 %v2562_v9  ;;  %794 = vmatpush.bf16.msra.mxu3 %v2565_v13  ;;  %v2785_v9 = vperm.slane %v48_v41, 0 }
  0x4e   :  { %756 = vmatpush.bf16.msra.mxu0 %v2569_v17  ;;  %3615 = vst [vmem:[#allocation57_spill] sm:$0xff] %v2785_v9 }
  0x4f   :  { %769 = vmatpush.bf16.msra.mxu1 %v2571_v18 }
  0x50   :  { %782 = vmatpush.bf16.msra.mxu2 %v2574_v22  ;;  %795 = vmatpush.bf16.msra.mxu3 %v2576_v26 }
  0x52   :  { %757 = vmatpush.bf16.msra.mxu0 %v2579_v30  ;;  %v2794_v30 = vperm.slane %v32_v3, 2 }
  0x53   :  { %770 = vmatpush.bf16.msra.mxu1 %v2583_v34 }
  0x54   :  { %783 = vmatpush.bf16.msra.mxu2 %v2585_v35  ;;  %796 = vmatpush.bf16.msra.mxu3 %v2588_v39  ;;  %3617 = vst [vmem:[#allocation59_spill] sm:$0xff] %v2794_v30 }
  0x56   :  { %758 = vmatpush.bf16.msra.mxu0 %v2591_v45 }
  0x57   :  { %771 = vmatpush.bf16.msra.mxu1 %v2595_v46 }
  0x58   :  { %784 = vmatpush.bf16.msra.mxu2 %v2597_v47  ;;  %797 = vmatpush.bf16.msra.mxu3 %v2600_v51 }
  0x5a   :  { %759 = vmatpush.bf16.msra.mxu0 %v2603_v57 }
  0x5b   :  { %772 = vmatpush.bf16.msra.mxu1 %v2607_v59 }
  0x5c   :  { %785 = vmatpush.bf16.msra.mxu2 %v2609_v60  ;;  %798 = vmatpush.bf16.msra.mxu3 %v2615_v1 }
  0x5e   :  { %760 = vmatpush.bf16.msra.mxu0 %v2618_v10 }
  0x5f   :  { %773 = vmatpush.bf16.msra.mxu1 %v2622_v11 }
  0x60   :  { %786 = vmatpush.bf16.msra.mxu2 %v2624_v12  ;;  %799 = vmatpush.bf16.msra.mxu3 %v2627_v19 }
  0x62   :  { %761 = vmatpush.bf16.msra.mxu0 %v2630_v27 }
  0x63   :  { %774 = vmatpush.bf16.msra.mxu1 %v2634_v28 }
  0x64   :  { %787 = vmatpush.bf16.msra.mxu2 %v2636_v29  ;;  %800 = vmatpush.bf16.msra.mxu3 %v2639_v36 }
  0x66   :  { %762 = vmatpush.bf16.msra.mxu0 %v2643_v44 }
  0x67   :  { %775 = vmatpush.bf16.msra.mxu1 %v2647_v48 }
  0x68   :  { %788 = vmatpush.bf16.msra.mxu2 %v2649_v49  ;;  %801 = vmatpush.bf16.msra.mxu3 %v2652_v50 }
  0x7e   :  { %v53_v0 = vpop.permute.xlu0 %52 }
  0x7f   :  { %v94_v42 = vmul.f32 %v2760_v6, %v53_v0  ;;  %v95_v33 = vmul.f32 %v2767_v38, %v53_v0  ;;  %v2789_v38 = vperm.slane %v49_v62, 0  ;;  %v2799_v62 = vperm.slane %v32_v3, 3 }
  0x81   :  { %v135_v13 = vadd.f32 %v2773_v23, %v94_v42  ;;  %v136_v6 = vadd.f32 %v2777_v37, %v95_v33  ;;  %3616 = vst [vmem:[#allocation58_spill] sm:$0xff] %v2789_v38  ;;  %v96_v23 = vmul.f32 %v2785_v9, %v53_v0  ;;  %v97_v41 = vmul.f32 %v2789_v38, %v53_v0 }
  0x82   :  { %3618 = vst [vmem:[#allocation60_spill] sm:$0xff] %v2799_v62 }
  0xa6   :  { %v416_v22 = vpop.f32.mrf.mxu0  ;;  %v429_v18 = vpop.f32.mrf.mxu1 }
  0xa7   :  { %v459_v55 = vadd.f32 %v416_v22, %v135_v13  ;;  %v460_v42 = vadd.f32 %v429_v18, %v136_v6  ;;  %v137_v18 = vadd.f32 %v2794_v30, %v96_v23  ;;  %v138_v6 = vadd.f32 %v2799_v62, %v97_v41 }
  0xa9   :  { %v463_v33 = vmul.f32 0.5, %v459_v55  ;;  %v464_v13 = vmul.f32 0.5, %v460_v42 }
  0xab   :  { %2313 = vtanh.f32 %v463_v33 }
  0xac   :  { %2315 = vtanh.f32 %v464_v13 }
  0xad   :  { %v442_v22 = vpop.f32.mrf.mxu2 }
  0xae   :  { %v461_v3 = vadd.f32 %v442_v22, %v137_v18  ;;  %v455_v0 = vpop.f32.mrf.mxu3  ;;  %v418_v55 = vpop.f32.mrf.mxu0 }
  0xaf   :  { %v462_v38 = vadd.f32 %v455_v0, %v138_v6  ;;  %v431_v42 = vpop.f32.mrf.mxu1 }
  0xb0   :  { %2317 = vtanh.f32 %v461_v3 }
  0xb1   :  { %v2314_v23 = vpop.eup %2313  ;;  %v472_v33 = vmul.f32 0.5, %v462_v38 }
  0xb2   :  { %v2316_v13 = vpop.eup %2315  ;;  %v467_v41 = vmul.f32 0.5, %v2314_v23 }
  0xb3   :  { %v468_v62 = vmul.f32 0.5, %v2316_v13  ;;  %2319 = vtanh.f32 %v472_v33 }
  0xb4   :  { %v469_v18 = vadd.f32 0.5, %v467_v41 }
  0xb5   :  { %v470_v22 = vadd.f32 0.5, %v468_v62  ;;  %v444_v6 = vpop.f32.mrf.mxu2  ;;  %v37_v62 = vld [vmem:[%s3446_s0 + $0x8] sm:$0xff] }
  0xb6   :  { %v2318_v3 = vpop.eup %2317  ;;  %v457_v0 = vpop.f32.mrf.mxu3  ;;  %57 = vperm.xlu1 %2311, %v37_v62   ;;  %v3622_v62 = vld [vmem:[#allocation42_spill] sm:$0xff] }
  0xb7   :  { %v476_v38 = vmul.f32 0.0, %v470_v22  ;;  %v477_v55 = vmul.f32 %v2318_v3, %v469_v18  ;;  %v482_v22 = vpop.permute.xlu0 %481 }
  0xb9   :  { %v2320_v42 = vpop.eup %2319  ;;  %v2819_v23 = vadd.f32 %v477_v55, %v476_v38  ;;  %v3619_v38 = vld [vmem:[#allocation39_spill] sm:$0xff]  ;;  %v3620_v55 = vld [vmem:[#allocation40_spill] sm:$0xff] }
  0xba   :  { %v474_v33 = vmul.f32 0.5, %v2320_v42  ;;  %v3621_v42 = vld [vmem:[#allocation41_spill] sm:$0xff] }
  0xbb   :  { %2321 = vtanh.f32 %v2819_v23 }
  0xbc   :  { %v475_v13 = vadd.f32 0.5, %v474_v33  ;;  %v3623_v33 = vld [vmem:[#allocation43_spill] sm:$0xff] }
  0xc1   :  { %v2322_v41 = vpop.eup %2321 }
  0xc2   :  { %v480_v18 = vmul.f32 %v2322_v41, %v475_v13  ;;  %v3624_v13 = vld [vmem:[#allocation44_spill] sm:$0xff]  ;;  %v3625_v41 = vld [vmem:[#allocation45_spill] sm:$0xff] }
  0xc4   :  { %v483_v6 = vadd.f32 %v482_v22, %v480_v18  ;;  %v754_v0 = vpack.c.bf16 %v480_v18, %v480_v18  ;;  %v3626_v18 = vld [vmem:[#allocation46_spill] sm:$0xff]  ;;  %v3627_v22 = vld [vmem:[#allocation47_spill] sm:$0xff] }
  0xc6   :  { %v484_v3 = vpack.c.bf16 %v483_v6, %v483_v6  ;;  %v3628_v6 = vld [vmem:[#allocation49_spill] sm:$0xff] }
  0xc8   :  { %685 = vmatmul.bf16.vlgmr.msrb.gmra.mxu0 %v484_v3  ;;  %698 = vmatmul.bf16.vlgmr.msrb.gmra.mxu1 %v484_v3 }
  0xc9   :  { %711 = vmatmul.bf16.vlgmr.msrb.gmra.mxu2 %v484_v3  ;;  %724 = vmatmul.bf16.vlgmr.msrb.gmra.mxu3 %v484_v3  ;;  %v3629_v3 = vld [vmem:[#allocation50_spill] sm:$0xff] }
  0xca   :  { %833 = vmatpush.bf16.msrb.mxu0 %v2665_v56  ;;  %846 = vmatpush.bf16.msrb.mxu1 %v2667_v63 }
  0xcb   :  { %859 = vmatpush.bf16.msrb.mxu2 %v2669_v2  ;;  %872 = vmatpush.bf16.msrb.mxu3 %v2672_v7 }
  0xce   :  { %834 = vmatpush.bf16.msrb.mxu0 %v2676_v16  ;;  %847 = vmatpush.bf16.msrb.mxu1 %v2678_v20 }
  0xcf   :  { %860 = vmatpush.bf16.msrb.mxu2 %v2681_v25  ;;  %873 = vmatpush.bf16.msrb.mxu3 %v2683_v32 }
  0xd2   :  { %835 = vmatpush.bf16.msrb.mxu0 %v2689_v40  ;;  %848 = vmatpush.bf16.msrb.mxu1 %v2691_v52 }
  0xd3   :  { %861 = vmatpush.bf16.msrb.mxu2 %v2693_v53  ;;  %874 = vmatpush.bf16.msrb.mxu3 %v2696_v58 }
  0xd6   :  { %836 = vmatpush.bf16.msrb.mxu0 %v2701_v5  ;;  %849 = vmatpush.bf16.msrb.mxu1 %v2703_v15 }
  0xd7   :  { %862 = vmatpush.bf16.msrb.mxu2 %v2705_v21  ;;  %875 = vmatpush.bf16.msrb.mxu3 %v3619_v38 }
  0xd8   :  { %763 = vmatmul.bf16.vlgmr.msra.gmra.mxu0 %v754_v0  ;;  %776 = vmatmul.bf16.vlgmr.msra.gmra.mxu1 %v754_v0 }
  0xd9   :  { %789 = vmatmul.bf16.vlgmr.msra.gmra.mxu2 %v754_v0  ;;  %802 = vmatmul.bf16.vlgmr.msra.gmra.mxu3 %v754_v0  ;;  %v3630_v0 = vld [vmem:[#allocation9_spill] sm:$0xff] }
  0xda   :  { %837 = vmatpush.bf16.msrb.mxu0 %v3620_v55  ;;  %850 = vmatpush.bf16.msrb.mxu1 %v3621_v42 }
  0xdb   :  { %863 = vmatpush.bf16.msrb.mxu2 %v3622_v62  ;;  %876 = vmatpush.bf16.msrb.mxu3 %v3623_v33 }
  0xde   :  { %838 = vmatpush.bf16.msrb.mxu0 %v3624_v13  ;;  %851 = vmatpush.bf16.msrb.mxu1 %v3625_v41 }
  0xdf   :  { %864 = vmatpush.bf16.msrb.mxu2 %v3626_v18  ;;  %877 = vmatpush.bf16.msrb.mxu3 %v3627_v22 }
  0xe2   :  { %839 = vmatpush.bf16.msrb.mxu0 %v2737_v61  ;;  %852 = vmatpush.bf16.msrb.mxu1 %v3628_v6  ;;  %v3631_v61 = vld [vmem:[#allocation10_spill] sm:$0xff] }
  0xe3   :  { %865 = vmatpush.bf16.msrb.mxu2 %v3629_v3  ;;  %878 = vmatpush.bf16.msrb.mxu3 %v2744_v43  ;;  %v3632_v3 = vld [vmem:[#allocation12_spill] sm:$0xff]  ;;  %v3633_v43 = vld [vmem:[#allocation13_spill] sm:$0xff] }
  0xe6   :  { %840 = vmatpush.bf16.msrb.mxu0 %v2749_v14  ;;  %853 = vmatpush.bf16.msrb.mxu1 %v2751_v31  ;;  %v3634_v31 = vld [vmem:[#allocation15_spill] sm:$0xff] }
  0xe7   :  { %866 = vmatpush.bf16.msrb.mxu2 %v2753_v54  ;;  %879 = vmatpush.bf16.msrb.mxu3 %v2756_v24 }
  0xea   :  { %911 = vmatpush.bf16.msra.mxu0 %v2558_v4  ;;  %924 = vmatpush.bf16.msra.mxu1 %v2560_v8 }
  0xeb   :  { %937 = vmatpush.bf16.msra.mxu2 %v3630_v0  ;;  %950 = vmatpush.bf16.msra.mxu3 %v3631_v61 }
  0xee   :  { %912 = vmatpush.bf16.msra.mxu0 %v2569_v17  ;;  %925 = vmatpush.bf16.msra.mxu1 %v3632_v3 }
  0xef   :  { %938 = vmatpush.bf16.msra.mxu2 %v3633_v43  ;;  %951 = vmatpush.bf16.msra.mxu3 %v2576_v26 }
  0xf2   :  { %913 = vmatpush.bf16.msra.mxu0 %v3634_v31  ;;  %926 = vmatpush.bf16.msra.mxu1 %v2583_v34 }
  0xf3   :  { %939 = vmatpush.bf16.msra.mxu2 %v2585_v35  ;;  %952 = vmatpush.bf16.msra.mxu3 %v2588_v39 }
  0xf6   :  { %914 = vmatpush.bf16.msra.mxu0 %v2591_v45  ;;  %927 = vmatpush.bf16.msra.mxu1 %v2595_v46 }
  0xf7   :  { %940 = vmatpush.bf16.msra.mxu2 %v2597_v47  ;;  %953 = vmatpush.bf16.msra.mxu3 %v2600_v51 }
  0xfa   :  { %915 = vmatpush.bf16.msra.mxu0 %v2603_v57  ;;  %928 = vmatpush.bf16.msra.mxu1 %v2607_v59 }
  0xfb   :  { %941 = vmatpush.bf16.msra.mxu2 %v2609_v60  ;;  %954 = vmatpush.bf16.msra.mxu3 %v2615_v1 }
  0xfe   :  { %916 = vmatpush.bf16.msra.mxu0 %v2618_v10  ;;  %929 = vmatpush.bf16.msra.mxu1 %v2622_v11 }
  0xff   :  { %942 = vmatpush.bf16.msra.mxu2 %v2624_v12  ;;  %955 = vmatpush.bf16.msra.mxu3 %v2627_v19  ;;  %v1942_v19 = vld [vmem:[%s3448_s2 + $0x1] ss:$8 sm:$0xf] }
 0x100   :  { %v2893_v12 = vperm.slane %v1942_v19, 0  ;;  %v2899_v10 = vperm.slane %v1942_v19, 2 }
 0x102   :  { %917 = vmatpush.bf16.msra.mxu0 %v2630_v27  ;;  %930 = vmatpush.bf16.msra.mxu1 %v2634_v28  ;;  %3635 = vst [vmem:[#allocation39_spill] sm:$0xff] %v2893_v12  ;;  %v2895_v27 = vperm.slane %v1942_v19, 1 }
 0x103   :  { %943 = vmatpush.bf16.msra.mxu2 %v2636_v29  ;;  %956 = vmatpush.bf16.msra.mxu3 %v2639_v36  ;;  %3637 = vst [vmem:[#allocation41_spill] sm:$0xff] %v2899_v10 }
 0x104   :  { %3636 = vst [vmem:[#allocation40_spill] sm:$0xff] %v2895_v27 }
 0x106   :  { %918 = vmatpush.bf16.msra.mxu0 %v2643_v44  ;;  %931 = vmatpush.bf16.msra.mxu1 %v2647_v48 }
 0x107   :  { %944 = vmatpush.bf16.msra.mxu2 %v2649_v49  ;;  %957 = vmatpush.bf16.msra.mxu3 %v2652_v50  ;;  %v2901_v49 = vperm.slane %v1942_v19, 3 }
 0x109   :  { %3638 = vst [vmem:[#allocation42_spill] sm:$0xff] %v2901_v49 }
 0x128   :  { %v58_v50 = vpop.permute.xlu1 %57 }
 0x145   :  { %v686_v28 = vpop.f32.mrf.mxu0  ;;  %v699_v29 = vpop.f32.mrf.mxu1 }
 0x146   :  { %v687_v36 = vadd.f32 %v686_v28, %v2893_v12  ;;  %v700_v44 = vadd.f32 %v699_v29, %v2895_v27  ;;  %v3639_v28 = vld [vmem:[#allocation53_spill] sm:$0xff]  ;;  %v3640_v29 = vld [vmem:[#allocation54_spill] sm:$0xff] }
 0x147   :  { %v98_v12 = vmul.f32 %v3639_v28, %v58_v50 }
 0x148   :  { %v729_v11 = vmul.f32 0.5, %v687_v36  ;;  %v730_v48 = vmul.f32 0.5, %v700_v44  ;;  %v99_v36 = vmul.f32 %v3640_v29, %v58_v50  ;;  %v100_v29 = vmul.f32 %v2785_v9, %v58_v50 }
 0x14a   :  { %2323 = vtanh.f32 %v729_v11  ;;  %v140_v39 = vadd.f32 %v2777_v37, %v99_v36  ;;  %v141_v36 = vadd.f32 %v2794_v30, %v100_v29 }
 0x14b   :  { %2325 = vtanh.f32 %v730_v48  ;;  %v3641_v48 = vld [vmem:[#allocation55_spill] sm:$0xff] }
 0x14c   :  { %v712_v1 = vpop.f32.mrf.mxu2  ;;  %v725_v60 = vpop.f32.mrf.mxu3  ;;  %v139_v45 = vadd.f32 %v3641_v48, %v98_v12 }
 0x14d   :  { %v713_v59 = vadd.f32 %v712_v1, %v2899_v10  ;;  %v726_v57 = vadd.f32 %v725_v60, %v2901_v49  ;;  %v688_v51 = vpop.f32.mrf.mxu0  ;;  %v701_v47 = vpop.f32.mrf.mxu1 }
 0x14f   :  { %2327 = vtanh.f32 %v713_v59  ;;  %v738_v27 = vmul.f32 0.5, %v726_v57 }
 0x150   :  { %v2324_v44 = vpop.eup %2323 }
 0x151   :  { %v2326_v19 = vpop.eup %2325  ;;  %v733_v46 = vmul.f32 0.5, %v2324_v44  ;;  %2329 = vtanh.f32 %v738_v27 }
 0x152   :  { %v734_v11 = vmul.f32 0.5, %v2326_v19 }
 0x153   :  { %v735_v35 = vadd.f32 0.5, %v733_v46 }
 0x154   :  { %v736_v1 = vadd.f32 0.5, %v734_v11  ;;  %v714_v60 = vpop.f32.mrf.mxu2  ;;  %v727_v51 = vpop.f32.mrf.mxu3 }
 0x155   :  { %v2328_v47 = vpop.eup %2327  ;;  %v764_v49 = vpop.f32.mrf.mxu0 }
 0x156   :  { %v777_v28 = vpop.f32.mrf.mxu1  ;;  %v742_v59 = vmul.f32 0.0, %v736_v1  ;;  %v743_v10 = vmul.f32 %v2328_v47, %v735_v35  ;;  %v807_v57 = vadd.f32 %v764_v49, %v139_v45 }
 0x157   :  { %v808_v34 = vadd.f32 %v777_v28, %v140_v39  ;;  %v2330_v46 = vpop.eup %2329 }
 0x158   :  { %v2910_v44 = vadd.f32 %v743_v10, %v742_v59  ;;  %v811_v19 = vmul.f32 0.5, %v807_v57  ;;  %v740_v60 = vmul.f32 0.5, %v2330_v46  ;;  %v3642_v46 = vld [vmem:[#allocation58_spill] sm:$0xff] }
 0x159   :  { %v812_v12 = vmul.f32 0.5, %v808_v34 }
 0x15a   :  { %2331 = vtanh.f32 %v811_v19  ;;  %v741_v45 = vadd.f32 0.5, %v740_v60 }
 0x15b   :  { %2333 = vtanh.f32 %v812_v12 }
 0x15c   :  { %v790_v27 = vpop.f32.mrf.mxu2  ;;  %v803_v11 = vpop.f32.mrf.mxu3  ;;  %2335 = vtanh.f32 %v2910_v44 }
 0x15d   :  { %v809_v51 = vadd.f32 %v790_v27, %v141_v36  ;;  %v766_v9 = vpop.f32.mrf.mxu0  ;;  %v101_v27 = vmul.f32 %v3642_v46, %v58_v50 }
 0x15e   :  { %v779_v1 = vpop.f32.mrf.mxu1 }
 0x15f   :  { %2337 = vtanh.f32 %v809_v51  ;;  %v3643_v51 = vld [vmem:[#allocation60_spill] sm:$0xff] }
 0x160   :  { %v2332_v35 = vpop.eup %2331  ;;  %v142_v60 = vadd.f32 %v3643_v51, %v101_v27  ;;  %v3650_v27 = vld [vmem:[#allocation18_spill] sm:$0xff] }
 0x161   :  { %v2334_v39 = vpop.eup %2333  ;;  %v815_v10 = vmul.f32 0.5, %v2332_v35 }
 0x162   :  { %v2336_v49 = vpop.eup %2335  ;;  %v816_v34 = vmul.f32 0.5, %v2334_v39  ;;  %v810_v1 = vadd.f32 %v803_v11, %v142_v60  ;;  %v3651_v60 = vld [vmem:[#allocation19_spill] sm:$0xff] }
 0x163   :  { %v817_v28 = vadd.f32 0.5, %v815_v10  ;;  %v746_v29 = vmul.f32 %v2336_v49, %v741_v45  ;;  %v38_v45 = vld [vmem:[%s3446_s0 + $0x10] sm:$0xff] }
 0x164   :  { %v818_v47 = vadd.f32 0.5, %v816_v34  ;;  %v792_v59 = vpop.f32.mrf.mxu2  ;;  %v805_v57 = vpop.f32.mrf.mxu3  ;;  %v820_v35 = vmul.f32 0.5, %v810_v1  ;;  %62 = vperm.xlu2 %2312, %v38_v45   ;;  %v3652_v1 = vld [vmem:[#allocation20_spill] sm:$0xff]  ;;  %v3655_v45 = vld [vmem:[#allocation23_spill] sm:$0xff] }
 0x165   :  { %v2338_v19 = vpop.eup %2337  ;;  %829 = vrot.lane.b32.xlu1 %v746_v29, %s2530_s20  ;;  %v3645_v59 = vld [vmem:[#allocation50_spill] sm:$0xff]  ;;  %v3646_v57 = vld [vmem:[#allocation51_spill] sm:$0xff] }
 0x166   :  { %v824_v12 = vmul.f32 %v818_v47, %v2819_v23  ;;  %v825_v36 = vmul.f32 %v2338_v19, %v817_v28  ;;  %2339 = vtanh.f32 %v820_v35  ;;  %v3644_v47 = vld [vmem:[#allocation48_spill] sm:$0xff]  ;;  %v3653_v35 = vld [vmem:[#allocation21_spill] sm:$0xff] }
 0x167   :  { %v3647_v19 = vld [vmem:[#allocation52_spill] sm:$0xff] }
 0x168   :  { %v2916_v9 = vadd.f32 %v825_v36, %v824_v12  ;;  %v3648_v12 = vld [vmem:[#allocation16_spill] sm:$0xff]  ;;  %v3649_v36 = vld [vmem:[#allocation17_spill] sm:$0xff] }
 0x16a   :  { %2341 = vtanh.f32 %v2916_v9 }
 0x16c   :  { %v2340_v39 = vpop.eup %2339 }
 0x16d   :  { %v822_v10 = vmul.f32 0.5, %v2340_v39  ;;  %v3654_v39 = vld [vmem:[#allocation22_spill] sm:$0xff] }
 0x16f   :  { %v823_v49 = vadd.f32 0.5, %v822_v10  ;;  %v3656_v10 = vld [vmem:[#allocation24_spill] sm:$0xff] }
 0x170   :  { %v2342_v23 = vpop.eup %2341 }
 0x171   :  { %v828_v34 = vmul.f32 %v2342_v23, %v823_v49  ;;  %v3657_v23 = vld [vmem:[#allocation25_spill] sm:$0xff]  ;;  %v3658_v49 = vld [vmem:[#allocation26_spill] sm:$0xff] }
 0x173   :  { %v910_v11 = vpack.c.bf16 %v828_v34, %v828_v34 }
 0x1d7   :  { %v830_v28 = vpop.permute.xlu1 %829 }
 0x1d8   :  { %v831_v29 = vadd.f32 %v830_v28, %v828_v34  ;;  %v3659_v34 = vld [vmem:[#allocation27_spill] sm:$0xff]  ;;  %v3660_v28 = vld [vmem:[#allocation28_spill] sm:$0xff] }
 0x1da   :  { %v832_v50 = vpack.c.bf16 %v831_v29, %v831_v29  ;;  %v3661_v29 = vld [vmem:[#allocation29_spill] sm:$0xff] }
 0x1dc   :  { %841 = vmatmul.bf16.vlgmr.msrb.gmra.mxu0 %v832_v50  ;;  %854 = vmatmul.bf16.vlgmr.msrb.gmra.mxu1 %v832_v50 }
 0x1dd   :  { %867 = vmatmul.bf16.vlgmr.msrb.gmra.mxu2 %v832_v50  ;;  %880 = vmatmul.bf16.vlgmr.msrb.gmra.mxu3 %v832_v50  ;;  %v3662_v50 = vld [vmem:[#allocation30_spill] sm:$0xff] }
 0x1de   :  { %989 = vmatpush.bf16.msrb.mxu0 %v2665_v56  ;;  %1002 = vmatpush.bf16.msrb.mxu1 %v2667_v63 }
 0x1df   :  { %1015 = vmatpush.bf16.msrb.mxu2 %v2669_v2  ;;  %1028 = vmatpush.bf16.msrb.mxu3 %v2672_v7 }
 0x1e2   :  { %990 = vmatpush.bf16.msrb.mxu0 %v2676_v16  ;;  %1003 = vmatpush.bf16.msrb.mxu1 %v2678_v20 }
 0x1e3   :  { %1016 = vmatpush.bf16.msrb.mxu2 %v2681_v25  ;;  %1029 = vmatpush.bf16.msrb.mxu3 %v2683_v32 }
 0x1e6   :  { %991 = vmatpush.bf16.msrb.mxu0 %v2689_v40  ;;  %1004 = vmatpush.bf16.msrb.mxu1 %v2691_v52 }
 0x1e7   :  { %1017 = vmatpush.bf16.msrb.mxu2 %v2693_v53  ;;  %1030 = vmatpush.bf16.msrb.mxu3 %v2696_v58 }
 0x1ea   :  { %992 = vmatpush.bf16.msrb.mxu0 %v2701_v5  ;;  %1005 = vmatpush.bf16.msrb.mxu1 %v2703_v15 }
 0x1eb   :  { %1018 = vmatpush.bf16.msrb.mxu2 %v2705_v21  ;;  %1031 = vmatpush.bf16.msrb.mxu3 %v3619_v38 }
 0x1ec   :  { %919 = vmatmul.bf16.vlgmr.msra.gmra.mxu0 %v910_v11  ;;  %932 = vmatmul.bf16.vlgmr.msra.gmra.mxu1 %v910_v11 }
 0x1ed   :  { %945 = vmatmul.bf16.vlgmr.msra.gmra.mxu2 %v910_v11  ;;  %958 = vmatmul.bf16.vlgmr.msra.gmra.mxu3 %v910_v11  ;;  %v3663_v11 = vld [vmem:[#allocation31_spill] sm:$0xff] }
 0x1ee   :  { %993 = vmatpush.bf16.msrb.mxu0 %v3620_v55  ;;  %1006 = vmatpush.bf16.msrb.mxu1 %v3621_v42 }
 0x1ef   :  { %1019 = vmatpush.bf16.msrb.mxu2 %v3622_v62  ;;  %1032 = vmatpush.bf16.msrb.mxu3 %v3623_v33 }
 0x1f2   :  { %994 = vmatpush.bf16.msrb.mxu0 %v3624_v13  ;;  %1007 = vmatpush.bf16.msrb.mxu1 %v3625_v41 }
 0x1f3   :  { %1020 = vmatpush.bf16.msrb.mxu2 %v3626_v18  ;;  %1033 = vmatpush.bf16.msrb.mxu3 %v3627_v22 }
 0x1f6   :  { %995 = vmatpush.bf16.msrb.mxu0 %v3644_v47  ;;  %1008 = vmatpush.bf16.msrb.mxu1 %v3628_v6 }
 0x1f7   :  { %1021 = vmatpush.bf16.msrb.mxu2 %v3645_v59  ;;  %1034 = vmatpush.bf16.msrb.mxu3 %v3646_v57 }
 0x1fa   :  { %996 = vmatpush.bf16.msrb.mxu0 %v2749_v14  ;;  %1009 = vmatpush.bf16.msrb.mxu1 %v3647_v19 }
 0x1fb   :  { %1022 = vmatpush.bf16.msrb.mxu2 %v2753_v54  ;;  %1035 = vmatpush.bf16.msrb.mxu3 %v2756_v24 }
 0x1fe   :  { %1067 = vmatpush.bf16.msra.mxu0 %v2558_v4  ;;  %1080 = vmatpush.bf16.msra.mxu1 %v2560_v8 }
 0x1ff   :  { %1093 = vmatpush.bf16.msra.mxu2 %v3630_v0  ;;  %1106 = vmatpush.bf16.msra.mxu3 %v3631_v61 }
 0x202   :  { %1068 = vmatpush.bf16.msra.mxu0 %v2569_v17  ;;  %1081 = vmatpush.bf16.msra.mxu1 %v3632_v3 }
 0x203   :  { %1094 = vmatpush.bf16.msra.mxu2 %v3633_v43  ;;  %1107 = vmatpush.bf16.msra.mxu3 %v2576_v26  ;;  %v3675_v26 = vld [vmem:[#allocation53_spill] sm:$0xff] }
 0x206   :  { %1069 = vmatpush.bf16.msra.mxu0 %v3634_v31  ;;  %1082 = vmatpush.bf16.msra.mxu1 %v3648_v12  ;;  %v3674_v12 = vld [vmem:[#allocation42_spill] sm:$0xff] }
 0x207   :  { %1095 = vmatpush.bf16.msra.mxu2 %v3649_v36  ;;  %1108 = vmatpush.bf16.msra.mxu3 %v3650_v27  ;;  %v3673_v36 = vld [vmem:[#allocation41_spill] sm:$0xff] }
 0x20a   :  { %1070 = vmatpush.bf16.msra.mxu0 %v3651_v60  ;;  %1083 = vmatpush.bf16.msra.mxu1 %v3652_v1  ;;  %v3671_v1 = vld [vmem:[#allocation39_spill] sm:$0xff]  ;;  %v3672_v60 = vld [vmem:[#allocation40_spill] sm:$0xff] }
 0x20b   :  { %1096 = vmatpush.bf16.msra.mxu2 %v3653_v35  ;;  %1109 = vmatpush.bf16.msra.mxu3 %v3654_v39  ;;  %v3664_v35 = vld [vmem:[#allocation32_spill] sm:$0xff]  ;;  %v3665_v39 = vld [vmem:[#allocation33_spill] sm:$0xff] }
 0x20e   :  { %1071 = vmatpush.bf16.msra.mxu0 %v3655_v45  ;;  %1084 = vmatpush.bf16.msra.mxu1 %v3656_v10  ;;  %v3666_v45 = vld [vmem:[#allocation34_spill] sm:$0xff]  ;;  %v3667_v10 = vld [vmem:[#allocation35_spill] sm:$0xff] }
 0x20f   :  { %1097 = vmatpush.bf16.msra.mxu2 %v3657_v23  ;;  %1110 = vmatpush.bf16.msra.mxu3 %v3658_v49  ;;  %v3668_v23 = vld [vmem:[#allocation36_spill] sm:$0xff]  ;;  %v3669_v49 = vld [vmem:[#allocation37_spill] sm:$0xff] }
 0x212   :  { %1072 = vmatpush.bf16.msra.mxu0 %v3659_v34  ;;  %1085 = vmatpush.bf16.msra.mxu1 %v3660_v28  ;;  %v3670_v34 = vld [vmem:[#allocation38_spill] sm:$0xff] }
 0x213   :  { %1098 = vmatpush.bf16.msra.mxu2 %v3661_v29  ;;  %1111 = vmatpush.bf16.msra.mxu3 %v3662_v50 }
 0x216   :  { %1073 = vmatpush.bf16.msra.mxu0 %v3663_v11  ;;  %1086 = vmatpush.bf16.msra.mxu1 %v3664_v35 }
 0x217   :  { %1099 = vmatpush.bf16.msra.mxu2 %v3665_v39  ;;  %1112 = vmatpush.bf16.msra.mxu3 %v3666_v45  ;;  %v2990_v39 = vpop.permute.xlu2 %62 }
 0x218   :  { %v102_v43 = vmul.f32 %v3675_v26, %v2990_v39 }
 0x21a   :  { %1074 = vmatpush.bf16.msra.mxu0 %v3667_v10  ;;  %1087 = vmatpush.bf16.msra.mxu1 %v3668_v23 }
 0x21b   :  { %1100 = vmatpush.bf16.msra.mxu2 %v3669_v49  ;;  %1113 = vmatpush.bf16.msra.mxu3 %v3670_v34 }
 0x259   :  { %v842_v28 = vpop.f32.mrf.mxu0  ;;  %v855_v29 = vpop.f32.mrf.mxu1 }
 0x25a   :  { %v843_v50 = vadd.f32 %v842_v28, %v3671_v1  ;;  %v856_v11 = vadd.f32 %v855_v29, %v3672_v60  ;;  %v3676_v28 = vld [vmem:[#allocation54_spill] sm:$0xff]  ;;  %v143_v1 = vadd.f32 %v3641_v48, %v102_v43 }
 0x25b   :  { %v103_v29 = vmul.f32 %v3676_v28, %v2990_v39  ;;  %v3677_v28 = vld [vmem:[#allocation57_spill] sm:$0xff] }
 0x25c   :  { %v885_v27 = vmul.f32 0.5, %v843_v50  ;;  %v886_v35 = vmul.f32 0.5, %v856_v11 }
 0x25e   :  { %2343 = vtanh.f32 %v885_v27 }
 0x25f   :  { %2345 = vtanh.f32 %v886_v35 }
 0x260   :  { %v868_v45 = vpop.f32.mrf.mxu2  ;;  %v881_v10 = vpop.f32.mrf.mxu3 }
 0x261   :  { %v869_v23 = vadd.f32 %v868_v45, %v3673_v36  ;;  %v882_v49 = vadd.f32 %v881_v10, %v3674_v12  ;;  %v844_v31 = vpop.f32.mrf.mxu0  ;;  %v857_v34 = vpop.f32.mrf.mxu1  ;;  %v144_v45 = vadd.f32 %v2777_v37, %v103_v29 }
 0x263   :  { %2347 = vtanh.f32 %v869_v23  ;;  %v894_v27 = vmul.f32 0.5, %v882_v49  ;;  %v104_v23 = vmul.f32 %v3677_v28, %v2990_v39 }
 0x264   :  { %v2344_v50 = vpop.eup %2343 }
 0x265   :  { %v2346_v35 = vpop.eup %2345  ;;  %v889_v11 = vmul.f32 0.5, %v2344_v50  ;;  %2349 = vtanh.f32 %v894_v27 }
 0x266   :  { %v890_v60 = vmul.f32 0.5, %v2346_v35 }
 0x267   :  { %v891_v36 = vadd.f32 0.5, %v889_v11 }
 0x268   :  { %v892_v10 = vadd.f32 0.5, %v890_v60  ;;  %v870_v31 = vpop.f32.mrf.mxu2  ;;  %v883_v34 = vpop.f32.mrf.mxu3  ;;  %v145_v60 = vadd.f32 %v2794_v30, %v104_v23 }
 0x269   :  { %v2348_v12 = vpop.eup %2347  ;;  %v920_v26 = vpop.f32.mrf.mxu0 }
 0x26a   :  { %v933_v3 = vpop.f32.mrf.mxu1  ;;  %v898_v49 = vmul.f32 %v892_v10, %v2910_v44  ;;  %v899_v17 = vmul.f32 %v2348_v12, %v891_v36  ;;  %v963_v50 = vadd.f32 %v920_v26, %v143_v1 }
 0x26b   :  { %v964_v35 = vadd.f32 %v933_v3, %v144_v45  ;;  %v2350_v27 = vpop.eup %2349 }
 0x26c   :  { %v3003_v61 = vadd.f32 %v899_v17, %v898_v49  ;;  %v967_v43 = vmul.f32 0.5, %v963_v50  ;;  %v896_v34 = vmul.f32 0.5, %v2350_v27 }
 0x26d   :  { %v968_v29 = vmul.f32 0.5, %v964_v35 }
 0x26e   :  { %2351 = vtanh.f32 %v967_v43  ;;  %v897_v17 = vadd.f32 0.5, %v896_v34 }
 0x26f   :  { %2353 = vtanh.f32 %v968_v29 }
 0x270   :  { %v946_v11 = vpop.f32.mrf.mxu2  ;;  %v959_v31 = vpop.f32.mrf.mxu3  ;;  %2355 = vtanh.f32 %v3003_v61 }
 0x271   :  { %v965_v28 = vadd.f32 %v946_v11, %v145_v60  ;;  %v922_v37 = vpop.f32.mrf.mxu0  ;;  %v105_v60 = vmul.f32 %v3642_v46, %v2990_v39 }
 0x272   :  { %v935_v44 = vpop.f32.mrf.mxu1 }
 0x273   :  { %2357 = vtanh.f32 %v965_v28  ;;  %v40_v28 = vld [vmem:[%s3446_s0 + $0x20] sm:$0xff]  ;;  %v146_v27 = vadd.f32 %v3643_v51, %v105_v60 }
 0x274   :  { %v2352_v26 = vpop.eup %2351  ;;  %v3688_v60 = vld [vmem:[#allocation20_spill] sm:$0xff] }
 0x275   :  { %v2354_v3 = vpop.eup %2353  ;;  %v971_v12 = vmul.f32 0.5, %v2352_v26  ;;  %v966_v11 = vadd.f32 %v959_v31, %v146_v27  ;;  %v3678_v31 = vld [vmem:[#allocation10_spill] sm:$0xff]  ;;  %v3689_v27 = vld [vmem:[#allocation21_spill] sm:$0xff] }
 0x276   :  { %v2356_v36 = vpop.eup %2355  ;;  %v972_v1 = vmul.f32 0.5, %v2354_v3 }
 0x277   :  { %v973_v45 = vadd.f32 0.5, %v971_v12  ;;  %v902_v10 = vmul.f32 %v2356_v36, %v897_v17  ;;  %v976_v34 = vmul.f32 0.5, %v966_v11  ;;  %v3690_v11 = vld [vmem:[#allocation22_spill] sm:$0xff] }
 0x278   :  { %v974_v23 = vadd.f32 0.5, %v972_v1  ;;  %v948_v49 = vpop.f32.mrf.mxu2  ;;  %v961_v50 = vpop.f32.mrf.mxu3 }
 0x279   :  { %v2358_v35 = vpop.eup %2357  ;;  %985 = vrot.lane.b32.xlu2 %v902_v10, %s2530_s20  ;;  %2359 = vtanh.f32 %v976_v34  ;;  %v3680_v10 = vld [vmem:[#allocation12_spill] sm:$0xff]  ;;  %v3682_v49 = vld [vmem:[#allocation14_spill] sm:$0xff]  ;;  %v3683_v50 = vld [vmem:[#allocation15_spill] sm:$0xff] }
 0x27a   :  { %v980_v43 = vmul.f32 %v974_v23, %v2916_v9  ;;  %v981_v29 = vmul.f32 %v2358_v35, %v973_v45  ;;  %v3679_v45 = vld [vmem:[#allocation11_spill] sm:$0xff]  ;;  %v3681_v23 = vld [vmem:[#allocation13_spill] sm:$0xff]  ;;  %v3684_v35 = vld [vmem:[#allocation16_spill] sm:$0xff] }
 0x27b   :  { %v3691_v34 = vld [vmem:[#allocation23_spill] sm:$0xff] }
 0x27c   :  { %v3009_v37 = vadd.f32 %v981_v29, %v980_v43  ;;  %v3685_v43 = vld [vmem:[#allocation17_spill] sm:$0xff]  ;;  %v3686_v29 = vld [vmem:[#allocation18_spill] sm:$0xff] }
 0x27e   :  { %2361 = vtanh.f32 %v3009_v37 }
 0x27f   :  { %v2360_v44 = vpop.eup %2359 }
 0x280   :  { %v978_v9 = vmul.f32 0.5, %v2360_v44  ;;  %v3692_v44 = vld [vmem:[#allocation24_spill] sm:$0xff] }
 0x281   :  { %72 = vperm.xlu2 %2312, %v40_v28   ;;  %v3687_v28 = vld [vmem:[#allocation19_spill] sm:$0xff] }
 0x282   :  { %v979_v3 = vadd.f32 0.5, %v978_v9  ;;  %v3693_v9 = vld [vmem:[#allocation25_spill] sm:$0xff] }
 0x284   :  { %v2362_v26 = vpop.eup %2361 }
 0x285   :  { %v984_v17 = vmul.f32 %v2362_v26, %v979_v3  ;;  %v3694_v26 = vld [vmem:[#allocation26_spill] sm:$0xff]  ;;  %v3695_v3 = vld [vmem:[#allocation27_spill] sm:$0xff] }
 0x287   :  { %v1066_v39 = vpack.c.bf16 %v984_v17, %v984_v17 }
 0x2d3   :  { %v986_v12 = vpop.permute.xlu2 %985 }
 0x2d4   :  { %v987_v36 = vadd.f32 %v986_v12, %v984_v17  ;;  %v3696_v17 = vld [vmem:[#allocation28_spill] sm:$0xff]  ;;  %v3697_v12 = vld [vmem:[#allocation29_spill] sm:$0xff] }
 0x2d6   :  { %v988_v1 = vpack.c.bf16 %v987_v36, %v987_v36  ;;  %v3698_v36 = vld [vmem:[#allocation30_spill] sm:$0xff] }
 0x2d8   :  { %997 = vmatmul.bf16.vlgmr.msrb.gmra.mxu0 %v988_v1  ;;  %1010 = vmatmul.bf16.vlgmr.msrb.gmra.mxu1 %v988_v1 }
 0x2d9   :  { %1023 = vmatmul.bf16.vlgmr.msrb.gmra.mxu2 %v988_v1  ;;  %1036 = vmatmul.bf16.vlgmr.msrb.gmra.mxu3 %v988_v1  ;;  %v3699_v1 = vld [vmem:[#allocation31_spill] sm:$0xff] }
 0x2da   :  { %1145 = vmatpush.bf16.msrb.mxu0 %v2665_v56  ;;  %1158 = vmatpush.bf16.msrb.mxu1 %v2667_v63 }
 0x2db   :  { %1171 = vmatpush.bf16.msrb.mxu2 %v2669_v2  ;;  %1184 = vmatpush.bf16.msrb.mxu3 %v2672_v7 }
 0x2de   :  { %1146 = vmatpush.bf16.msrb.mxu0 %v2676_v16  ;;  %1159 = vmatpush.bf16.msrb.mxu1 %v2678_v20 }
 0x2df   :  { %1172 = vmatpush.bf16.msrb.mxu2 %v2681_v25  ;;  %1185 = vmatpush.bf16.msrb.mxu3 %v2683_v32 }
 0x2e2   :  { %1147 = vmatpush.bf16.msrb.mxu0 %v2689_v40  ;;  %1160 = vmatpush.bf16.msrb.mxu1 %v2691_v52 }
 0x2e3   :  { %1173 = vmatpush.bf16.msrb.mxu2 %v2693_v53  ;;  %1186 = vmatpush.bf16.msrb.mxu3 %v2696_v58 }
 0x2e6   :  { %1148 = vmatpush.bf16.msrb.mxu0 %v2701_v5  ;;  %1161 = vmatpush.bf16.msrb.mxu1 %v2703_v15 }
 0x2e7   :  { %1174 = vmatpush.bf16.msrb.mxu2 %v2705_v21  ;;  %1187 = vmatpush.bf16.msrb.mxu3 %v3619_v38 }
 0x2e8   :  { %1075 = vmatmul.bf16.vlgmr.msra.gmra.mxu0 %v1066_v39  ;;  %1088 = vmatmul.bf16.vlgmr.msra.gmra.mxu1 %v1066_v39 }
 0x2e9   :  { %1101 = vmatmul.bf16.vlgmr.msra.gmra.mxu2 %v1066_v39  ;;  %1114 = vmatmul.bf16.vlgmr.msra.gmra.mxu3 %v1066_v39  ;;  %v3700_v39 = vld [vmem:[#allocation32_spill] sm:$0xff] }
 0x2ea   :  { %1149 = vmatpush.bf16.msrb.mxu0 %v3620_v55  ;;  %1162 = vmatpush.bf16.msrb.mxu1 %v3621_v42 }
 0x2eb   :  { %1175 = vmatpush.bf16.msrb.mxu2 %v3622_v62  ;;  %1188 = vmatpush.bf16.msrb.mxu3 %v3623_v33 }
 0x2ee   :  { %1150 = vmatpush.bf16.msrb.mxu0 %v3624_v13  ;;  %1163 = vmatpush.bf16.msrb.mxu1 %v3625_v41 }
 0x2ef   :  { %1176 = vmatpush.bf16.msrb.mxu2 %v3626_v18  ;;  %1189 = vmatpush.bf16.msrb.mxu3 %v3627_v22 }
 0x2f2   :  { %1151 = vmatpush.bf16.msrb.mxu0 %v3644_v47  ;;  %1164 = vmatpush.bf16.msrb.mxu1 %v3628_v6 }
 0x2f3   :  { %1177 = vmatpush.bf16.msrb.mxu2 %v3645_v59  ;;  %1190 = vmatpush.bf16.msrb.mxu3 %v3646_v57 }
 0x2f6   :  { %1152 = vmatpush.bf16.msrb.mxu0 %v2749_v14  ;;  %1165 = vmatpush.bf16.msrb.mxu1 %v3647_v19 }
 0x2f7   :  { %1178 = vmatpush.bf16.msrb.mxu2 %v2753_v54  ;;  %1191 = vmatpush.bf16.msrb.mxu3 %v2756_v24 }
 0x2fa   :  { %1223 = vmatpush.bf16.msra.mxu0 %v2558_v4  ;;  %1236 = vmatpush.bf16.msra.mxu1 %v2560_v8 }
 0x2fb   :  { %1249 = vmatpush.bf16.msra.mxu2 %v3630_v0  ;;  %1262 = vmatpush.bf16.msra.mxu3 %v3678_v31 }
 0x2fe   :  { %1224 = vmatpush.bf16.msra.mxu0 %v3679_v45  ;;  %1237 = vmatpush.bf16.msra.mxu1 %v3680_v10 }
 0x2ff   :  { %1250 = vmatpush.bf16.msra.mxu2 %v3681_v23  ;;  %1263 = vmatpush.bf16.msra.mxu3 %v3682_v49 }
 0x302   :  { %1225 = vmatpush.bf16.msra.mxu0 %v3683_v50  ;;  %1238 = vmatpush.bf16.msra.mxu1 %v3684_v35 }
 0x303   :  { %1251 = vmatpush.bf16.msra.mxu2 %v3685_v43  ;;  %1264 = vmatpush.bf16.msra.mxu3 %v3686_v29  ;;  %v3709_v29 = vld [vmem:[#allocation41_spill] sm:$0xff]  ;;  %v3710_v43 = vld [vmem:[#allocation42_spill] sm:$0xff] }
 0x306   :  { %1226 = vmatpush.bf16.msra.mxu0 %v3687_v28  ;;  %1239 = vmatpush.bf16.msra.mxu1 %v3688_v60  ;;  %v3708_v60 = vld [vmem:[#allocation40_spill] sm:$0xff] }
 0x307   :  { %1252 = vmatpush.bf16.msra.mxu2 %v3689_v27  ;;  %1265 = vmatpush.bf16.msra.mxu3 %v3690_v11  ;;  %v3701_v11 = vld [vmem:[#allocation33_spill] sm:$0xff]  ;;  %v3707_v27 = vld [vmem:[#allocation39_spill] sm:$0xff] }
 0x30a   :  { %1227 = vmatpush.bf16.msra.mxu0 %v3691_v34  ;;  %1240 = vmatpush.bf16.msra.mxu1 %v3692_v44  ;;  %v3702_v34 = vld [vmem:[#allocation34_spill] sm:$0xff]  ;;  %v3703_v44 = vld [vmem:[#allocation35_spill] sm:$0xff] }
 0x30b   :  { %1253 = vmatpush.bf16.msra.mxu2 %v3693_v9  ;;  %1266 = vmatpush.bf16.msra.mxu3 %v3694_v26  ;;  %v3704_v9 = vld [vmem:[#allocation36_spill] sm:$0xff]  ;;  %v3705_v26 = vld [vmem:[#allocation37_spill] sm:$0xff] }
 0x30e   :  { %1228 = vmatpush.bf16.msra.mxu0 %v3695_v3  ;;  %1241 = vmatpush.bf16.msra.mxu1 %v3696_v17  ;;  %v3706_v3 = vld [vmem:[#allocation38_spill] sm:$0xff] }
 0x30f   :  { %1254 = vmatpush.bf16.msra.mxu2 %v3697_v12  ;;  %1267 = vmatpush.bf16.msra.mxu3 %v3698_v36 }
 0x312   :  { %1229 = vmatpush.bf16.msra.mxu0 %v3699_v1  ;;  %1242 = vmatpush.bf16.msra.mxu1 %v3700_v39 }
 0x313   :  { %1255 = vmatpush.bf16.msra.mxu2 %v3701_v11  ;;  %1268 = vmatpush.bf16.msra.mxu3 %v3702_v34  ;;  %v3084_v11 = vpop.permute.xlu0 %67 }
 0x316   :  { %1230 = vmatpush.bf16.msra.mxu0 %v3703_v44  ;;  %1243 = vmatpush.bf16.msra.mxu1 %v3704_v9 }
 0x317   :  { %1256 = vmatpush.bf16.msra.mxu2 %v3705_v26  ;;  %1269 = vmatpush.bf16.msra.mxu3 %v3706_v3 }
 0x355   :  { %v998_v17 = vpop.f32.mrf.mxu0  ;;  %v1011_v12 = vpop.f32.mrf.mxu1 }
 0x356   :  { %v999_v36 = vadd.f32 %v998_v17, %v3707_v27  ;;  %v1012_v1 = vadd.f32 %v1011_v12, %v3708_v60  ;;  %v3711_v17 = vld [vmem:[#allocation53_spill] sm:$0xff] }
 0x357   :  { %v106_v12 = vmul.f32 %v3711_v17, %v3084_v11 }
 0x358   :  { %v1041_v28 = vmul.f32 0.5, %v999_v36  ;;  %v1042_v39 = vmul.f32 0.5, %v1012_v1  ;;  %v3712_v36 = vld [vmem:[#allocation54_spill] sm:$0xff] }
 0x35a   :  { %2363 = vtanh.f32 %v1041_v28  ;;  %v107_v28 = vmul.f32 %v3712_v36, %v3084_v11 }
 0x35b   :  { %2365 = vtanh.f32 %v1042_v39 }
 0x35c   :  { %v1024_v34 = vpop.f32.mrf.mxu2  ;;  %v1037_v44 = vpop.f32.mrf.mxu3 }
 0x35d   :  { %v1025_v9 = vadd.f32 %v1024_v34, %v3709_v29  ;;  %v1038_v26 = vadd.f32 %v1037_v44, %v3710_v43  ;;  %v1000_v35 = vpop.f32.mrf.mxu0  ;;  %v1013_v3 = vpop.f32.mrf.mxu1  ;;  %v3713_v44 = vld [vmem:[#allocation56_spill] sm:$0xff] }
 0x35e   :  { %v147_v35 = vadd.f32 %v3641_v48, %v106_v12 }
 0x35f   :  { %2367 = vtanh.f32 %v1025_v9  ;;  %v1050_v49 = vmul.f32 0.5, %v1038_v26  ;;  %v148_v9 = vadd.f32 %v3713_v44, %v107_v28 }
 0x360   :  { %v2364_v50 = vpop.eup %2363 }
 0x361   :  { %v2366_v1 = vpop.eup %2365  ;;  %v1045_v60 = vmul.f32 0.5, %v2364_v50  ;;  %2369 = vtanh.f32 %v1050_v49  ;;  %v3714_v50 = vld [vmem:[#allocation57_spill] sm:$0xff] }
 0x362   :  { %v1046_v39 = vmul.f32 0.5, %v2366_v1  ;;  %v108_v1 = vmul.f32 %v3714_v50, %v3084_v11 }
 0x363   :  { %v1047_v27 = vadd.f32 0.5, %v1045_v60 }
 0x364   :  { %v1048_v23 = vadd.f32 0.5, %v1046_v39  ;;  %v1026_v34 = vpop.f32.mrf.mxu2  ;;  %v1039_v29 = vpop.f32.mrf.mxu3  ;;  %v149_v12 = vadd.f32 %v2794_v30, %v108_v1 }
 0x365   :  { %v2368_v3 = vpop.eup %2367  ;;  %v1076_v26 = vpop.f32.mrf.mxu0 }
 0x366   :  { %v1089_v43 = vpop.f32.mrf.mxu1  ;;  %v1054_v17 = vmul.f32 %v1048_v23, %v3003_v61  ;;  %v1055_v10 = vmul.f32 %v2368_v3, %v1047_v27  ;;  %v1119_v45 = vadd.f32 %v1076_v26, %v147_v35 }
 0x367   :  { %v1120_v36 = vadd.f32 %v1089_v43, %v148_v9  ;;  %v2370_v29 = vpop.eup %2369 }
 0x368   :  { %v3097_v60 = vadd.f32 %v1055_v10, %v1054_v17  ;;  %v1123_v49 = vmul.f32 0.5, %v1119_v45  ;;  %v1052_v61 = vmul.f32 0.5, %v2370_v29 }
 0x369   :  { %v1124_v39 = vmul.f32 0.5, %v1120_v36 }
 0x36a   :  { %2371 = vtanh.f32 %v1123_v49  ;;  %v1053_v10 = vadd.f32 0.5, %v1052_v61  ;;  %v41_v61 = vld [vmem:[%s3446_s0 + $0x28] sm:$0xff] }
 0x36b   :  { %2373 = vtanh.f32 %v1124_v39 }
 0x36c   :  { %v1102_v28 = vpop.f32.mrf.mxu2  ;;  %v1115_v34 = vpop.f32.mrf.mxu3  ;;  %2375 = vtanh.f32 %v3097_v60 }
 0x36d   :  { %v1121_v23 = vadd.f32 %v1102_v28, %v149_v12  ;;  %v1078_v27 = vpop.f32.mrf.mxu0 }
 0x36e   :  { %v1091_v43 = vpop.f32.mrf.mxu1 }
 0x36f   :  { %2377 = vtanh.f32 %v1121_v23  ;;  %v109_v23 = vmul.f32 %v3642_v46, %v3084_v11 }
 0x370   :  { %v2372_v35 = vpop.eup %2371 }
 0x371   :  { %v2374_v9 = vpop.eup %2373  ;;  %v1127_v17 = vmul.f32 0.5, %v2372_v35  ;;  %v150_v27 = vadd.f32 %v3643_v51, %v109_v23  ;;  %v3723_v23 = vld [vmem:[#allocation19_spill] sm:$0xff] }
 0x372   :  { %v2376_v45 = vpop.eup %2375  ;;  %v1128_v36 = vmul.f32 0.5, %v2374_v9 }
 0x373   :  { %v1129_v3 = vadd.f32 0.5, %v1127_v17  ;;  %v1058_v26 = vmul.f32 %v2376_v45, %v1053_v10  ;;  %v1122_v43 = vadd.f32 %v1115_v34, %v150_v27  ;;  %v3715_v34 = vld [vmem:[#allocation11_spill] sm:$0xff]  ;;  %v3724_v27 = vld [vmem:[#allocation20_spill] sm:$0xff] }
 0x374   :  { %v1130_v49 = vadd.f32 0.5, %v1128_v36  ;;  %v1104_v39 = vpop.f32.mrf.mxu2  ;;  %v1117_v1 = vpop.f32.mrf.mxu3 }
 0x375   :  { %v2378_v30 = vpop.eup %2377  ;;  %1141 = vrot.lane.b32.xlu1 %v1058_v26, %s2530_s20  ;;  %v1132_v35 = vmul.f32 0.5, %v1122_v43  ;;  %v3716_v26 = vld [vmem:[#allocation12_spill] sm:$0xff]  ;;  %v3718_v39 = vld [vmem:[#allocation14_spill] sm:$0xff]  ;;  %v3719_v1 = vld [vmem:[#allocation15_spill] sm:$0xff] }
 0x376   :  { %v1136_v29 = vmul.f32 %v1130_v49, %v3009_v37  ;;  %v1137_v12 = vmul.f32 %v2378_v30, %v1129_v3  ;;  %v3717_v49 = vld [vmem:[#allocation13_spill] sm:$0xff] }
 0x377   :  { %2379 = vtanh.f32 %v1132_v35  ;;  %v3725_v43 = vld [vmem:[#allocation21_spill] sm:$0xff]  ;;  %v3726_v35 = vld [vmem:[#allocation22_spill] sm:$0xff] }
 0x378   :  { %v3103_v28 = vadd.f32 %v1137_v12, %v1136_v29  ;;  %v3720_v29 = vld [vmem:[#allocation16_spill] sm:$0xff]  ;;  %v3721_v12 = vld [vmem:[#allocation17_spill] sm:$0xff] }
 0x37a   :  { %2381 = vtanh.f32 %v3103_v28 }
 0x37d   :  { %77 = vperm.xlu1 %2311, %v41_v61   ;;  %v2380_v9 = vpop.eup %2379  ;;  %v3722_v61 = vld [vmem:[#allocation18_spill] sm:$0xff] }
 0x37e   :  { %v1134_v37 = vmul.f32 0.5, %v2380_v9  ;;  %v3727_v9 = vld [vmem:[#allocation23_spill] sm:$0xff] }
 0x380   :  { %v2382_v30 = vpop.eup %2381  ;;  %v1135_v10 = vadd.f32 0.5, %v1134_v37  ;;  %v3728_v37 = vld [vmem:[#allocation24_spill] sm:$0xff] }
 0x382   :  { %v1140_v17 = vmul.f32 %v2382_v30, %v1135_v10  ;;  %v3729_v30 = vld [vmem:[#allocation25_spill] sm:$0xff]  ;;  %v3730_v10 = vld [vmem:[#allocation26_spill] sm:$0xff] }
 0x384   :  { %v1222_v11 = vpack.c.bf16 %v1140_v17, %v1140_v17 }
 0x3e7   :  { %v1142_v45 = vpop.permute.xlu1 %1141 }
 0x3e8   :  { %v1143_v36 = vadd.f32 %v1142_v45, %v1140_v17  ;;  %v3731_v17 = vld [vmem:[#allocation27_spill] sm:$0xff]  ;;  %v3732_v45 = vld [vmem:[#allocation28_spill] sm:$0xff] }
 0x3ea   :  { %v1144_v3 = vpack.c.bf16 %v1143_v36, %v1143_v36  ;;  %v3733_v36 = vld [vmem:[#allocation29_spill] sm:$0xff] }
 0x3ec   :  { %1153 = vmatmul.bf16.vlgmr.msrb.gmra.mxu0 %v1144_v3  ;;  %1166 = vmatmul.bf16.vlgmr.msrb.gmra.mxu1 %v1144_v3 }
 0x3ed   :  { %1179 = vmatmul.bf16.vlgmr.msrb.gmra.mxu2 %v1144_v3  ;;  %1192 = vmatmul.bf16.vlgmr.msrb.gmra.mxu3 %v1144_v3  ;;  %v3734_v3 = vld [vmem:[#allocation30_spill] sm:$0xff] }
 0x3ee   :  { %1301 = vmatpush.bf16.msrb.mxu0 %v2665_v56  ;;  %1314 = vmatpush.bf16.msrb.mxu1 %v2667_v63 }
 0x3ef   :  { %1327 = vmatpush.bf16.msrb.mxu2 %v2669_v2  ;;  %1340 = vmatpush.bf16.msrb.mxu3 %v2672_v7 }
 0x3f2   :  { %1302 = vmatpush.bf16.msrb.mxu0 %v2676_v16  ;;  %1315 = vmatpush.bf16.msrb.mxu1 %v2678_v20 }
 0x3f3   :  { %1328 = vmatpush.bf16.msrb.mxu2 %v2681_v25  ;;  %1341 = vmatpush.bf16.msrb.mxu3 %v2683_v32 }
 0x3f6   :  { %1303 = vmatpush.bf16.msrb.mxu0 %v2689_v40  ;;  %1316 = vmatpush.bf16.msrb.mxu1 %v2691_v52 }
 0x3f7   :  { %1329 = vmatpush.bf16.msrb.mxu2 %v2693_v53  ;;  %1342 = vmatpush.bf16.msrb.mxu3 %v2696_v58 }
 0x3fa   :  { %1304 = vmatpush.bf16.msrb.mxu0 %v2701_v5  ;;  %1317 = vmatpush.bf16.msrb.mxu1 %v2703_v15 }
 0x3fb   :  { %1330 = vmatpush.bf16.msrb.mxu2 %v2705_v21  ;;  %1343 = vmatpush.bf16.msrb.mxu3 %v3619_v38 }
 0x3fc   :  { %1231 = vmatmul.bf16.vlgmr.msra.gmra.mxu0 %v1222_v11  ;;  %1244 = vmatmul.bf16.vlgmr.msra.gmra.mxu1 %v1222_v11 }
 0x3fd   :  { %1257 = vmatmul.bf16.vlgmr.msra.gmra.mxu2 %v1222_v11  ;;  %1270 = vmatmul.bf16.vlgmr.msra.gmra.mxu3 %v1222_v11  ;;  %v3735_v11 = vld [vmem:[#allocation31_spill] sm:$0xff] }
 0x3fe   :  { %1305 = vmatpush.bf16.msrb.mxu0 %v3620_v55  ;;  %1318 = vmatpush.bf16.msrb.mxu1 %v3621_v42 }
 0x3ff   :  { %1331 = vmatpush.bf16.msrb.mxu2 %v3622_v62  ;;  %1344 = vmatpush.bf16.msrb.mxu3 %v3623_v33 }
 0x402   :  { %1306 = vmatpush.bf16.msrb.mxu0 %v3624_v13  ;;  %1319 = vmatpush.bf16.msrb.mxu1 %v3625_v41 }
 0x403   :  { %1332 = vmatpush.bf16.msrb.mxu2 %v3626_v18  ;;  %1345 = vmatpush.bf16.msrb.mxu3 %v3627_v22 }
 0x406   :  { %1307 = vmatpush.bf16.msrb.mxu0 %v3644_v47  ;;  %1320 = vmatpush.bf16.msrb.mxu1 %v3628_v6 }
 0x407   :  { %1333 = vmatpush.bf16.msrb.mxu2 %v3645_v59  ;;  %1346 = vmatpush.bf16.msrb.mxu3 %v3646_v57 }
 0x40a   :  { %1308 = vmatpush.bf16.msrb.mxu0 %v2749_v14  ;;  %1321 = vmatpush.bf16.msrb.mxu1 %v3647_v19 }
 0x40b   :  { %1334 = vmatpush.bf16.msrb.mxu2 %v2753_v54  ;;  %1347 = vmatpush.bf16.msrb.mxu3 %v2756_v24 }
 0x40e   :  { %1379 = vmatpush.bf16.msra.mxu0 %v2558_v4  ;;  %1392 = vmatpush.bf16.msra.mxu1 %v2560_v8 }
 0x40f   :  { %1405 = vmatpush.bf16.msra.mxu2 %v3630_v0  ;;  %1418 = vmatpush.bf16.msra.mxu3 %v3678_v31 }
 0x412   :  { %1380 = vmatpush.bf16.msra.mxu0 %v3715_v34  ;;  %1393 = vmatpush.bf16.msra.mxu1 %v3716_v26 }
 0x413   :  { %1406 = vmatpush.bf16.msra.mxu2 %v3717_v49  ;;  %1419 = vmatpush.bf16.msra.mxu3 %v3718_v39 }
 0x416   :  { %1381 = vmatpush.bf16.msra.mxu0 %v3719_v1  ;;  %1394 = vmatpush.bf16.msra.mxu1 %v3720_v29  ;;  %v3746_v29 = vld [vmem:[#allocation42_spill] sm:$0xff] }
 0x417   :  { %1407 = vmatpush.bf16.msra.mxu2 %v3721_v12  ;;  %1420 = vmatpush.bf16.msra.mxu3 %v3722_v61  ;;  %v3745_v12 = vld [vmem:[#allocation41_spill] sm:$0xff] }
 0x41a   :  { %1382 = vmatpush.bf16.msra.mxu0 %v3723_v23  ;;  %1395 = vmatpush.bf16.msra.mxu1 %v3724_v27  ;;  %v3743_v27 = vld [vmem:[#allocation39_spill] sm:$0xff]  ;;  %v3744_v23 = vld [vmem:[#allocation40_spill] sm:$0xff] }
 0x41b   :  { %1408 = vmatpush.bf16.msra.mxu2 %v3725_v43  ;;  %1421 = vmatpush.bf16.msra.mxu3 %v3726_v35  ;;  %v3736_v43 = vld [vmem:[#allocation32_spill] sm:$0xff]  ;;  %v3737_v35 = vld [vmem:[#allocation33_spill] sm:$0xff] }
 0x41e   :  { %1383 = vmatpush.bf16.msra.mxu0 %v3727_v9  ;;  %1396 = vmatpush.bf16.msra.mxu1 %v3728_v37  ;;  %v3738_v9 = vld [vmem:[#allocation34_spill] sm:$0xff]  ;;  %v3739_v37 = vld [vmem:[#allocation35_spill] sm:$0xff] }
 0x41f   :  { %1409 = vmatpush.bf16.msra.mxu2 %v3729_v30  ;;  %1422 = vmatpush.bf16.msra.mxu3 %v3730_v10  ;;  %v3740_v30 = vld [vmem:[#allocation36_spill] sm:$0xff]  ;;  %v3741_v10 = vld [vmem:[#allocation37_spill] sm:$0xff] }
 0x422   :  { %1384 = vmatpush.bf16.msra.mxu0 %v3731_v17  ;;  %1397 = vmatpush.bf16.msra.mxu1 %v3732_v45  ;;  %v3742_v17 = vld [vmem:[#allocation38_spill] sm:$0xff] }
 0x423   :  { %1410 = vmatpush.bf16.msra.mxu2 %v3733_v36  ;;  %1423 = vmatpush.bf16.msra.mxu3 %v3734_v3 }
 0x426   :  { %1385 = vmatpush.bf16.msra.mxu0 %v3735_v11  ;;  %1398 = vmatpush.bf16.msra.mxu1 %v3736_v43 }
 0x427   :  { %1411 = vmatpush.bf16.msra.mxu2 %v3737_v35  ;;  %1424 = vmatpush.bf16.msra.mxu3 %v3738_v9  ;;  %v3178_v35 = vpop.permute.xlu2 %72 }
 0x42a   :  { %1386 = vmatpush.bf16.msra.mxu0 %v3739_v37  ;;  %1399 = vmatpush.bf16.msra.mxu1 %v3740_v30 }
 0x42b   :  { %1412 = vmatpush.bf16.msra.mxu2 %v3741_v10  ;;  %1425 = vmatpush.bf16.msra.mxu3 %v3742_v17 }
 0x469   :  { %v1154_v45 = vpop.f32.mrf.mxu0  ;;  %v1167_v36 = vpop.f32.mrf.mxu1 }
 0x46a   :  { %v1155_v3 = vadd.f32 %v1154_v45, %v3743_v27  ;;  %v1168_v11 = vadd.f32 %v1167_v36, %v3744_v23  ;;  %v3747_v45 = vld [vmem:[#allocation53_spill] sm:$0xff] }
 0x46b   :  { %v110_v36 = vmul.f32 %v3747_v45, %v3178_v35 }
 0x46c   :  { %v1197_v61 = vmul.f32 0.5, %v1155_v3  ;;  %v1198_v43 = vmul.f32 0.5, %v1168_v11  ;;  %v3748_v3 = vld [vmem:[#allocation54_spill] sm:$0xff] }
 0x46e   :  { %2383 = vtanh.f32 %v1197_v61  ;;  %v111_v61 = vmul.f32 %v3748_v3, %v3178_v35 }
 0x46f   :  { %2385 = vtanh.f32 %v1198_v43 }
 0x470   :  { %v1180_v9 = vpop.f32.mrf.mxu2  ;;  %v1193_v37 = vpop.f32.mrf.mxu3 }
 0x471   :  { %v1181_v30 = vadd.f32 %v1180_v9, %v3745_v12  ;;  %v1194_v10 = vadd.f32 %v1193_v37, %v3746_v29  ;;  %v1156_v1 = vpop.f32.mrf.mxu0  ;;  %v1169_v17 = vpop.f32.mrf.mxu1  ;;  %v152_v37 = vadd.f32 %v3713_v44, %v111_v61 }
 0x472   :  { %v151_v1 = vadd.f32 %v3641_v48, %v110_v36  ;;  %v3749_v36 = vld [vmem:[#allocation59_spill] sm:$0xff] }
 0x473   :  { %2387 = vtanh.f32 %v1181_v30  ;;  %v1206_v49 = vmul.f32 0.5, %v1194_v10 }
 0x474   :  { %v2384_v39 = vpop.eup %2383 }
 0x475   :  { %v2386_v11 = vpop.eup %2385  ;;  %v1201_v23 = vmul.f32 0.5, %v2384_v39  ;;  %2389 = vtanh.f32 %v1206_v49  ;;  %v112_v39 = vmul.f32 %v3714_v50, %v3178_v35 }
 0x476   :  { %v1202_v43 = vmul.f32 0.5, %v2386_v11 }
 0x477   :  { %v1203_v27 = vadd.f32 0.5, %v1201_v23  ;;  %v153_v61 = vadd.f32 %v3749_v36, %v112_v39 }
 0x478   :  { %v1204_v26 = vadd.f32 0.5, %v1202_v43  ;;  %v1182_v9 = vpop.f32.mrf.mxu2  ;;  %v1195_v12 = vpop.f32.mrf.mxu3 }
 0x479   :  { %v2388_v30 = vpop.eup %2387  ;;  %v1232_v10 = vpop.f32.mrf.mxu0 }
 0x47a   :  { %v1245_v17 = vpop.f32.mrf.mxu1  ;;  %v1210_v45 = vmul.f32 %v1204_v26, %v3097_v60  ;;  %v1211_v29 = vmul.f32 %v2388_v30, %v1203_v27  ;;  %v1275_v34 = vadd.f32 %v1232_v10, %v151_v1 }
 0x47b   :  { %v1276_v3 = vadd.f32 %v1245_v17, %v152_v37  ;;  %v2390_v12 = vpop.eup %2389 }
 0x47c   :  { %v3191_v23 = vadd.f32 %v1211_v29, %v1210_v45  ;;  %v1279_v49 = vmul.f32 0.5, %v1275_v34  ;;  %v1208_v60 = vmul.f32 0.5, %v2390_v12 }
 0x47d   :  { %v1280_v11 = vmul.f32 0.5, %v1276_v3 }
 0x47e   :  { %2391 = vtanh.f32 %v1279_v49  ;;  %v1209_v29 = vadd.f32 0.5, %v1208_v60  ;;  %v42_v60 = vld [vmem:[%s3446_s0 + $0x30] sm:$0xff] }
 0x47f   :  { %2393 = vtanh.f32 %v1280_v11 }
 0x480   :  { %v1258_v43 = vpop.f32.mrf.mxu2  ;;  %v1271_v9 = vpop.f32.mrf.mxu3  ;;  %2395 = vtanh.f32 %v3191_v23 }
 0x481   :  { %v1277_v26 = vadd.f32 %v1258_v43, %v153_v61  ;;  %v1234_v27 = vpop.f32.mrf.mxu0 }
 0x482   :  { %v1247_v1 = vpop.f32.mrf.mxu1 }
 0x483   :  { %2397 = vtanh.f32 %v1277_v26  ;;  %v113_v26 = vmul.f32 %v3642_v46, %v3178_v35 }
 0x484   :  { %v2392_v37 = vpop.eup %2391 }
 0x485   :  { %v2394_v30 = vpop.eup %2393  ;;  %v1283_v45 = vmul.f32 0.5, %v2392_v37  ;;  %v154_v27 = vadd.f32 %v3643_v51, %v113_v26  ;;  %v3758_v26 = vld [vmem:[#allocation19_spill] sm:$0xff] }
 0x486   :  { %v2396_v34 = vpop.eup %2395  ;;  %v1284_v3 = vmul.f32 0.5, %v2394_v30 }
 0x487   :  { %v1285_v10 = vadd.f32 0.5, %v1283_v45  ;;  %v1214_v17 = vmul.f32 %v2396_v34, %v1209_v29  ;;  %v1278_v1 = vadd.f32 %v1271_v9, %v154_v27  ;;  %v3750_v9 = vld [vmem:[#allocation11_spill] sm:$0xff]  ;;  %v3759_v27 = vld [vmem:[#allocation20_spill] sm:$0xff] }
 0x488   :  { %v1286_v49 = vadd.f32 0.5, %v1284_v3  ;;  %v1260_v11 = vpop.f32.mrf.mxu2  ;;  %v1273_v39 = vpop.f32.mrf.mxu3 }
 0x489   :  { %v2398_v36 = vpop.eup %2397  ;;  %1297 = vrot.lane.b32.xlu0 %v1214_v17, %s2530_s20  ;;  %v1288_v37 = vmul.f32 0.5, %v1278_v1  ;;  %v3751_v17 = vld [vmem:[#allocation12_spill] sm:$0xff]  ;;  %v3753_v11 = vld [vmem:[#allocation14_spill] sm:$0xff]  ;;  %v3754_v39 = vld [vmem:[#allocation15_spill] sm:$0xff] }
 0x48a   :  { %v1292_v12 = vmul.f32 %v1286_v49, %v3103_v28  ;;  %v1293_v61 = vmul.f32 %v2398_v36, %v1285_v10  ;;  %v3752_v49 = vld [vmem:[#allocation13_spill] sm:$0xff] }
 0x48b   :  { %2399 = vtanh.f32 %v1288_v37  ;;  %v3760_v1 = vld [vmem:[#allocation21_spill] sm:$0xff]  ;;  %v3761_v37 = vld [vmem:[#allocation22_spill] sm:$0xff] }
 0x48c   :  { %v3197_v43 = vadd.f32 %v1293_v61, %v1292_v12  ;;  %v3755_v12 = vld [vmem:[#allocation16_spill] sm:$0xff]  ;;  %v3756_v61 = vld [vmem:[#allocation17_spill] sm:$0xff] }
 0x48e   :  { %2401 = vtanh.f32 %v3197_v43 }
 0x491   :  { %82 = vperm.xlu0 %2310, %v42_v60   ;;  %v2400_v30 = vpop.eup %2399  ;;  %v3757_v60 = vld [vmem:[#allocation18_spill] sm:$0xff] }
 0x492   :  { %v1290_v28 = vmul.f32 0.5, %v2400_v30  ;;  %v3762_v30 = vld [vmem:[#allocation23_spill] sm:$0xff] }
 0x494   :  { %v2402_v36 = vpop.eup %2401  ;;  %v1291_v29 = vadd.f32 0.5, %v1290_v28  ;;  %v3763_v28 = vld [vmem:[#allocation24_spill] sm:$0xff] }
 0x496   :  { %v1296_v45 = vmul.f32 %v2402_v36, %v1291_v29  ;;  %v3764_v36 = vld [vmem:[#allocation25_spill] sm:$0xff]  ;;  %v3765_v29 = vld [vmem:[#allocation26_spill] sm:$0xff] }
 0x498   :  { %v1378_v35 = vpack.c.bf16 %v1296_v45, %v1296_v45 }
 0x4fb   :  { %v1298_v34 = vpop.permute.xlu0 %1297 }
 0x4fc   :  { %v1299_v3 = vadd.f32 %v1298_v34, %v1296_v45  ;;  %v3766_v45 = vld [vmem:[#allocation27_spill] sm:$0xff]  ;;  %v3767_v34 = vld [vmem:[#allocation28_spill] sm:$0xff] }
 0x4fe   :  { %v1300_v10 = vpack.c.bf16 %v1299_v3, %v1299_v3  ;;  %v3768_v3 = vld [vmem:[#allocation29_spill] sm:$0xff] }
 0x500   :  { %1309 = vmatmul.bf16.vlgmr.msrb.gmra.mxu0 %v1300_v10  ;;  %1322 = vmatmul.bf16.vlgmr.msrb.gmra.mxu1 %v1300_v10 }
 0x501   :  { %1335 = vmatmul.bf16.vlgmr.msrb.gmra.mxu2 %v1300_v10  ;;  %1348 = vmatmul.bf16.vlgmr.msrb.gmra.mxu3 %v1300_v10  ;;  %v3769_v10 = vld [vmem:[#allocation30_spill] sm:$0xff] }
 0x502   :  { %1457 = vmatpush.bf16.msrb.mxu0 %v2665_v56  ;;  %1470 = vmatpush.bf16.msrb.mxu1 %v2667_v63 }
 0x503   :  { %1483 = vmatpush.bf16.msrb.mxu2 %v2669_v2  ;;  %1496 = vmatpush.bf16.msrb.mxu3 %v2672_v7 }
 0x506   :  { %1458 = vmatpush.bf16.msrb.mxu0 %v2676_v16  ;;  %1471 = vmatpush.bf16.msrb.mxu1 %v2678_v20 }
 0x507   :  { %1484 = vmatpush.bf16.msrb.mxu2 %v2681_v25  ;;  %1497 = vmatpush.bf16.msrb.mxu3 %v2683_v32 }
 0x50a   :  { %1459 = vmatpush.bf16.msrb.mxu0 %v2689_v40  ;;  %1472 = vmatpush.bf16.msrb.mxu1 %v2691_v52 }
 0x50b   :  { %1485 = vmatpush.bf16.msrb.mxu2 %v2693_v53  ;;  %1498 = vmatpush.bf16.msrb.mxu3 %v2696_v58 }
 0x50e   :  { %1460 = vmatpush.bf16.msrb.mxu0 %v2701_v5  ;;  %1473 = vmatpush.bf16.msrb.mxu1 %v2703_v15 }
 0x50f   :  { %1486 = vmatpush.bf16.msrb.mxu2 %v2705_v21  ;;  %1499 = vmatpush.bf16.msrb.mxu3 %v3619_v38 }
 0x510   :  { %1387 = vmatmul.bf16.vlgmr.msra.gmra.mxu0 %v1378_v35  ;;  %1400 = vmatmul.bf16.vlgmr.msra.gmra.mxu1 %v1378_v35 }
 0x511   :  { %1413 = vmatmul.bf16.vlgmr.msra.gmra.mxu2 %v1378_v35  ;;  %1426 = vmatmul.bf16.vlgmr.msra.gmra.mxu3 %v1378_v35  ;;  %v3770_v35 = vld [vmem:[#allocation31_spill] sm:$0xff] }
 0x512   :  { %1461 = vmatpush.bf16.msrb.mxu0 %v3620_v55  ;;  %1474 = vmatpush.bf16.msrb.mxu1 %v3621_v42 }
 0x513   :  { %1487 = vmatpush.bf16.msrb.mxu2 %v3622_v62  ;;  %1500 = vmatpush.bf16.msrb.mxu3 %v3623_v33 }
 0x516   :  { %1462 = vmatpush.bf16.msrb.mxu0 %v3624_v13  ;;  %1475 = vmatpush.bf16.msrb.mxu1 %v3625_v41 }
 0x517   :  { %1488 = vmatpush.bf16.msrb.mxu2 %v3626_v18  ;;  %1501 = vmatpush.bf16.msrb.mxu3 %v3627_v22 }
 0x51a   :  { %1463 = vmatpush.bf16.msrb.mxu0 %v3644_v47  ;;  %1476 = vmatpush.bf16.msrb.mxu1 %v3628_v6 }
 0x51b   :  { %1489 = vmatpush.bf16.msrb.mxu2 %v3645_v59  ;;  %1502 = vmatpush.bf16.msrb.mxu3 %v3646_v57 }
 0x51e   :  { %1464 = vmatpush.bf16.msrb.mxu0 %v2749_v14  ;;  %1477 = vmatpush.bf16.msrb.mxu1 %v3647_v19 }
 0x51f   :  { %1490 = vmatpush.bf16.msrb.mxu2 %v2753_v54  ;;  %1503 = vmatpush.bf16.msrb.mxu3 %v2756_v24 }
 0x522   :  { %1535 = vmatpush.bf16.msra.mxu0 %v2558_v4  ;;  %1548 = vmatpush.bf16.msra.mxu1 %v2560_v8 }
 0x523   :  { %1561 = vmatpush.bf16.msra.mxu2 %v3630_v0  ;;  %1574 = vmatpush.bf16.msra.mxu3 %v3678_v31 }
 0x526   :  { %1536 = vmatpush.bf16.msra.mxu0 %v3750_v9  ;;  %1549 = vmatpush.bf16.msra.mxu1 %v3751_v17 }
 0x527   :  { %1562 = vmatpush.bf16.msra.mxu2 %v3752_v49  ;;  %1575 = vmatpush.bf16.msra.mxu3 %v3753_v11 }
 0x52a   :  { %1537 = vmatpush.bf16.msra.mxu0 %v3754_v39  ;;  %1550 = vmatpush.bf16.msra.mxu1 %v3755_v12  ;;  %v3781_v12 = vld [vmem:[#allocation42_spill] sm:$0xff] }
 0x52b   :  { %1563 = vmatpush.bf16.msra.mxu2 %v3756_v61  ;;  %1576 = vmatpush.bf16.msra.mxu3 %v3757_v60  ;;  %v3780_v61 = vld [vmem:[#allocation41_spill] sm:$0xff] }
 0x52e   :  { %1538 = vmatpush.bf16.msra.mxu0 %v3758_v26  ;;  %1551 = vmatpush.bf16.msra.mxu1 %v3759_v27  ;;  %v3778_v27 = vld [vmem:[#allocation39_spill] sm:$0xff]  ;;  %v3779_v26 = vld [vmem:[#allocation40_spill] sm:$0xff] }
 0x52f   :  { %1564 = vmatpush.bf16.msra.mxu2 %v3760_v1  ;;  %1577 = vmatpush.bf16.msra.mxu3 %v3761_v37  ;;  %v3771_v1 = vld [vmem:[#allocation32_spill] sm:$0xff]  ;;  %v3772_v37 = vld [vmem:[#allocation33_spill] sm:$0xff] }
 0x532   :  { %1539 = vmatpush.bf16.msra.mxu0 %v3762_v30  ;;  %1552 = vmatpush.bf16.msra.mxu1 %v3763_v28  ;;  %v3773_v30 = vld [vmem:[#allocation34_spill] sm:$0xff]  ;;  %v3774_v28 = vld [vmem:[#allocation35_spill] sm:$0xff] }
 0x533   :  { %1565 = vmatpush.bf16.msra.mxu2 %v3764_v36  ;;  %1578 = vmatpush.bf16.msra.mxu3 %v3765_v29  ;;  %v3775_v36 = vld [vmem:[#allocation36_spill] sm:$0xff]  ;;  %v3776_v29 = vld [vmem:[#allocation37_spill] sm:$0xff] }
 0x536   :  { %1540 = vmatpush.bf16.msra.mxu0 %v3766_v45  ;;  %1553 = vmatpush.bf16.msra.mxu1 %v3767_v34  ;;  %v3777_v45 = vld [vmem:[#allocation38_spill] sm:$0xff] }
 0x537   :  { %1566 = vmatpush.bf16.msra.mxu2 %v3768_v3  ;;  %1579 = vmatpush.bf16.msra.mxu3 %v3769_v10 }
 0x53a   :  { %1541 = vmatpush.bf16.msra.mxu0 %v3770_v35  ;;  %1554 = vmatpush.bf16.msra.mxu1 %v3771_v1 }
 0x53b   :  { %1567 = vmatpush.bf16.msra.mxu2 %v3772_v37  ;;  %1580 = vmatpush.bf16.msra.mxu3 %v3773_v30  ;;  %v3272_v37 = vpop.permute.xlu1 %77 }
 0x53e   :  { %1542 = vmatpush.bf16.msra.mxu0 %v3774_v28  ;;  %1555 = vmatpush.bf16.msra.mxu1 %v3775_v36 }
 0x53f   :  { %1568 = vmatpush.bf16.msra.mxu2 %v3776_v29  ;;  %1581 = vmatpush.bf16.msra.mxu3 %v3777_v45 }
 0x57d   :  { %v1310_v34 = vpop.f32.mrf.mxu0  ;;  %v1323_v3 = vpop.f32.mrf.mxu1 }
 0x57e   :  { %v1311_v10 = vadd.f32 %v1310_v34, %v3778_v27  ;;  %v1324_v35 = vadd.f32 %v1323_v3, %v3779_v26  ;;  %v3782_v34 = vld [vmem:[#allocation53_spill] sm:$0xff] }
 0x57f   :  { %v114_v3 = vmul.f32 %v3782_v34, %v3272_v37 }
 0x580   :  { %v1353_v60 = vmul.f32 0.5, %v1311_v10  ;;  %v1354_v1 = vmul.f32 0.5, %v1324_v35  ;;  %v3783_v10 = vld [vmem:[#allocation54_spill] sm:$0xff] }
 0x582   :  { %2403 = vtanh.f32 %v1353_v60  ;;  %v115_v60 = vmul.f32 %v3783_v10, %v3272_v37 }
 0x583   :  { %2405 = vtanh.f32 %v1354_v1 }
 0x584   :  { %v1336_v30 = vpop.f32.mrf.mxu2  ;;  %v1349_v28 = vpop.f32.mrf.mxu3 }
 0x585   :  { %v1337_v36 = vadd.f32 %v1336_v30, %v3780_v61  ;;  %v1350_v29 = vadd.f32 %v1349_v28, %v3781_v12  ;;  %v1312_v39 = vpop.f32.mrf.mxu0  ;;  %v1325_v45 = vpop.f32.mrf.mxu1  ;;  %v156_v28 = vadd.f32 %v3713_v44, %v115_v60 }
 0x586   :  { %v155_v39 = vadd.f32 %v3641_v48, %v114_v3  ;;  %v3784_v3 = vld [vmem:[#allocation59_spill] sm:$0xff] }
 0x587   :  { %2407 = vtanh.f32 %v1337_v36  ;;  %v1362_v49 = vmul.f32 0.5, %v1350_v29 }
 0x588   :  { %v2404_v11 = vpop.eup %2403 }
 0x589   :  { %v2406_v35 = vpop.eup %2405  ;;  %v1357_v26 = vmul.f32 0.5, %v2404_v11  ;;  %2409 = vtanh.f32 %v1362_v49  ;;  %v116_v11 = vmul.f32 %v3714_v50, %v3272_v37 }
 0x58a   :  { %v1358_v1 = vmul.f32 0.5, %v2406_v35 }
 0x58b   :  { %v1359_v27 = vadd.f32 0.5, %v1357_v26  ;;  %v157_v60 = vadd.f32 %v3784_v3, %v116_v11 }
 0x58c   :  { %v1360_v17 = vadd.f32 0.5, %v1358_v1  ;;  %v1338_v30 = vpop.f32.mrf.mxu2  ;;  %v1351_v61 = vpop.f32.mrf.mxu3 }
 0x58d   :  { %v2408_v36 = vpop.eup %2407  ;;  %v1388_v29 = vpop.f32.mrf.mxu0 }
 0x58e   :  { %v1401_v45 = vpop.f32.mrf.mxu1  ;;  %v1366_v34 = vmul.f32 %v1360_v17, %v3191_v23  ;;  %v1367_v12 = vmul.f32 %v2408_v36, %v1359_v27  ;;  %v1431_v9 = vadd.f32 %v1388_v29, %v155_v39 }
 0x58f   :  { %v1432_v10 = vadd.f32 %v1401_v45, %v156_v28  ;;  %v2410_v61 = vpop.eup %2409 }
 0x590   :  { %v3285_v26 = vadd.f32 %v1367_v12, %v1366_v34  ;;  %v1435_v49 = vmul.f32 0.5, %v1431_v9  ;;  %v1364_v23 = vmul.f32 0.5, %v2410_v61 }
 0x591   :  { %v1436_v35 = vmul.f32 0.5, %v1432_v10 }
 0x592   :  { %2411 = vtanh.f32 %v1435_v49  ;;  %v1365_v12 = vadd.f32 0.5, %v1364_v23  ;;  %v43_v23 = vld [vmem:[%s3446_s0 + $0x38] sm:$0xff] }
 0x593   :  { %2413 = vtanh.f32 %v1436_v35 }
 0x594   :  { %v1414_v1 = vpop.f32.mrf.mxu2  ;;  %v1427_v30 = vpop.f32.mrf.mxu3  ;;  %2415 = vtanh.f32 %v3285_v26 }
 0x595   :  { %v1433_v17 = vadd.f32 %v1414_v1, %v157_v60  ;;  %v1390_v27 = vpop.f32.mrf.mxu0 }
 0x596   :  { %v1403_v39 = vpop.f32.mrf.mxu1 }
 0x597   :  { %2417 = vtanh.f32 %v1433_v17  ;;  %v117_v17 = vmul.f32 %v3642_v46, %v3272_v37 }
 0x598   :  { %v2412_v28 = vpop.eup %2411 }
 0x599   :  { %v2414_v36 = vpop.eup %2413  ;;  %v1439_v34 = vmul.f32 0.5, %v2412_v28  ;;  %v158_v27 = vadd.f32 %v3643_v51, %v117_v17  ;;  %v3797_v17 = vld [vmem:[#allocation23_spill] sm:$0xff] }
 0x59a   :  { %v2416_v9 = vpop.eup %2415  ;;  %v1440_v10 = vmul.f32 0.5, %v2414_v36 }
 0x59b   :  { %v1441_v29 = vadd.f32 0.5, %v1439_v34  ;;  %v1370_v45 = vmul.f32 %v2416_v9, %v1365_v12  ;;  %v1434_v39 = vadd.f32 %v1427_v30, %v158_v27  ;;  %v3785_v30 = vld [vmem:[#allocation11_spill] sm:$0xff]  ;;  %v3798_v27 = vld [vmem:[#allocation24_spill] sm:$0xff] }
 0x59c   :  { %v1442_v49 = vadd.f32 0.5, %v1440_v10  ;;  %v1416_v35 = vpop.f32.mrf.mxu2  ;;  %v1429_v11 = vpop.f32.mrf.mxu3 }
 0x59d   :  { %v2418_v3 = vpop.eup %2417  ;;  %1453 = vrot.lane.b32.xlu2 %v1370_v45, %s2530_s20  ;;  %v1444_v28 = vmul.f32 0.5, %v1434_v39  ;;  %v3786_v45 = vld [vmem:[#allocation12_spill] sm:$0xff]  ;;  %v3788_v35 = vld [vmem:[#allocation14_spill] sm:$0xff]  ;;  %v3789_v11 = vld [vmem:[#allocation15_spill] sm:$0xff] }
 0x59e   :  { %v1448_v61 = vmul.f32 %v1442_v49, %v3197_v43  ;;  %v1449_v60 = vmul.f32 %v2418_v3, %v1441_v29  ;;  %v3787_v49 = vld [vmem:[#allocation13_spill] sm:$0xff] }
 0x59f   :  { %2419 = vtanh.f32 %v1444_v28  ;;  %v3799_v39 = vld [vmem:[#allocation25_spill] sm:$0xff]  ;;  %v3800_v28 = vld [vmem:[#allocation26_spill] sm:$0xff] }
 0x5a0   :  { %v3291_v1 = vadd.f32 %v1449_v60, %v1448_v61  ;;  %v3790_v61 = vld [vmem:[#allocation16_spill] sm:$0xff]  ;;  %v3791_v60 = vld [vmem:[#allocation17_spill] sm:$0xff] }
 0x5a2   :  { %2421 = vtanh.f32 %v3291_v1 }
 0x5a5   :  { %87 = vperm.xlu2 %2312, %v43_v23   ;;  %v2420_v36 = vpop.eup %2419  ;;  %v3796_v23 = vld [vmem:[#allocation22_spill] sm:$0xff] }
 0x5a6   :  { %v1446_v43 = vmul.f32 0.5, %v2420_v36  ;;  %v3801_v36 = vld [vmem:[#allocation27_spill] sm:$0xff] }
 0x5a8   :  { %v2422_v3 = vpop.eup %2421  ;;  %v1447_v12 = vadd.f32 0.5, %v1446_v43  ;;  %v3802_v43 = vld [vmem:[#allocation28_spill] sm:$0xff] }
 0x5aa   :  { %v1452_v34 = vmul.f32 %v2422_v3, %v1447_v12  ;;  %v3803_v3 = vld [vmem:[#allocation29_spill] sm:$0xff]  ;;  %v3804_v12 = vld [vmem:[#allocation30_spill] sm:$0xff] }
 0x5ac   :  { %v1534_v37 = vpack.c.bf16 %v1452_v34, %v1452_v34 }
 0x5f7   :  { %v1454_v9 = vpop.permute.xlu2 %1453 }
 0x5f8   :  { %v1455_v10 = vadd.f32 %v1454_v9, %v1452_v34  ;;  %v3805_v34 = vld [vmem:[#allocation31_spill] sm:$0xff]  ;;  %v3806_v9 = vld [vmem:[#allocation32_spill] sm:$0xff] }
 0x5fa   :  { %v1456_v29 = vpack.c.bf16 %v1455_v10, %v1455_v10  ;;  %v3807_v10 = vld [vmem:[#allocation33_spill] sm:$0xff] }
 0x5fc   :  { %1465 = vmatmul.bf16.vlgmr.msrb.gmra.mxu0 %v1456_v29  ;;  %1478 = vmatmul.bf16.vlgmr.msrb.gmra.mxu1 %v1456_v29 }
 0x5fd   :  { %1491 = vmatmul.bf16.vlgmr.msrb.gmra.mxu2 %v1456_v29  ;;  %1504 = vmatmul.bf16.vlgmr.msrb.gmra.mxu3 %v1456_v29  ;;  %v3808_v29 = vld [vmem:[#allocation34_spill] sm:$0xff] }
 0x5fe   :  { %1613 = vmatpush.bf16.msrb.mxu0 %v2665_v56  ;;  %1626 = vmatpush.bf16.msrb.mxu1 %v2667_v63 }
 0x5ff   :  { %1639 = vmatpush.bf16.msrb.mxu2 %v2669_v2  ;;  %1652 = vmatpush.bf16.msrb.mxu3 %v2672_v7 }
 0x602   :  { %1614 = vmatpush.bf16.msrb.mxu0 %v2676_v16  ;;  %1627 = vmatpush.bf16.msrb.mxu1 %v2678_v20 }
 0x603   :  { %1640 = vmatpush.bf16.msrb.mxu2 %v2681_v25  ;;  %1653 = vmatpush.bf16.msrb.mxu3 %v2683_v32 }
 0x606   :  { %1615 = vmatpush.bf16.msrb.mxu0 %v2689_v40  ;;  %1628 = vmatpush.bf16.msrb.mxu1 %v2691_v52 }
 0x607   :  { %1641 = vmatpush.bf16.msrb.mxu2 %v2693_v53  ;;  %1654 = vmatpush.bf16.msrb.mxu3 %v2696_v58 }
 0x60a   :  { %1616 = vmatpush.bf16.msrb.mxu0 %v2701_v5  ;;  %1629 = vmatpush.bf16.msrb.mxu1 %v2703_v15 }
 0x60b   :  { %1642 = vmatpush.bf16.msrb.mxu2 %v2705_v21  ;;  %1655 = vmatpush.bf16.msrb.mxu3 %v3619_v38 }
 0x60c   :  { %1543 = vmatmul.bf16.vlgmr.msra.gmra.mxu0 %v1534_v37  ;;  %1556 = vmatmul.bf16.vlgmr.msra.gmra.mxu1 %v1534_v37 }
 0x60d   :  { %1569 = vmatmul.bf16.vlgmr.msra.gmra.mxu2 %v1534_v37  ;;  %1582 = vmatmul.bf16.vlgmr.msra.gmra.mxu3 %v1534_v37  ;;  %v3809_v37 = vld [vmem:[#allocation35_spill] sm:$0xff] }
 0x60e   :  { %1617 = vmatpush.bf16.msrb.mxu0 %v3620_v55  ;;  %1630 = vmatpush.bf16.msrb.mxu1 %v3621_v42 }
 0x60f   :  { %1643 = vmatpush.bf16.msrb.mxu2 %v3622_v62  ;;  %1656 = vmatpush.bf16.msrb.mxu3 %v3623_v33 }
 0x612   :  { %1618 = vmatpush.bf16.msrb.mxu0 %v3624_v13  ;;  %1631 = vmatpush.bf16.msrb.mxu1 %v3625_v41 }
 0x613   :  { %1644 = vmatpush.bf16.msrb.mxu2 %v3626_v18  ;;  %1657 = vmatpush.bf16.msrb.mxu3 %v3627_v22 }
 0x616   :  { %1619 = vmatpush.bf16.msrb.mxu0 %v3644_v47  ;;  %1632 = vmatpush.bf16.msrb.mxu1 %v3628_v6 }
 0x617   :  { %1645 = vmatpush.bf16.msrb.mxu2 %v3645_v59  ;;  %1658 = vmatpush.bf16.msrb.mxu3 %v3646_v57 }
 0x61a   :  { %1620 = vmatpush.bf16.msrb.mxu0 %v2749_v14  ;;  %1633 = vmatpush.bf16.msrb.mxu1 %v3647_v19 }
 0x61b   :  { %1646 = vmatpush.bf16.msrb.mxu2 %v2753_v54  ;;  %1659 = vmatpush.bf16.msrb.mxu3 %v2756_v24 }
 0x61e   :  { %1691 = vmatpush.bf16.msra.mxu0 %v2558_v4  ;;  %1704 = vmatpush.bf16.msra.mxu1 %v2560_v8  ;;  %v3792_v4 = vld [vmem:[#allocation18_spill] sm:$0xff]  ;;  %v3793_v8 = vld [vmem:[#allocation19_spill] sm:$0xff] }
 0x61f   :  { %1717 = vmatpush.bf16.msra.mxu2 %v3630_v0  ;;  %1730 = vmatpush.bf16.msra.mxu3 %v3678_v31  ;;  %v3794_v0 = vld [vmem:[#allocation20_spill] sm:$0xff]  ;;  %v3795_v31 = vld [vmem:[#allocation21_spill] sm:$0xff] }
 0x622   :  { %1692 = vmatpush.bf16.msra.mxu0 %v3785_v30  ;;  %1705 = vmatpush.bf16.msra.mxu1 %v3786_v45  ;;  %v3810_v30 = vld [vmem:[#allocation36_spill] sm:$0xff]  ;;  %v3811_v45 = vld [vmem:[#allocation37_spill] sm:$0xff] }
 0x623   :  { %1718 = vmatpush.bf16.msra.mxu2 %v3787_v49  ;;  %1731 = vmatpush.bf16.msra.mxu3 %v3788_v35  ;;  %v3812_v49 = vld [vmem:[#allocation38_spill] sm:$0xff] }
 0x626   :  { %1693 = vmatpush.bf16.msra.mxu0 %v3789_v11  ;;  %1706 = vmatpush.bf16.msra.mxu1 %v3790_v61  ;;  %v3813_v61 = vld [vmem:[#allocation39_spill] sm:$0xff] }
 0x627   :  { %1719 = vmatpush.bf16.msra.mxu2 %v3791_v60  ;;  %1732 = vmatpush.bf16.msra.mxu3 %v3792_v4  ;;  %v3814_v4 = vld [vmem:[#allocation40_spill] sm:$0xff] }
 0x62a   :  { %1694 = vmatpush.bf16.msra.mxu0 %v3793_v8  ;;  %1707 = vmatpush.bf16.msra.mxu1 %v3794_v0 }
 0x62b   :  { %1720 = vmatpush.bf16.msra.mxu2 %v3795_v31  ;;  %1733 = vmatpush.bf16.msra.mxu3 %v3796_v23  ;;  %v83_v23 = vpop.permute.xlu0 %82 }
 0x62e   :  { %1695 = vmatpush.bf16.msra.mxu0 %v3797_v17  ;;  %1708 = vmatpush.bf16.msra.mxu1 %v3798_v27 }
 0x62f   :  { %1721 = vmatpush.bf16.msra.mxu2 %v3799_v39  ;;  %1734 = vmatpush.bf16.msra.mxu3 %v3800_v28  ;;  %v3815_v39 = vld [vmem:[#allocation41_spill] sm:$0xff] }
 0x632   :  { %1696 = vmatpush.bf16.msra.mxu0 %v3801_v36  ;;  %1709 = vmatpush.bf16.msra.mxu1 %v3802_v43  ;;  %v3816_v36 = vld [vmem:[#allocation42_spill] sm:$0xff] }
 0x633   :  { %1722 = vmatpush.bf16.msra.mxu2 %v3803_v3  ;;  %1735 = vmatpush.bf16.msra.mxu3 %v3804_v12 }
 0x636   :  { %1697 = vmatpush.bf16.msra.mxu0 %v3805_v34  ;;  %1710 = vmatpush.bf16.msra.mxu1 %v3806_v9 }
 0x637   :  { %1723 = vmatpush.bf16.msra.mxu2 %v3807_v10  ;;  %1736 = vmatpush.bf16.msra.mxu3 %v3808_v29  ;;  %v3817_v10 = vld [vmem:[#allocation53_spill] sm:$0xff] }
 0x638   :  { %v118_v29 = vmul.f32 %v3817_v10, %v83_v23 }
 0x63a   :  { %1698 = vmatpush.bf16.msra.mxu0 %v3809_v37  ;;  %1711 = vmatpush.bf16.msra.mxu1 %v3810_v30  ;;  %v3818_v37 = vld [vmem:[#allocation54_spill] sm:$0xff] }
 0x63b   :  { %1724 = vmatpush.bf16.msra.mxu2 %v3811_v45  ;;  %1737 = vmatpush.bf16.msra.mxu3 %v3812_v49  ;;  %v119_v30 = vmul.f32 %v3818_v37, %v83_v23 }
 0x679   :  { %v1466_v35 = vpop.f32.mrf.mxu0  ;;  %v1479_v11 = vpop.f32.mrf.mxu1 }
 0x67a   :  { %v1467_v60 = vadd.f32 %v1466_v35, %v3813_v61  ;;  %v1480_v8 = vadd.f32 %v1479_v11, %v3814_v4 }
 0x67c   :  { %v1509_v0 = vmul.f32 0.5, %v1467_v60  ;;  %v1510_v31 = vmul.f32 0.5, %v1480_v8 }
 0x67e   :  { %2423 = vtanh.f32 %v1509_v0 }
 0x67f   :  { %2425 = vtanh.f32 %v1510_v31  ;;  %v159_v31 = vadd.f32 %v3641_v48, %v118_v29  ;;  %v3819_v29 = vld [vmem:[#allocation59_spill] sm:$0xff] }
 0x680   :  { %v1492_v17 = vpop.f32.mrf.mxu2  ;;  %v1505_v27 = vpop.f32.mrf.mxu3 }
 0x681   :  { %v1493_v28 = vadd.f32 %v1492_v17, %v3815_v39  ;;  %v1506_v43 = vadd.f32 %v1505_v27, %v3816_v36  ;;  %v1468_v3 = vpop.f32.mrf.mxu0  ;;  %v1481_v12 = vpop.f32.mrf.mxu1  ;;  %v160_v17 = vadd.f32 %v3713_v44, %v119_v30 }
 0x683   :  { %2427 = vtanh.f32 %v1493_v28  ;;  %v1518_v9 = vmul.f32 0.5, %v1506_v43 }
 0x684   :  { %v2424_v34 = vpop.eup %2423 }
 0x685   :  { %v2426_v45 = vpop.eup %2425  ;;  %v1513_v49 = vmul.f32 0.5, %v2424_v34  ;;  %2429 = vtanh.f32 %v1518_v9  ;;  %v120_v34 = vmul.f32 %v3714_v50, %v83_v23 }
 0x686   :  { %v1514_v35 = vmul.f32 0.5, %v2426_v45 }
 0x687   :  { %v1515_v11 = vadd.f32 0.5, %v1513_v49 }
 0x688   :  { %v1516_v60 = vadd.f32 0.5, %v1514_v35  ;;  %v1494_v8 = vpop.f32.mrf.mxu2  ;;  %v1507_v0 = vpop.f32.mrf.mxu3 }
 0x689   :  { %v2428_v27 = vpop.eup %2427  ;;  %v1544_v28 = vpop.f32.mrf.mxu0  ;;  %v161_v8 = vadd.f32 %v3819_v29, %v120_v34 }
 0x68a   :  { %v1557_v3 = vpop.f32.mrf.mxu1  ;;  %v1522_v43 = vmul.f32 %v1516_v60, %v3285_v26  ;;  %v1523_v12 = vmul.f32 %v2428_v27, %v1515_v11  ;;  %v1587_v10 = vadd.f32 %v1544_v28, %v159_v31 }
 0x68b   :  { %v1588_v37 = vadd.f32 %v1557_v3, %v160_v17  ;;  %v2430_v35 = vpop.eup %2429 }
 0x68c   :  { %v3374_v45 = vadd.f32 %v1523_v12, %v1522_v43  ;;  %v1591_v49 = vmul.f32 0.5, %v1587_v10  ;;  %v1520_v44 = vmul.f32 0.5, %v2430_v35 }
 0x68d   :  { %v1592_v9 = vmul.f32 0.5, %v1588_v37 }
 0x68e   :  { %2431 = vtanh.f32 %v1591_v49  ;;  %v1521_v27 = vadd.f32 0.5, %v1520_v44 }
 0x68f   :  { %2433 = vtanh.f32 %v1592_v9 }
 0x690   :  { %v1570_v30 = vpop.f32.mrf.mxu2  ;;  %v1583_v0 = vpop.f32.mrf.mxu3  ;;  %2435 = vtanh.f32 %v3374_v45 }
 0x691   :  { %v1589_v26 = vadd.f32 %v1570_v30, %v161_v8  ;;  %v1546_v11 = vpop.f32.mrf.mxu0 }
 0x692   :  { %v1559_v60 = vpop.f32.mrf.mxu1 }
 0x693   :  { %2437 = vtanh.f32 %v1589_v26  ;;  %v121_v26 = vmul.f32 %v3642_v46, %v83_v23 }
 0x694   :  { %v2432_v31 = vpop.eup %2431 }
 0x695   :  { %v2434_v17 = vpop.eup %2433  ;;  %v1595_v28 = vmul.f32 0.5, %v2432_v31  ;;  %v162_v44 = vadd.f32 %v3643_v51, %v121_v26 }
 0x696   :  { %v2436_v10 = vpop.eup %2435  ;;  %v1596_v37 = vmul.f32 0.5, %v2434_v17 }
 0x697   :  { %v1597_v3 = vadd.f32 0.5, %v1595_v28  ;;  %v1526_v43 = vmul.f32 %v2436_v10, %v1521_v27  ;;  %v1590_v11 = vadd.f32 %v1583_v0, %v162_v44 }
 0x698   :  { %v1598_v12 = vadd.f32 0.5, %v1596_v37  ;;  %v1572_v49 = vpop.f32.mrf.mxu2  ;;  %v1585_v34 = vpop.f32.mrf.mxu3 }
 0x699   :  { %v2438_v9 = vpop.eup %2437  ;;  %1609 = vrot.lane.b32.xlu1 %v1526_v43, %s2530_s20  ;;  %v1600_v60 = vmul.f32 0.5, %v1590_v11 }
 0x69a   :  { %v1604_v35 = vmul.f32 %v1598_v12, %v3291_v1  ;;  %v1605_v8 = vmul.f32 %v2438_v9, %v1597_v3 }
 0x69b   :  { %2439 = vtanh.f32 %v1600_v60 }
 0x69c   :  { %v3380_v30 = vadd.f32 %v1605_v8, %v1604_v35 }
 0x69e   :  { %2441 = vtanh.f32 %v3380_v30 }
 0x6a1   :  { %v2440_v31 = vpop.eup %2439 }
 0x6a2   :  { %v1602_v17 = vmul.f32 0.5, %v2440_v31 }
 0x6a4   :  { %v2442_v27 = vpop.eup %2441  ;;  %v1603_v28 = vadd.f32 0.5, %v1602_v17 }
 0x6a6   :  { %v1608_v10 = vmul.f32 %v2442_v27, %v1603_v28 }
 0x70b   :  { %v1610_v37 = vpop.permute.xlu1 %1609 }
 0x70c   :  { %v1611_v43 = vadd.f32 %v1610_v37, %v1608_v10 }
 0x70e   :  { %v1612_v1 = vpack.c.bf16 %v1611_v43, %v1611_v43 }
 0x710   :  { %1621 = vmatmul.bf16.vlgmr.msrb.gmra.mxu0 %v1612_v1  ;;  %1634 = vmatmul.bf16.vlgmr.msrb.gmra.mxu1 %v1612_v1 }
 0x711   :  { %1647 = vmatmul.bf16.vlgmr.msrb.gmra.mxu2 %v1612_v1  ;;  %1660 = vmatmul.bf16.vlgmr.msrb.gmra.mxu3 %v1612_v1 }
 0x712   :  { %1769 = vmatpush.bf16.msrb.mxu0 %v2665_v56  ;;  %1782 = vmatpush.bf16.msrb.mxu1 %v2667_v63  ;;  %v1690_v56 = vpack.c.bf16 %v1608_v10, %v1608_v10 }
 0x713   :  { %1795 = vmatpush.bf16.msrb.mxu2 %v2669_v2  ;;  %1808 = vmatpush.bf16.msrb.mxu3 %v2672_v7 }
 0x716   :  { %1770 = vmatpush.bf16.msrb.mxu0 %v2676_v16  ;;  %1783 = vmatpush.bf16.msrb.mxu1 %v2678_v20 }
 0x717   :  { %1796 = vmatpush.bf16.msrb.mxu2 %v2681_v25  ;;  %1809 = vmatpush.bf16.msrb.mxu3 %v2683_v32  ;;  %v88_v32 = vpop.permute.xlu2 %87 }
 0x718   :  { %v124_v34 = vmul.f32 %v3714_v50, %v88_v32  ;;  %v125_v9 = vmul.f32 %v3642_v46, %v88_v32 }
 0x71a   :  { %1771 = vmatpush.bf16.msrb.mxu0 %v2689_v40  ;;  %1784 = vmatpush.bf16.msrb.mxu1 %v2691_v52  ;;  %v166_v11 = vadd.f32 %v3643_v51, %v125_v9  ;;  %v2295_v9 = vld [vmem:[#allocation3 + $0x22c] sm:$0xf0] }
 0x71b   :  { %1797 = vmatpush.bf16.msrb.mxu2 %v2693_v53  ;;  %1810 = vmatpush.bf16.msrb.mxu3 %v2696_v58 }
 0x71e   :  { %1772 = vmatpush.bf16.msrb.mxu0 %v2701_v5  ;;  %1785 = vmatpush.bf16.msrb.mxu1 %v2703_v15 }
 0x71f   :  { %1798 = vmatpush.bf16.msrb.mxu2 %v2705_v21  ;;  %1811 = vmatpush.bf16.msrb.mxu3 %v3619_v38 }
 0x720   :  { %1699 = vmatmul.bf16.vlgmr.msra.gmra.mxu0 %v1690_v56  ;;  %1712 = vmatmul.bf16.vlgmr.msra.gmra.mxu1 %v1690_v56 }
 0x721   :  { %1725 = vmatmul.bf16.vlgmr.msra.gmra.mxu2 %v1690_v56  ;;  %1738 = vmatmul.bf16.vlgmr.msra.gmra.mxu3 %v1690_v56 }
 0x722   :  { %1773 = vmatpush.bf16.msrb.mxu0 %v3620_v55  ;;  %1786 = vmatpush.bf16.msrb.mxu1 %v3621_v42 }
 0x723   :  { %1799 = vmatpush.bf16.msrb.mxu2 %v3622_v62  ;;  %1812 = vmatpush.bf16.msrb.mxu3 %v3623_v33 }
 0x726   :  { %1774 = vmatpush.bf16.msrb.mxu0 %v3624_v13  ;;  %1787 = vmatpush.bf16.msrb.mxu1 %v3625_v41 }
 0x727   :  { %1800 = vmatpush.bf16.msrb.mxu2 %v3626_v18  ;;  %1813 = vmatpush.bf16.msrb.mxu3 %v3627_v22 }
 0x72a   :  { %1775 = vmatpush.bf16.msrb.mxu0 %v3644_v47  ;;  %1788 = vmatpush.bf16.msrb.mxu1 %v3628_v6  ;;  %v3822_v47 = vld [vmem:[#allocation56_spill] sm:$0xff] }
 0x72b   :  { %1801 = vmatpush.bf16.msrb.mxu2 %v3645_v59  ;;  %1814 = vmatpush.bf16.msrb.mxu3 %v3646_v57 }
 0x72e   :  { %1776 = vmatpush.bf16.msrb.mxu0 %v2749_v14  ;;  %1789 = vmatpush.bf16.msrb.mxu1 %v3647_v19 }
 0x72f   :  { %1802 = vmatpush.bf16.msrb.mxu2 %v2753_v54  ;;  %1815 = vmatpush.bf16.msrb.mxu3 %v2756_v24  ;;  %v3820_v24 = vld [vmem:[#allocation53_spill] sm:$0xff]  ;;  %v3821_v54 = vld [vmem:[#allocation54_spill] sm:$0xff] }
 0x730   :  { %v122_v14 = vmul.f32 %v3820_v24, %v88_v32  ;;  %v123_v38 = vmul.f32 %v3821_v54, %v88_v32  ;;  %v2229_v54 = vld [vmem:[#allocation3 + $0x300] sm:$0xf] }
 0x732   :  { %v163_v6 = vadd.f32 %v3641_v48, %v122_v14  ;;  %v164_v59 = vadd.f32 %v3822_v47, %v123_v38  ;;  %v165_v48 = vadd.f32 %v3819_v29, %v124_v34  ;;  %v2302_v38 = vld [vmem:[#allocation3 + $0x30c] sm:$0xf0]  ;;  %v2213_v47 = vld [vmem:[#allocation3 + $0x280] sm:$0xf] }
 0x733   :  { %v2201_v34 = vld [vmem:[#allocation3 + $0x220] sm:$0xf] }
 0x78d   :  { %v1622_v63 = vpop.f32.mrf.mxu0  ;;  %v1635_v2 = vpop.f32.mrf.mxu1 }
 0x78e   :  { %v1623_v7 = vadd.f32 %v1622_v63, %v3813_v61  ;;  %v1636_v16 = vadd.f32 %v1635_v2, %v3814_v4 }
 0x790   :  { %v1665_v20 = vmul.f32 0.5, %v1623_v7  ;;  %v1666_v25 = vmul.f32 0.5, %v1636_v16 }
 0x792   :  { %2443 = vtanh.f32 %v1665_v20 }
 0x793   :  { %2445 = vtanh.f32 %v1666_v25 }
 0x794   :  { %v1648_v40 = vpop.f32.mrf.mxu2  ;;  %v1661_v52 = vpop.f32.mrf.mxu3 }
 0x795   :  { %v1649_v53 = vadd.f32 %v1648_v40, %v3815_v39  ;;  %v1662_v58 = vadd.f32 %v1661_v52, %v3816_v36  ;;  %v1624_v5 = vpop.f32.mrf.mxu0  ;;  %v1637_v15 = vpop.f32.mrf.mxu1 }
 0x797   :  { %2447 = vtanh.f32 %v1649_v53  ;;  %v1674_v55 = vmul.f32 0.5, %v1662_v58 }
 0x798   :  { %v2444_v21 = vpop.eup %2443 }
 0x799   :  { %v2446_v42 = vpop.eup %2445  ;;  %v1669_v62 = vmul.f32 0.5, %v2444_v21  ;;  %2449 = vtanh.f32 %v1674_v55  ;;  %v2230_v55 = vor.u32 %v2302_v38, %v2229_v54 }
 0x79a   :  { %v1670_v33 = vmul.f32 0.5, %v2446_v42  ;;  %v2301_v42 = vld [vmem:[#allocation3 + $0x2ec] sm:$0xf0] }
 0x79b   :  { %v1671_v13 = vadd.f32 0.5, %v1669_v62  ;;  %1904 = vmatpush.bf16.msra.mxu0 %v2230_v55 }
 0x79c   :  { %v1672_v41 = vadd.f32 0.5, %v1670_v33  ;;  %v1650_v18 = vpop.f32.mrf.mxu2  ;;  %v1663_v22 = vpop.f32.mrf.mxu3  ;;  %v2221_v33 = vld [vmem:[#allocation3 + $0x2c0] sm:$0xf] }
 0x79d   :  { %v2448_v57 = vpop.eup %2447  ;;  %v1700_v19 = vpop.f32.mrf.mxu0  ;;  %v2217_v18 = vld [vmem:[#allocation3 + $0x2a0] sm:$0xf]  ;;  %v2299_v22 = vld [vmem:[#allocation3 + $0x2ac] sm:$0xf0] }
 0x79e   :  { %v1713_v23 = vpop.f32.mrf.mxu1  ;;  %v1678_v0 = vmul.f32 %v1672_v41, %v3374_v45  ;;  %v1679_v3 = vmul.f32 %v2448_v57, %v1671_v13  ;;  %v1743_v12 = vadd.f32 %v1700_v19, %v163_v6  ;;  %v2300_v13 = vld [vmem:[#allocation3 + $0x2cc] sm:$0xf0]  ;;  %v2218_v6 = vor.u32 %v2299_v22, %v2217_v18  ;;  %v2209_v19 = vld [vmem:[#allocation3 + $0x260] sm:$0xf] }
 0x79f   :  { %v1744_v49 = vadd.f32 %v1713_v23, %v164_v59  ;;  %v2450_v44 = vpop.eup %2449  ;;  %v2222_v41 = vor.u32 %v2300_v13, %v2221_v33  ;;  %v2298_v59 = vld [vmem:[#allocation3 + $0x28c] sm:$0xf0] }
 0x7a0   :  { %v3428_v35 = vadd.f32 %v1679_v3, %v1678_v0  ;;  %v1747_v8 = vmul.f32 0.5, %v1743_v12  ;;  %v1676_v31 = vmul.f32 0.5, %v2450_v44  ;;  %v2214_v57 = vor.u32 %v2298_v59, %v2213_v47  ;;  %v2297_v23 = vld [vmem:[#allocation3 + $0x26c] sm:$0xf0]  ;;  %v2205_v3 = vld [vmem:[#allocation3 + $0x240] sm:$0xf] }
 0x7a1   :  { %v1748_v26 = vmul.f32 0.5, %v1744_v49  ;;  %v2210_v0 = vor.u32 %v2297_v23, %v2209_v19  ;;  %v2296_v12 = vld [vmem:[#allocation3 + $0x24c] sm:$0xf0] }
 0x7a2   :  { %2451 = vtanh.f32 %v1747_v8  ;;  %v1677_v43 = vadd.f32 0.5, %v1676_v31  ;;  %v2206_v49 = vor.u32 %v2296_v12, %v2205_v3  ;;  %v2202_v8 = vor.u32 %v2295_v9, %v2201_v34 }
 0x7a3   :  { %2453 = vtanh.f32 %v1748_v26 }
 0x7a4   :  { %v1726_v60 = vpop.f32.mrf.mxu2  ;;  %v1739_v45 = vpop.f32.mrf.mxu3  ;;  %2455 = vtanh.f32 %v3428_v35 }
 0x7a5   :  { %v1745_v17 = vadd.f32 %v1726_v60, %v165_v48  ;;  %v1746_v50 = vadd.f32 %v1739_v45, %v166_v11  ;;  %v1702_v27 = vpop.f32.mrf.mxu0 }
 0x7a6   :  { %v1715_v46 = vpop.f32.mrf.mxu1 }
 0x7a7   :  { %2457 = vtanh.f32 %v1745_v17  ;;  %v1756_v28 = vmul.f32 0.5, %v1746_v50 }
 0x7a8   :  { %v2452_v10 = vpop.eup %2451 }
 0x7a9   :  { %v2454_v37 = vpop.eup %2453  ;;  %v1751_v1 = vmul.f32 0.5, %v2452_v10  ;;  %2459 = vtanh.f32 %v1756_v28 }
 0x7aa   :  { %v2456_v56 = vpop.eup %2455  ;;  %v1752_v63 = vmul.f32 0.5, %v2454_v37 }
 0x7ab   :  { %v1753_v29 = vadd.f32 0.5, %v1751_v1  ;;  %v1682_v51 = vmul.f32 %v2456_v56, %v1677_v43 }
 0x7ac   :  { %v1754_v2 = vadd.f32 0.5, %v1752_v63  ;;  %v1728_v7 = vpop.f32.mrf.mxu2  ;;  %v1741_v16 = vpop.f32.mrf.mxu3 }
 0x7ad   :  { %v2458_v20 = vpop.eup %2457  ;;  %1765 = vrot.lane.b32.xlu0 %v1682_v51, %s2530_s20 }
 0x7ae   :  { %v1760_v25 = vmul.f32 %v1754_v2, %v3380_v30  ;;  %v1761_v32 = vmul.f32 %v2458_v20, %v1753_v29  ;;  %v2225_v30 = vld [vmem:[#allocation3 + $0x2e0] sm:$0xf] }
 0x7af   :  { %v2460_v40 = vpop.eup %2459  ;;  %v2226_v62 = vor.u32 %v2301_v42, %v2225_v30 }
 0x7b0   :  { %v1762_v52 = vadd.f32 %v1761_v32, %v1760_v25  ;;  %v1758_v53 = vmul.f32 0.5, %v2460_v40 }
 0x7b1   :  { %1905 = vmatpush.bf16.msra.mxu0 %v2226_v62 }
 0x7b2   :  { %2461 = vtanh.f32 %v1762_v52  ;;  %v1759_v58 = vadd.f32 0.5, %v1758_v53  ;;  %v35_v52 = vld [vmem:[%s3448_s2 + $0x2] ss:$0 sm:$0xff] }
 0x7b5   :  { %1906 = vmatpush.bf16.msra.mxu0 %v2222_v41 }
 0x7b8   :  { %v2462_v5 = vpop.eup %2461 }
 0x7b9   :  { %v1764_v15 = vmul.f32 %v2462_v5, %v1759_v58  ;;  %1907 = vmatpush.bf16.msra.mxu0 %v2218_v6 }
 0x7bd   :  { %1908 = vmatpush.bf16.msra.mxu0 %v2214_v57 }
 0x7c1   :  { %1909 = vmatpush.bf16.msra.mxu0 %v2210_v0 }
 0x7c5   :  { %1910 = vmatpush.bf16.msra.mxu0 %v2206_v49 }
 0x7c9   :  { %1911 = vmatpush.bf16.msra.mxu0 %v2202_v8 }
 0x81f   :  { %v1766_v21 = vpop.permute.xlu0 %1765 }
 0x820   :  { %v1767_v24 = vadd.f32 %v1766_v21, %v1764_v15 }
 0x822   :  { %v1768_v14 = vpack.c.bf16 %v1767_v24, %v1767_v24 }
 0x824   :  { %1777 = vmatmul.bf16.vlgmr.msrb.gmra.mxu0 %v1768_v14  ;;  %1790 = vmatmul.bf16.vlgmr.msrb.gmra.mxu1 %v1768_v14 }
 0x825   :  { %1803 = vmatmul.bf16.vlgmr.msrb.gmra.mxu2 %v1768_v14  ;;  %1816 = vmatmul.bf16.vlgmr.msrb.gmra.mxu3 %v1768_v14 }
 0x8a1   :  { %v1778_v26 = vpop.f32.mrf.mxu0  ;;  %v1791_v44 = vpop.f32.mrf.mxu1 }
 0x8a2   :  { %v1779_v48 = vadd.f32 %v1778_v26, %v3813_v61  ;;  %v1792_v11 = vadd.f32 %v1791_v44, %v3814_v4 }
 0x8a4   :  { %v1821_v60 = vmul.f32 0.5, %v1779_v48  ;;  %v1822_v45 = vmul.f32 0.5, %v1792_v11 }
 0x8a6   :  { %2463 = vtanh.f32 %v1821_v60 }
 0x8a7   :  { %2465 = vtanh.f32 %v1822_v45 }
 0x8a8   :  { %v1804_v31 = vpop.f32.mrf.mxu2  ;;  %v1817_v17 = vpop.f32.mrf.mxu3 }
 0x8a9   :  { %v1805_v50 = vadd.f32 %v1804_v31, %v3815_v39  ;;  %v1818_v27 = vadd.f32 %v1817_v17, %v3816_v36  ;;  %v1780_v46 = vpop.f32.mrf.mxu0  ;;  %v1793_v28 = vpop.f32.mrf.mxu1 }
 0x8ab   :  { %2467 = vtanh.f32 %v1805_v50  ;;  %v1830_v10 = vmul.f32 0.5, %v1818_v27 }
 0x8ac   :  { %v2464_v37 = vpop.eup %2463 }
 0x8ad   :  { %v2466_v43 = vpop.eup %2465  ;;  %v1825_v1 = vmul.f32 0.5, %v2464_v37  ;;  %2469 = vtanh.f32 %v1830_v10 }
 0x8ae   :  { %v1826_v61 = vmul.f32 0.5, %v2466_v43 }
 0x8af   :  { %v1827_v4 = vadd.f32 0.5, %v1825_v1 }
 0x8b0   :  { %v1828_v56 = vadd.f32 0.5, %v1826_v61  ;;  %v1806_v63 = vpop.f32.mrf.mxu2  ;;  %v1819_v29 = vpop.f32.mrf.mxu3 }
 0x8b1   :  { %v2468_v51 = vpop.eup %2467 }
 0x8b2   :  { %v1834_v2 = vmul.f32 %v1828_v56, %v3428_v35  ;;  %v1835_v7 = vmul.f32 %v2468_v51, %v1827_v4 }
 0x8b3   :  { %v2470_v39 = vpop.eup %2469 }
 0x8b4   :  { %v1836_v16 = vadd.f32 %v1835_v7, %v1834_v2  ;;  %v1832_v36 = vmul.f32 0.5, %v2470_v39 }
 0x8b6   :  { %2471 = vtanh.f32 %v1836_v16  ;;  %v1833_v20 = vadd.f32 0.5, %v1832_v36 }
 0x8bc   :  { %v2472_v25 = vpop.eup %2471 }
 0x8bd   :  { %v1838_v32 = vmul.f32 %v2472_v25, %v1833_v20 }
 0x8bf   :  { %v1839_v40 = vpack.c.bf16 %v1838_v32, %v1838_v32 }
 0x8c1   :  { %1912 = vmatmul.bf16.vlgmr.msra.gmra.mxu0 %v1839_v40 }
 0x93e   :  { %v1913_v35 = vpop.f32.mrf.mxu0 }
 0x93f   :  { %v1914_v53 = vadd.f32 %v1913_v35, %v35_v52 }
 0x941   :  { %1917 = vst [vmem:[#allocation6] sm:$0xff] %v1914_v53 }
 0x942   :  { %1928 = dma.vmem_to_hbm [thread:$0]  %s1924_s14, 128, %s1926_s17, [#allocation5]  }
 0x946   :  { %v1915_v58 = vpop.f32.mrf.mxu0 }
 0x947   :  { %2523 = dma.done.wait [#allocation5], 128  }
 0x948   :  { %2524 = vsyncadd [#allocation5], 4294967168 }
 0x949   :  { %1933 = vsyncpa [#allocation4], 1 }
 0x94a   :  { %1934 = vsyncpa [#allocation5], 1 }

</bundles_post_ra>
